<compile_context>
chip_gen: v7x
topology: tpu7x:2x2x1
jax: 0.10.0
libtpu: 0.0.40
codegen_flags: <defaults>
</compile_context>

<pallas_src>
import functools

import jax
import jax.numpy as jnp
from jax.experimental import pallas as pl
from jax.experimental.pallas import tpu as pltpu


_VMEM_LIMIT = 64 * 1024 * 1024  # budget hint; actual tile working sets are far smaller


# ------------------------- helpers -------------------------

def _round_up(x, m):
    return (x + m - 1) // m * m


def _pad2d(x, rows, cols):
    r, c = x.shape
    if r == rows and c == cols:
        return x
    return jnp.pad(x, ((0, rows - r), (0, cols - c)))


def _pick_tile(n, align, cap):
    """Largest multiple of `align` <= cap that divides round_up(n, align)."""
    n_al = _round_up(n, align)
    t = min(n_al, cap)
    t -= t % align
    t = max(t, align)
    while n_al % t:
        t -= align
    return t


def _pick_row_tile(m, cap=256):
    """Row tile (multiple of 8) dividing round_up(m, 8); split 1-step grids in two
    so both v7x TensorCores get work."""
    mr = _round_up(m, 8)
    t = _pick_tile(mr, 8, cap)
    if mr // t == 1 and mr >= 16 and (mr // 2) % 8 == 0:
        t = mr // 2
    return t


def _pick_seq_tile(s, cap=128):
    if s <= cap:
        return s
    t = cap - cap % 8
    while t >= 8:
        if s % t == 0:
            return t
        t -= 8
    return s


# ------------------------- tiled linear (bias, optional relu) -------------------------

def _linear_k1_kernel(x_ref, w_ref, b_ref, o_ref, *, relu):
    # Single K-step: no accumulator scratch, bf16 MXU path, f32 accumulation.
    y = jnp.dot(x_ref[...].astype(jnp.bfloat16),
                w_ref[...].astype(jnp.bfloat16),
                preferred_element_type=jnp.float32) + b_ref[...]
    if relu:
        y = jnp.maximum(y, 0.0)
    o_ref[...] = y.astype(o_ref.dtype)


def _linear_kernel(x_ref, w_ref, b_ref, o_ref, acc_ref, *, relu):
    @pl.when(pl.program_id(2) == 0)
    def _():
        acc_ref[...] = jnp.zeros_like(acc_ref)

    acc_ref[...] += jnp.dot(x_ref[...].astype(jnp.bfloat16),
                            w_ref[...].astype(jnp.bfloat16),
                            preferred_element_type=jnp.float32)

    @pl.when(pl.program_id(2) == pl.num_programs(2) - 1)
    def _():
        y = acc_ref[...] + b_ref[...]
        if relu:
            y = jnp.maximum(y, 0.0)
        o_ref[...] = y.astype(o_ref.dtype)


def linear(x, w, b, relu=False):
    # x: (M, K)  w: (K, N)  b: (1, N)  -> (M, N)
    M, K = x.shape
    N = w.shape[1]
    tm = _pick_row_tile(M, 256)
    tk = _pick_tile(K, 128, 512)
    tn = _pick_tile(N, 128, 1024 if N >= 4096 else 512)
    Mp, Kp, Np = _round_up(M, tm), _round_up(K, tk), _round_up(N, tn)
    xp = _pad2d(x, Mp, Kp)
    wp = _pad2d(w, Kp, Np)      # no-op for 128-aligned weights (vocab, d_model)
    bp = _pad2d(b, 1, Np)

    if Kp == tk:
        out = pl.pallas_call(
            functools.partial(_linear_k1_kernel, relu=relu),
            out_shape=jax.ShapeDtypeStruct((Mp, Np), x.dtype),
            grid=(Mp // tm, Np // tn),
            in_specs=[
                pl.BlockSpec((tm, tk), lambda i, j: (i, 0)),
                pl.BlockSpec((tk, tn), lambda i, j: (0, j)),
                pl.BlockSpec((1, tn), lambda i, j: (0, j)),
            ],
            out_specs=pl.BlockSpec((tm, tn), lambda i, j: (i, j)),
            compiler_params=pltpu.CompilerParams(
                dimension_semantics=("parallel", "parallel"),
                vmem_limit_bytes=_VMEM_LIMIT),
        )(xp, wp, bp)
    else:
        out = pl.pallas_call(
            functools.partial(_linear_kernel, relu=relu),
            out_shape=jax.ShapeDtypeStruct((Mp, Np), x.dtype),
            grid=(Mp // tm, Np // tn, Kp // tk),
            in_specs=[
                pl.BlockSpec((tm, tk), lambda i, j, k: (i, k)),
                pl.BlockSpec((tk, tn), lambda i, j, k: (k, j)),
                pl.BlockSpec((1, tn), lambda i, j, k: (0, j)),
            ],
            out_specs=pl.BlockSpec((tm, tn), lambda i, j, k: (i, j)),
            scratch_shapes=[pltpu.VMEM((tm, tn), jnp.float32)],
            compiler_params=pltpu.CompilerParams(
                dimension_semantics=("parallel", "parallel", "arbitrary"),
                vmem_limit_bytes=_VMEM_LIMIT),
        )(xp, wp, bp)
    if Mp != M or Np != N:
        out = out[:M, :N]
    return out


# ------------------------- fused out-proj + residual + layernorm -------------------------

def _proj_addnorm_kernel(a_ref, w_ref, b_ref, r_ref, g_ref, beta_ref, o_ref):
    y = jnp.dot(a_ref[...].astype(jnp.bfloat16),
                w_ref[...].astype(jnp.bfloat16),
                preferred_element_type=jnp.float32) + b_ref[...]
    x = r_ref[...].astype(jnp.float32) + y
    mean = jnp.mean(x, axis=-1, keepdims=True)
    var = jnp.mean(jnp.square(x - mean), axis=-1, keepdims=True)
    xn = (x - mean) * jax.lax.rsqrt(var + 1e-5)
    o_ref[...] = (xn * g_ref[...] + beta_ref[...]).astype(o_ref.dtype)


def proj_addnorm(a, w, b, r, g, beta):
    # LayerNorm(r + a @ w + b);  a, r: (M, E)  w: (E, E)
    M, E = a.shape
    tm = _pick_row_tile(M, 128)
    Mp = _round_up(M, tm)
    ap = _pad2d(a, Mp, E)
    rp = _pad2d(r, Mp, E)
    out = pl.pallas_call(
        _proj_addnorm_kernel,
        out_shape=jax.ShapeDtypeStruct((Mp, E), a.dtype),
        grid=(Mp // tm,),
        in_specs=[
            pl.BlockSpec((tm, E), lambda i: (i, 0)),
            pl.BlockSpec((E, E), lambda i: (0, 0)),
            pl.BlockSpec((1, E), lambda i: (0, 0)),
            pl.BlockSpec((tm, E), lambda i: (i, 0)),
            pl.BlockSpec((1, E), lambda i: (0, 0)),
            pl.BlockSpec((1, E), lambda i: (0, 0)),
        ],
        out_specs=pl.BlockSpec((tm, E), lambda i: (i, 0)),
        compiler_params=pltpu.CompilerParams(
            dimension_semantics=("parallel",),
            vmem_limit_bytes=_VMEM_LIMIT),
    )(ap, w, b, rp, g, beta)
    return out[:M] if Mp != M else out


# ------------------------- fused FFN + residual + layernorm -------------------------

def _ffn_addnorm_kernel(x_ref, w1_ref, b1_ref, w2_ref, b2_ref, g_ref, beta_ref,
                        o_ref):
    x = x_ref[...]
    h = jnp.dot(x.astype(jnp.bfloat16), w1_ref[...].astype(jnp.bfloat16),
                preferred_element_type=jnp.float32) + b1_ref[...]
    h = jnp.maximum(h, 0.0)
    y = jnp.dot(h.astype(jnp.bfloat16), w2_ref[...].astype(jnp.bfloat16),
                preferred_element_type=jnp.float32) + b2_ref[...]
    z = x.astype(jnp.float32) + y
    mean = jnp.mean(z, axis=-1, keepdims=True)
    var = jnp.mean(jnp.square(z - mean), axis=-1, keepdims=True)
    zn = (z - mean) * jax.lax.rsqrt(var + 1e-5)
    o_ref[...] = (zn * g_ref[...] + beta_ref[...]).astype(o_ref.dtype)


def ffn_addnorm(x, w1, b1, w2, b2, g, beta):
    # LayerNorm(x + relu(x@W1+b1)@W2+b2);  x: (M, E)
    M, E = x.shape
    F = w1.shape[1]
    tm = _pick_row_tile(M, 128)
    Mp = _round_up(M, tm)
    xp = _pad2d(x, Mp, E)
    out = pl.pallas_call(
        _ffn_addnorm_kernel,
        out_shape=jax.ShapeDtypeStruct((Mp, E), x.dtype),
        grid=(Mp // tm,),
        in_specs=[
            pl.BlockSpec((tm, E), lambda i: (i, 0)),
            pl.BlockSpec((E, F), lambda i: (0, 0)),
            pl.BlockSpec((1, F), lambda i: (0, 0)),
            pl.BlockSpec((F, E), lambda i: (0, 0)),
            pl.BlockSpec((1, E), lambda i: (0, 0)),
            pl.BlockSpec((1, E), lambda i: (0, 0)),
            pl.BlockSpec((1, E), lambda i: (0, 0)),
        ],
        out_specs=pl.BlockSpec((tm, E), lambda i: (i, 0)),
        compiler_params=pltpu.CompilerParams(
            dimension_semantics=("parallel",),
            vmem_limit_bytes=_VMEM_LIMIT),
    )(xp, w1, b1, w2, b2, g, beta)
    return out[:M] if Mp != M else out


# ------------------------- standalone layernorm (final enc/dec norms) -------------------------

def _layernorm_kernel(x_ref, g_ref, b_ref, o_ref):
    x = x_ref[...].astype(jnp.float32)
    mean = jnp.mean(x, axis=-1, keepdims=True)
    var = jnp.mean(jnp.square(x - mean), axis=-1, keepdims=True)
    xn = (x - mean) * jax.lax.rsqrt(var + 1e-5)
    o_ref[...] = (xn * g_ref[...] + b_ref[...]).astype(o_ref.dtype)


def layernorm(x, g, b):
    M, E = x.shape
    tm = _pick_row_tile(M, 256)
    Mp = _round_up(M, tm)
    xp = _pad2d(x, Mp, E)
    out = pl.pallas_call(
        _layernorm_kernel,
        out_shape=jax.ShapeDtypeStruct((Mp, E), x.dtype),
        grid=(Mp // tm,),
        in_specs=[
            pl.BlockSpec((tm, E), lambda i: (i, 0)),
            pl.BlockSpec((1, E), lambda i: (0, 0)),
            pl.BlockSpec((1, E), lambda i: (0, 0)),
        ],
        out_specs=pl.BlockSpec((tm, E), lambda i: (i, 0)),
        compiler_params=pltpu.CompilerParams(
            dimension_semantics=("parallel",)),
    )(xp, g, b)
    return out[:M] if Mp != M else out


# ------------------------- multi-head attention (query-tiled, packed QKV) -------------------------

def _attn_kernel(q_ref, k_ref, v_ref, o_ref, *, nhead, scale):
    q = q_ref[0]                              # (tq, E)
    k = k_ref[0]                              # (Sk, E)
    v = v_ref[0]                              # (Sk, E)
    E = q.shape[-1]
    dh = E // nhead
    dn = (((1,), (1,)), ((), ()))             # contract last dims (no K transpose)
    for h in range(nhead):
        lo = h * dh
        qh = q[:, lo:lo + dh].astype(jnp.bfloat16)
        kh = k[:, lo:lo + dh].astype(jnp.bfloat16)
        vh = v[:, lo:lo + dh].astype(jnp.bfloat16)
        s = jax.lax.dot_general(qh, kh, dn,
                                preferred_element_type=jnp.float32) * scale
        m = jnp.max(s, axis=-1, keepdims=True)
        p = jnp.exp(s - m)
        denom = jnp.sum(p, axis=-1, keepdims=True)
        p = p * pl.reciprocal(denom, approx=True)
        oh = jnp.dot(p.astype(jnp.bfloat16), vh,
                     preferred_element_type=jnp.float32)
        # Per-head store straight into the output block (no concatenate ->
        # no nhead simultaneously-live head outputs / vreg spills).
        o_ref[0, :, lo:lo + dh] = oh.astype(o_ref.dtype)


def _q_index(b, i, *, col):
    return (b, i, col)


def _kv_index(b, i, *, col):
    return (b, 0, col)


def attention(q_src, k_src, v_src, nhead, E, q_col=0, k_col=0, v_col=0):
    """Multi-head attention. Q occupies columns [q_col*E:(q_col+1)*E) of q_src
    (similarly K/V), so packed QKV / KV projection outputs are consumed
    directly without any XLA column-slice copies."""
    B, Sq, _ = q_src.shape
    Sk = k_src.shape[1]
    dh = E // nhead
    scale = 1.0 / float(dh) ** 0.5
    tq = _pick_seq_tile(Sq, 128)
    return pl.pallas_call(
        functools.partial(_attn_kernel, nhead=nhead, scale=scale),
        out_shape=jax.ShapeDtypeStruct((B, Sq, E), q_src.dtype),
        grid=(B, Sq // tq),
        in_specs=[
            pl.BlockSpec((1, tq, E), functools.partial(_q_index, col=q_col)),
            pl.BlockSpec((1, Sk, E), functools.partial(_kv_index, col=k_col)),
            pl.BlockSpec((1, Sk, E), functools.partial(_kv_index, col=v_col)),
        ],
        out_specs=pl.BlockSpec((1, tq, E), lambda b, i: (b, i, 0)),
        compiler_params=pltpu.CompilerParams(
            dimension_semantics=("parallel", "parallel"),
            vmem_limit_bytes=_VMEM_LIMIT),
    )(q_src, k_src, v_src)


# ------------------------- model composition (glue) -------------------------

def _self_attn_block(p, x2d, B, S, nhead, ln_g, ln_b):
    E = x2d.shape[1]
    qkv = linear(x2d, p["wqkv"], p["bqkv"]).reshape(B, S, 3 * E)  # fused QKV
    if E % 128 == 0:
        o = attention(qkv, qkv, qkv, nhead, E, q_col=0, k_col=1, v_col=2)
    else:
        # TODO(synk): fallback path does XLA column-slice copies when E is not lane-aligned.
        q, k, v = qkv[..., :E], qkv[..., E:2 * E], qkv[..., 2 * E:]
        o = attention(q, k, v, nhead, E)
    # fused: out-projection + residual + LayerNorm
    return proj_addnorm(o.reshape(B * S, E), p["wo"], p["bo"], x2d, ln_g, ln_b)


def _cross_attn_block(p, x2d, mem2d, B, St, Ss, nhead, ln_g, ln_b):
    E = x2d.shape[1]
    q = linear(x2d, p["wq"], p["bq"]).reshape(B, St, E)
    kv = linear(mem2d, p["wkv"], p["bkv"]).reshape(B, Ss, 2 * E)   # fused KV
    if E % 128 == 0:
        o = attention(q, kv, kv, nhead, E, k_col=0, v_col=1)
    else:
        k, v = kv[..., :E], kv[..., E:]
        o = attention(q, k, v, nhead, E)
    return proj_addnorm(o.reshape(B * St, E), p["wo"], p["bo"], x2d, ln_g, ln_b)


def encoder_layer(p, x2d, B, S, nhead):
    x2d = _self_attn_block(p["self_attn"], x2d, B, S, nhead,
                           p["ln1_g"], p["ln1_b"])
    x2d = ffn_addnorm(x2d, p["ff_w1"], p["ff_b1"], p["ff_w2"], p["ff_b2"],
                      p["ln2_g"], p["ln2_b"])
    return x2d


def decoder_layer(p, x2d, mem2d, B, St, Ss, nhead):
    x2d = _self_attn_block(p["self_attn"], x2d, B, St, nhead,
                           p["ln1_g"], p["ln1_b"])
    x2d = _cross_attn_block(p["cross_attn"], x2d, mem2d, B, St, Ss, nhead,
                            p["ln2_g"], p["ln2_b"])
    x2d = ffn_addnorm(x2d, p["ff_w1"], p["ff_b1"], p["ff_w2"], p["ff_b2"],
                      p["ln3_g"], p["ln3_b"])
    return x2d


def transformer_forward(params, src_tokens, tgt_tokens, nhead):
    # src_tokens: (S_src, B) int32, tgt_tokens: (S_tgt, B) int32
    E = params["embedding"].shape[1]
    Ss, B = src_tokens.shape
    St = tgt_tokens.shape[0]

    # Embedding lookup (gather) kept in plain-JAX glue; activations live in
    # (B, S, E) layout so no 4-D head transposes are ever needed.
    src = jnp.take(params["embedding"], src_tokens.T, axis=0)   # (B, Ss, E)
    tgt = jnp.take(params["embedding"], tgt_tokens.T, axis=0)   # (B, St, E)

    mem = src.reshape(B * Ss, E)
    for lp in params["encoder_layers"]:
        mem = encoder_layer(lp, mem, B, Ss, nhead)
    mem = layernorm(mem, params["enc_norm_g"], params["enc_norm_b"])

    out = tgt.reshape(B * St, E)
    for lp in params["decoder_layers"]:
        out = decoder_layer(lp, out, mem, B, St, Ss, nhead)
    out = layernorm(out, params["dec_norm_g"], params["dec_norm_b"])

    # Reorder the E-wide activation to (St, B, E) *before* the vocab matmul so
    # the (St, B, V) logits come out already in PyTorch's layout (no V-wide
    # transpose of the largest tensor).
    out = out.reshape(B, St, E).transpose(1, 0, 2).reshape(St * B, E)
    logits = linear(out, params["fc_w"], params["fc_b"])        # (St*B, V)
    V = logits.shape[1]
    return logits.reshape(St, B, V)                             # (St, B, V)


# ------------------------- parameter initialization -------------------------

def init_params(key, vocab_size, d_model, nhead, n_enc, n_dec, d_ff):
    keys = iter(jax.random.split(key, 4096))

    def w(shape, scale=0.02):
        return (scale * jax.random.normal(next(keys), shape)).astype(jnp.float32)

    def zeros(n):
        return jnp.zeros((1, n), jnp.float32)

    def ones(n):
        return jnp.ones((1, n), jnp.float32)

    def self_attn_p():
        return dict(
            wqkv=w((d_model, 3 * d_model)), bqkv=zeros(3 * d_model),
            wo=w((d_model, d_model)), bo=zeros(d_model),
        )

    def cross_attn_p():
        return dict(
            wq=w((d_model, d_model)), bq=zeros(d_model),
            wkv=w((d_model, 2 * d_model)), bkv=zeros(2 * d_model),
            wo=w((d_model, d_model)), bo=zeros(d_model),
        )

    def enc_layer_p():
        return dict(
            self_attn=self_attn_p(),
            ff_w1=w((d_model, d_ff)), ff_b1=zeros(d_ff),
            ff_w2=w((d_ff, d_model)), ff_b2=zeros(d_model),
            ln1_g=ones(d_model), ln1_b=zeros(d_model),
            ln2_g=ones(d_model), ln2_b=zeros(d_model),
        )

    def dec_layer_p():
        return dict(
            self_attn=self_attn_p(), cross_attn=cross_attn_p(),
            ff_w1=w((d_model, d_ff)), ff_b1=zeros(d_ff),
            ff_w2=w((d_ff, d_model)), ff_b2=zeros(d_model),
            ln1_g=ones(d_model), ln1_b=zeros(d_model),
            ln2_g=ones(d_model), ln2_b=zeros(d_model),
            ln3_g=ones(d_model), ln3_b=zeros(d_model),
        )

    return dict(
        embedding=w((vocab_size, d_model)),
        encoder_layers=[enc_layer_p() for _ in range(n_enc)],
        decoder_layers=[dec_layer_p() for _ in range(n_dec)],
        enc_norm_g=ones(d_model), enc_norm_b=zeros(d_model),
        dec_norm_g=ones(d_model), dec_norm_b=zeros(d_model),
        fc_w=w((d_model, vocab_size)), fc_b=zeros(vocab_size),
    )


# ------------------------- main -------------------------

if __name__ == "__main__":
    # Small, lane-aligned shapes (nn.Transformer defaults are d_model=512 /
    # 8 heads / 6+6 layers / ffn=2048; scaled down for a quick synthetic run).
    VOCAB = 256
    D_MODEL = 128
    NHEAD = 4
    N_ENC = 2
    N_DEC = 2
    D_FF = 256
    S_SRC = 8
    S_TGT = 8
    BATCH = 2

    root = jax.random.PRNGKey(0)
    k_params, k_src, k_tgt = jax.random.split(root, 3)

    params = init_params(k_params, VOCAB, D_MODEL, NHEAD, N_ENC, N_DEC, D_FF)
    src = jax.random.randint(k_src, (S_SRC, BATCH), 0, VOCAB, dtype=jnp.int32)
    tgt = jax.random.randint(k_tgt, (S_TGT, BATCH), 0, VOCAB, dtype=jnp.int32)

    fwd = jax.jit(transformer_forward, static_argnums=(3,))
    logits = fwd(params, src, tgt, NHEAD)
    jax.block_until_ready(logits)

    assert logits.shape == (S_TGT, BATCH, VOCAB), logits.shape
    assert bool(jnp.all(jnp.isfinite(logits)))
    print("KERNEL_OK")
</pallas_src>

<mosaic_0001>
module attributes {stable_mosaic.version = 11 : i64} {
  func.func @_proj_addnorm_kernel(%arg0: i32, %arg1: memref<8x128xf32, #tpu.memory_space<vmem>>, %arg2: memref<128x128xf32, #tpu.memory_space<vmem>>, %arg3: memref<1x128xf32, #tpu.memory_space<vmem>>, %arg4: memref<8x128xf32, #tpu.memory_space<vmem>>, %arg5: memref<1x128xf32, #tpu.memory_space<vmem>>, %arg6: memref<1x128xf32, #tpu.memory_space<vmem>>, %arg7: memref<8x128xf32, #tpu.memory_space<vmem>>) attributes {dimension_semantics = [#tpu.dimension_semantics<parallel>], iteration_bounds = array<i64: 2>, scalar_prefetch = 0 : i64, scratch_operands = 0 : i64, tpu.core_type = #tpu.core_type<tc>, window_params = [{transform_indices = @transform_0, window_bounds = array<i64: 8, 128>}, {pipeline_mode = #tpu.pipeline_mode<synchronous>, transform_indices = @transform_1, window_bounds = array<i64: 128, 128>}, {pipeline_mode = #tpu.pipeline_mode<synchronous>, transform_indices = @transform_2, window_bounds = array<i64: 1, 128>}, {transform_indices = @transform_3, window_bounds = array<i64: 8, 128>}, {pipeline_mode = #tpu.pipeline_mode<synchronous>, transform_indices = @transform_4, window_bounds = array<i64: 1, 128>}, {pipeline_mode = #tpu.pipeline_mode<synchronous>, transform_indices = @transform_5, window_bounds = array<i64: 1, 128>}, {transform_indices = @transform_6, window_bounds = array<i64: 8, 128>}]} {
    %c0 = arith.constant 0 : index
    %c0_0 = arith.constant 0 : index
    %0 = vector.load %arg1[%c0, %c0_0] : memref<8x128xf32, #tpu.memory_space<vmem>>, vector<8x128xf32>
    %1 = arith.truncf %0 : vector<8x128xf32> to vector<8x128xbf16>
    %c0_1 = arith.constant 0 : index
    %c0_2 = arith.constant 0 : index
    %2 = vector.load %arg2[%c0_1, %c0_2] : memref<128x128xf32, #tpu.memory_space<vmem>>, vector<128x128xf32>
    %3 = arith.truncf %2 : vector<128x128xf32> to vector<128x128xbf16>
    %cst = arith.constant dense<0.000000e+00> : vector<8x128xf32>
    %4 = tpu.matmul %1, %3, %cst {dimension_numbers = #tpu.dot_dimension_numbers<[1], [0], [0], [1], [0, 0, 1, 1], [], []>} : vector<8x128xbf16>, vector<128x128xbf16>, vector<8x128xf32> -> vector<8x128xf32>
    %c0_3 = arith.constant 0 : index
    %c0_4 = arith.constant 0 : index
    %5 = vector.load %arg3[%c0_3, %c0_4] : memref<1x128xf32, #tpu.memory_space<vmem>>, vector<1x128xf32>
    %6 = vector.broadcast %5 : vector<1x128xf32> to vector<8x128xf32>
    %7 = arith.addf %4, %6 : vector<8x128xf32>
    %c0_5 = arith.constant 0 : index
    %c0_6 = arith.constant 0 : index
    %8 = vector.load %arg4[%c0_5, %c0_6] : memref<8x128xf32, #tpu.memory_space<vmem>>, vector<8x128xf32>
    %9 = arith.addf %8, %7 : vector<8x128xf32>
    %cst_7 = arith.constant dense<0.000000e+00> : vector<8xf32>
    %10 = vector.multi_reduction <add>, %9, %cst_7 [1] : vector<8x128xf32> to vector<8xf32>
    %11 = vector.shape_cast %10 : vector<8xf32> to vector<8x1xf32>
    %cst_8 = arith.constant 1.280000e+02 : f32
    %12 = vector.broadcast %cst_8 : f32 to vector<8x1xf32>
    %13 = arith.divf %11, %12 : vector<8x1xf32>
    %14 = vector.broadcast %13 : vector<8x1xf32> to vector<8x128xf32>
    %15 = arith.subf %9, %14 : vector<8x128xf32>
    %16 = arith.mulf %15, %15 : vector<8x128xf32>
    %cst_9 = arith.constant dense<0.000000e+00> : vector<8xf32>
    %17 = vector.multi_reduction <add>, %16, %cst_9 [1] : vector<8x128xf32> to vector<8xf32>
    %18 = vector.shape_cast %17 : vector<8xf32> to vector<8x1xf32>
    %cst_10 = arith.constant 1.280000e+02 : f32
    %19 = vector.broadcast %cst_10 : f32 to vector<8x1xf32>
    %20 = arith.divf %18, %19 : vector<8x1xf32>
    %21 = vector.broadcast %13 : vector<8x1xf32> to vector<8x128xf32>
    %22 = arith.subf %9, %21 : vector<8x128xf32>
    %cst_11 = arith.constant 9.99999974E-6 : f32
    %23 = vector.broadcast %cst_11 : f32 to vector<8x1xf32>
    %24 = arith.addf %20, %23 : vector<8x1xf32>
    %25 = math.rsqrt %24 : vector<8x1xf32>
    %26 = vector.broadcast %25 : vector<8x1xf32> to vector<8x128xf32>
    %27 = arith.mulf %22, %26 : vector<8x128xf32>
    %c0_12 = arith.constant 0 : index
    %c0_13 = arith.constant 0 : index
    %28 = vector.load %arg5[%c0_12, %c0_13] : memref<1x128xf32, #tpu.memory_space<vmem>>, vector<1x128xf32>
    %29 = vector.broadcast %28 : vector<1x128xf32> to vector<8x128xf32>
    %30 = arith.mulf %27, %29 : vector<8x128xf32>
    %c0_14 = arith.constant 0 : index
    %c0_15 = arith.constant 0 : index
    %31 = vector.load %arg6[%c0_14, %c0_15] : memref<1x128xf32, #tpu.memory_space<vmem>>, vector<1x128xf32>
    %32 = vector.broadcast %31 : vector<1x128xf32> to vector<8x128xf32>
    %33 = arith.addf %30, %32 : vector<8x128xf32>
    %c0_16 = arith.constant 0 : index
    %c0_17 = arith.constant 0 : index
    %34 = vector.load %arg7[%c0_16, %c0_17] : memref<8x128xf32, #tpu.memory_space<vmem>>, vector<8x128xf32>
    tpu.vector_store %arg7[%c0_16, %c0_17], %33 {strides = array<i32>} : memref<8x128xf32, #tpu.memory_space<vmem>>, vector<8x128xf32>,
    return
  }
  func.func @transform_0(%arg0: i32) -> (i32, i32) {
    %c0_i32 = arith.constant 0 : i32
    %c0_i32_0 = arith.constant 0 : i32
    return %arg0, %c0_i32 : i32, i32
  }
  func.func @transform_1(%arg0: i32) -> (i32, i32) {
    %c0_i32 = arith.constant 0 : i32
    %c0_i32_0 = arith.constant 0 : i32
    %c0_i32_1 = arith.constant 0 : i32
    return %c0_i32, %c0_i32_0 : i32, i32
  }
  func.func @transform_2(%arg0: i32) -> (i32, i32) {
    %c0_i32 = arith.constant 0 : i32
    %c0_i32_0 = arith.constant 0 : i32
    %c0_i32_1 = arith.constant 0 : i32
    return %c0_i32, %c0_i32_0 : i32, i32
  }
  func.func @transform_3(%arg0: i32) -> (i32, i32) {
    %c0_i32 = arith.constant 0 : i32
    %c0_i32_0 = arith.constant 0 : i32
    return %arg0, %c0_i32 : i32, i32
  }
  func.func @transform_4(%arg0: i32) -> (i32, i32) {
    %c0_i32 = arith.constant 0 : i32
    %c0_i32_0 = arith.constant 0 : i32
    %c0_i32_1 = arith.constant 0 : i32
    return %c0_i32, %c0_i32_0 : i32, i32
  }
  func.func @transform_5(%arg0: i32) -> (i32, i32) {
    %c0_i32 = arith.constant 0 : i32
    %c0_i32_0 = arith.constant 0 : i32
    %c0_i32_1 = arith.constant 0 : i32
    return %c0_i32, %c0_i32_0 : i32, i32
  }
  func.func @transform_6(%arg0: i32) -> (i32, i32) {
    %c0_i32 = arith.constant 0 : i32
    %c0_i32_0 = arith.constant 0 : i32
    return %arg0, %c0_i32 : i32, i32
  }
}

module attributes {stable_mosaic.version = 11 : i64} {
  func.func @_linear_k1_kernel(%arg0: i32, %arg1: i32, %arg2: memref<8x128xf32, #tpu.memory_space<vmem>>, %arg3: memref<128x384xf32, #tpu.memory_space<vmem>>, %arg4: memref<1x384xf32, #tpu.memory_space<vmem>>, %arg5: memref<8x384xf32, #tpu.memory_space<vmem>>) attributes {dimension_semantics = [#tpu.dimension_semantics<parallel>, #tpu.dimension_semantics<parallel>], iteration_bounds = array<i64: 2, 1>, scalar_prefetch = 0 : i64, scratch_operands = 0 : i64, tpu.core_type = #tpu.core_type<tc>, window_params = [{transform_indices = @transform_0, window_bounds = array<i64: 8, 128>}, {transform_indices = @transform_1, window_bounds = array<i64: 128, 384>}, {transform_indices = @transform_2, window_bounds = array<i64: 1, 384>}, {transform_indices = @transform_3, window_bounds = array<i64: 8, 384>}]} {
    %c0 = arith.constant 0 : index
    %c0_0 = arith.constant 0 : index
    %0 = vector.load %arg2[%c0, %c0_0] : memref<8x128xf32, #tpu.memory_space<vmem>>, vector<8x128xf32>
    %1 = arith.truncf %0 : vector<8x128xf32> to vector<8x128xbf16>
    %c0_1 = arith.constant 0 : index
    %c0_2 = arith.constant 0 : index
    %2 = vector.load %arg3[%c0_1, %c0_2] : memref<128x384xf32, #tpu.memory_space<vmem>>, vector<128x384xf32>
    %3 = arith.truncf %2 : vector<128x384xf32> to vector<128x384xbf16>
    %cst = arith.constant dense<0.000000e+00> : vector<8x384xf32>
    %4 = tpu.matmul %1, %3, %cst {dimension_numbers = #tpu.dot_dimension_numbers<[1], [0], [0], [1], [0, 0, 1, 1], [], []>} : vector<8x128xbf16>, vector<128x384xbf16>, vector<8x384xf32> -> vector<8x384xf32>
    %c0_3 = arith.constant 0 : index
    %c0_4 = arith.constant 0 : index
    %5 = vector.load %arg4[%c0_3, %c0_4] : memref<1x384xf32, #tpu.memory_space<vmem>>, vector<1x384xf32>
    %6 = vector.broadcast %5 : vector<1x384xf32> to vector<8x384xf32>
    %7 = arith.addf %4, %6 : vector<8x384xf32>
    %c0_5 = arith.constant 0 : index
    %c0_6 = arith.constant 0 : index
    %8 = vector.load %arg5[%c0_5, %c0_6] : memref<8x384xf32, #tpu.memory_space<vmem>>, vector<8x384xf32>
    tpu.vector_store %arg5[%c0_5, %c0_6], %7 {strides = array<i32>} : memref<8x384xf32, #tpu.memory_space<vmem>>, vector<8x384xf32>,
    return
  }
  func.func @transform_0(%arg0: i32, %arg1: i32) -> (i32, i32) {
    %c0_i32 = arith.constant 0 : i32
    %c0_i32_0 = arith.constant 0 : i32
    return %arg0, %c0_i32 : i32, i32
  }
  func.func @transform_1(%arg0: i32, %arg1: i32) -> (i32, i32) {
    %c0_i32 = arith.constant 0 : i32
    %c0_i32_0 = arith.constant 0 : i32
    return %c0_i32, %arg1 : i32, i32
  }
  func.func @transform_2(%arg0: i32, %arg1: i32) -> (i32, i32) {
    %c0_i32 = arith.constant 0 : i32
    %c0_i32_0 = arith.constant 0 : i32
    return %c0_i32, %arg1 : i32, i32
  }
  func.func @transform_3(%arg0: i32, %arg1: i32) -> (i32, i32) {
    %c0_i32 = arith.constant 0 : i32
    return %arg0, %arg1 : i32, i32
  }
}

module attributes {stable_mosaic.version = 11 : i64} {
  func.func @_attn_kernel(%arg0: i32, %arg1: i32, %arg2: memref<1x8x128xf32, #tpu.memory_space<vmem>>, %arg3: memref<1x8x128xf32, #tpu.memory_space<vmem>>, %arg4: memref<1x8x128xf32, #tpu.memory_space<vmem>>, %arg5: memref<1x8x128xf32, #tpu.memory_space<vmem>>) attributes {dimension_semantics = [#tpu.dimension_semantics<parallel>, #tpu.dimension_semantics<parallel>], iteration_bounds = array<i64: 2, 1>, scalar_prefetch = 0 : i64, scratch_operands = 0 : i64, tpu.core_type = #tpu.core_type<tc>, window_params = [{transform_indices = @transform_0, window_bounds = array<i64: 1, 8, 128>}, {transform_indices = @transform_1, window_bounds = array<i64: 1, 8, 128>}, {transform_indices = @transform_2, window_bounds = array<i64: 1, 8, 128>}, {transform_indices = @transform_3, window_bounds = array<i64: 1, 8, 128>}]} {
    %c0 = arith.constant 0 : index
    %c0_0 = arith.constant 0 : index
    %c0_1 = arith.constant 0 : index
    %0 = vector.load %arg2[%c0, %c0_0, %c0_1] : memref<1x8x128xf32, #tpu.memory_space<vmem>>, vector<1x8x128xf32>
    %1 = vector.shape_cast %0 : vector<1x8x128xf32> to vector<8x128xf32>
    %c0_2 = arith.constant 0 : index
    %c0_3 = arith.constant 0 : index
    %c0_4 = arith.constant 0 : index
    %2 = vector.load %arg3[%c0_2, %c0_3, %c0_4] : memref<1x8x128xf32, #tpu.memory_space<vmem>>, vector<1x8x128xf32>
    %3 = vector.shape_cast %2 : vector<1x8x128xf32> to vector<8x128xf32>
    %c0_5 = arith.constant 0 : index
    %c0_6 = arith.constant 0 : index
    %c0_7 = arith.constant 0 : index
    %4 = vector.load %arg4[%c0_5, %c0_6, %c0_7] : memref<1x8x128xf32, #tpu.memory_space<vmem>>, vector<1x8x128xf32>
    %5 = vector.shape_cast %4 : vector<1x8x128xf32> to vector<8x128xf32>
    %6 = vector.extract_strided_slice %1 {offsets = [0, 0], sizes = [8, 32], strides = [1, 1]} : vector<8x128xf32> to vector<8x32xf32>
    %7 = arith.truncf %6 : vector<8x32xf32> to vector<8x32xbf16>
    %8 = vector.extract_strided_slice %3 {offsets = [0, 0], sizes = [8, 32], strides = [1, 1]} : vector<8x128xf32> to vector<8x32xf32>
    %9 = arith.truncf %8 : vector<8x32xf32> to vector<8x32xbf16>
    %10 = vector.extract_strided_slice %5 {offsets = [0, 0], sizes = [8, 32], strides = [1, 1]} : vector<8x128xf32> to vector<8x32xf32>
    %11 = arith.truncf %10 : vector<8x32xf32> to vector<8x32xbf16>
    %cst = arith.constant dense<0.000000e+00> : vector<8x8xf32>
    %12 = tpu.matmul %7, %9, %cst {dimension_numbers = #tpu.dot_dimension_numbers<[1], [1], [0], [0], [0, 0, 1, 0], [], []>} : vector<8x32xbf16>, vector<8x32xbf16>, vector<8x8xf32> -> vector<8x8xf32>
    %cst_8 = arith.constant 0.176776692 : f32
    %13 = vector.broadcast %cst_8 : f32 to vector<8x8xf32>
    %14 = arith.mulf %12, %13 : vector<8x8xf32>
    %cst_9 = arith.constant dense<0xFF800000> : vector<8xf32>
    %15 = vector.multi_reduction <maximumf>, %14, %cst_9 [1] : vector<8x8xf32> to vector<8xf32>
    %16 = vector.shape_cast %15 : vector<8xf32> to vector<8x1xf32>
    %17 = vector.broadcast %16 : vector<8x1xf32> to vector<8x8xf32>
    %18 = arith.subf %14, %17 : vector<8x8xf32>
    %19 = math.exp %18 : vector<8x8xf32>
    %cst_10 = arith.constant dense<0.000000e+00> : vector<8xf32>
    %20 = vector.multi_reduction <add>, %19, %cst_10 [1] : vector<8x8xf32> to vector<8xf32>
    %21 = vector.shape_cast %20 : vector<8xf32> to vector<8x1xf32>
    %22 = tpu.reciprocal %21 {approx = true} : vector<8x1xf32> -> vector<8x1xf32>
    %23 = vector.broadcast %22 : vector<8x1xf32> to vector<8x8xf32>
    %24 = arith.mulf %19, %23 : vector<8x8xf32>
    %25 = arith.truncf %24 : vector<8x8xf32> to vector<8x8xbf16>
    %cst_11 = arith.constant dense<0.000000e+00> : vector<8x32xf32>
    %26 = tpu.matmul %25, %11, %cst_11 {dimension_numbers = #tpu.dot_dimension_numbers<[1], [0], [0], [1], [0, 0, 1, 1], [], []>} : vector<8x8xbf16>, vector<8x32xbf16>, vector<8x32xf32> -> vector<8x32xf32>
    %c0_12 = arith.constant 0 : index
    %c0_13 = arith.constant 0 : index
    %c0_14 = arith.constant 0 : index
    %27 = vector.load %arg5[%c0_12, %c0_13, %c0_14] : memref<1x8x128xf32, #tpu.memory_space<vmem>>, vector<1x8x32xf32>
    %28 = vector.shape_cast %27 : vector<1x8x32xf32> to vector<8x32xf32>
    %29 = vector.shape_cast %26 : vector<8x32xf32> to vector<1x8x32xf32>
    tpu.vector_store %arg5[%c0_12, %c0_13, %c0_14], %29 {strides = array<i32>} : memref<1x8x128xf32, #tpu.memory_space<vmem>>, vector<1x8x32xf32>,
    %30 = vector.extract_strided_slice %1 {offsets = [0, 32], sizes = [8, 32], strides = [1, 1]} : vector<8x128xf32> to vector<8x32xf32>
    %31 = arith.truncf %30 : vector<8x32xf32> to vector<8x32xbf16>
    %32 = vector.extract_strided_slice %3 {offsets = [0, 32], sizes = [8, 32], strides = [1, 1]} : vector<8x128xf32> to vector<8x32xf32>
    %33 = arith.truncf %32 : vector<8x32xf32> to vector<8x32xbf16>
    %34 = vector.extract_strided_slice %5 {offsets = [0, 32], sizes = [8, 32], strides = [1, 1]} : vector<8x128xf32> to vector<8x32xf32>
    %35 = arith.truncf %34 : vector<8x32xf32> to vector<8x32xbf16>
    %cst_15 = arith.constant dense<0.000000e+00> : vector<8x8xf32>
    %36 = tpu.matmul %31, %33, %cst_15 {dimension_numbers = #tpu.dot_dimension_numbers<[1], [1], [0], [0], [0, 0, 1, 0], [], []>} : vector<8x32xbf16>, vector<8x32xbf16>, vector<8x8xf32> -> vector<8x8xf32>
    %cst_16 = arith.constant 0.176776692 : f32
    %37 = vector.broadcast %cst_16 : f32 to vector<8x8xf32>
    %38 = arith.mulf %36, %37 : vector<8x8xf32>
    %cst_17 = arith.constant dense<0xFF800000> : vector<8xf32>
    %39 = vector.multi_reduction <maximumf>, %38, %cst_17 [1] : vector<8x8xf32> to vector<8xf32>
    %40 = vector.shape_cast %39 : vector<8xf32> to vector<8x1xf32>
    %41 = vector.broadcast %40 : vector<8x1xf32> to vector<8x8xf32>
    %42 = arith.subf %38, %41 : vector<8x8xf32>
    %43 = math.exp %42 : vector<8x8xf32>
    %cst_18 = arith.constant dense<0.000000e+00> : vector<8xf32>
    %44 = vector.multi_reduction <add>, %43, %cst_18 [1] : vector<8x8xf32> to vector<8xf32>
    %45 = vector.shape_cast %44 : vector<8xf32> to vector<8x1xf32>
    %46 = tpu.reciprocal %45 {approx = true} : vector<8x1xf32> -> vector<8x1xf32>
    %47 = vector.broadcast %46 : vector<8x1xf32> to vector<8x8xf32>
    %48 = arith.mulf %43, %47 : vector<8x8xf32>
    %49 = arith.truncf %48 : vector<8x8xf32> to vector<8x8xbf16>
    %cst_19 = arith.constant dense<0.000000e+00> : vector<8x32xf32>
    %50 = tpu.matmul %49, %35, %cst_19 {dimension_numbers = #tpu.dot_dimension_numbers<[1], [0], [0], [1], [0, 0, 1, 1], [], []>} : vector<8x8xbf16>, vector<8x32xbf16>, vector<8x32xf32> -> vector<8x32xf32>
    %c0_20 = arith.constant 0 : index
    %c0_21 = arith.constant 0 : index
    %c32 = arith.constant 32 : index
    %51 = vector.load %arg5[%c0_20, %c0_21, %c32] : memref<1x8x128xf32, #tpu.memory_space<vmem>>, vector<1x8x32xf32>
    %52 = vector.shape_cast %51 : vector<1x8x32xf32> to vector<8x32xf32>
    %53 = vector.shape_cast %50 : vector<8x32xf32> to vector<1x8x32xf32>
    tpu.vector_store %arg5[%c0_20, %c0_21, %c32], %53 {strides = array<i32>} : memref<1x8x128xf32, #tpu.memory_space<vmem>>, vector<1x8x32xf32>,
    %54 = vector.extract_strided_slice %1 {offsets = [0, 64], sizes = [8, 32], strides = [1, 1]} : vector<8x128xf32> to vector<8x32xf32>
    %55 = arith.truncf %54 : vector<8x32xf32> to vector<8x32xbf16>
    %56 = vector.extract_strided_slice %3 {offsets = [0, 64], sizes = [8, 32], strides = [1, 1]} : vector<8x128xf32> to vector<8x32xf32>
    %57 = arith.truncf %56 : vector<8x32xf32> to vector<8x32xbf16>
    %58 = vector.extract_strided_slice %5 {offsets = [0, 64], sizes = [8, 32], strides = [1, 1]} : vector<8x128xf32> to vector<8x32xf32>
    %59 = arith.truncf %58 : vector<8x32xf32> to vector<8x32xbf16>
    %cst_22 = arith.constant dense<0.000000e+00> : vector<8x8xf32>
    %60 = tpu.matmul %55, %57, %cst_22 {dimension_numbers = #tpu.dot_dimension_numbers<[1], [1], [0], [0], [0, 0, 1, 0], [], []>} : vector<8x32xbf16>, vector<8x32xbf16>, vector<8x8xf32> -> vector<8x8xf32>
    %cst_23 = arith.constant 0.176776692 : f32
    %61 = vector.broadcast %cst_23 : f32 to vector<8x8xf32>
    %62 = arith.mulf %60, %61 : vector<8x8xf32>
    %cst_24 = arith.constant dense<0xFF800000> : vector<8xf32>
    %63 = vector.multi_reduction <maximumf>, %62, %cst_24 [1] : vector<8x8xf32> to vector<8xf32>
    %64 = vector.shape_cast %63 : vector<8xf32> to vector<8x1xf32>
    %65 = vector.broadcast %64 : vector<8x1xf32> to vector<8x8xf32>
    %66 = arith.subf %62, %65 : vector<8x8xf32>
    %67 = math.exp %66 : vector<8x8xf32>
    %cst_25 = arith.constant dense<0.000000e+00> : vector<8xf32>
    %68 = vector.multi_reduction <add>, %67, %cst_25 [1] : vector<8x8xf32> to vector<8xf32>
    %69 = vector.shape_cast %68 : vector<8xf32> to vector<8x1xf32>
    %70 = tpu.reciprocal %69 {approx = true} : vector<8x1xf32> -> vector<8x1xf32>
    %71 = vector.broadcast %70 : vector<8x1xf32> to vector<8x8xf32>
    %72 = arith.mulf %67, %71 : vector<8x8xf32>
    %73 = arith.truncf %72 : vector<8x8xf32> to vector<8x8xbf16>
    %cst_26 = arith.constant dense<0.000000e+00> : vector<8x32xf32>
    %74 = tpu.matmul %73, %59, %cst_26 {dimension_numbers = #tpu.dot_dimension_numbers<[1], [0], [0], [1], [0, 0, 1, 1], [], []>} : vector<8x8xbf16>, vector<8x32xbf16>, vector<8x32xf32> -> vector<8x32xf32>
    %c0_27 = arith.constant 0 : index
    %c0_28 = arith.constant 0 : index
    %c64 = arith.constant 64 : index
    %75 = vector.load %arg5[%c0_27, %c0_28, %c64] : memref<1x8x128xf32, #tpu.memory_space<vmem>>, vector<1x8x32xf32>
    %76 = vector.shape_cast %75 : vector<1x8x32xf32> to vector<8x32xf32>
    %77 = vector.shape_cast %74 : vector<8x32xf32> to vector<1x8x32xf32>
    tpu.vector_store %arg5[%c0_27, %c0_28, %c64], %77 {strides = array<i32>} : memref<1x8x128xf32, #tpu.memory_space<vmem>>, vector<1x8x32xf32>,
    %78 = vector.extract_strided_slice %1 {offsets = [0, 96], sizes = [8, 32], strides = [1, 1]} : vector<8x128xf32> to vector<8x32xf32>
    %79 = arith.truncf %78 : vector<8x32xf32> to vector<8x32xbf16>
    %80 = vector.extract_strided_slice %3 {offsets = [0, 96], sizes = [8, 32], strides = [1, 1]} : vector<8x128xf32> to vector<8x32xf32>
    %81 = arith.truncf %80 : vector<8x32xf32> to vector<8x32xbf16>
    %82 = vector.extract_strided_slice %5 {offsets = [0, 96], sizes = [8, 32], strides = [1, 1]} : vector<8x128xf32> to vector<8x32xf32>
    %83 = arith.truncf %82 : vector<8x32xf32> to vector<8x32xbf16>
    %cst_29 = arith.constant dense<0.000000e+00> : vector<8x8xf32>
    %84 = tpu.matmul %79, %81, %cst_29 {dimension_numbers = #tpu.dot_dimension_numbers<[1], [1], [0], [0], [0, 0, 1, 0], [], []>} : vector<8x32xbf16>, vector<8x32xbf16>, vector<8x8xf32> -> vector<8x8xf32>
    %cst_30 = arith.constant 0.176776692 : f32
    %85 = vector.broadcast %cst_30 : f32 to vector<8x8xf32>
    %86 = arith.mulf %84, %85 : vector<8x8xf32>
    %cst_31 = arith.constant dense<0xFF800000> : vector<8xf32>
    %87 = vector.multi_reduction <maximumf>, %86, %cst_31 [1] : vector<8x8xf32> to vector<8xf32>
    %88 = vector.shape_cast %87 : vector<8xf32> to vector<8x1xf32>
    %89 = vector.broadcast %88 : vector<8x1xf32> to vector<8x8xf32>
    %90 = arith.subf %86, %89 : vector<8x8xf32>
    %91 = math.exp %90 : vector<8x8xf32>
    %cst_32 = arith.constant dense<0.000000e+00> : vector<8xf32>
    %92 = vector.multi_reduction <add>, %91, %cst_32 [1] : vector<8x8xf32> to vector<8xf32>
    %93 = vector.shape_cast %92 : vector<8xf32> to vector<8x1xf32>
    %94 = tpu.reciprocal %93 {approx = true} : vector<8x1xf32> -> vector<8x1xf32>
    %95 = vector.broadcast %94 : vector<8x1xf32> to vector<8x8xf32>
    %96 = arith.mulf %91, %95 : vector<8x8xf32>
    %97 = arith.truncf %96 : vector<8x8xf32> to vector<8x8xbf16>
    %cst_33 = arith.constant dense<0.000000e+00> : vector<8x32xf32>
    %98 = tpu.matmul %97, %83, %cst_33 {dimension_numbers = #tpu.dot_dimension_numbers<[1], [0], [0], [1], [0, 0, 1, 1], [], []>} : vector<8x8xbf16>, vector<8x32xbf16>, vector<8x32xf32> -> vector<8x32xf32>
    %c0_34 = arith.constant 0 : index
    %c0_35 = arith.constant 0 : index
    %c96 = arith.constant 96 : index
    %99 = vector.load %arg5[%c0_34, %c0_35, %c96] : memref<1x8x128xf32, #tpu.memory_space<vmem>>, vector<1x8x32xf32>
    %100 = vector.shape_cast %99 : vector<1x8x32xf32> to vector<8x32xf32>
    %101 = vector.shape_cast %98 : vector<8x32xf32> to vector<1x8x32xf32>
    tpu.vector_store %arg5[%c0_34, %c0_35, %c96], %101 {strides = array<i32>} : memref<1x8x128xf32, #tpu.memory_space<vmem>>, vector<1x8x32xf32>,
    return
  }
  func.func @transform_0(%arg0: i32, %arg1: i32) -> (i32, i32, i32) {
    %c0_i32 = arith.constant 0 : i32
    %c0_i32_0 = arith.constant 0 : i32
    return %arg0, %arg1, %c0_i32 : i32, i32, i32
  }
  func.func @transform_1(%arg0: i32, %arg1: i32) -> (i32, i32, i32) {
    %c0_i32 = arith.constant 0 : i32
    %c1_i32 = arith.constant 1 : i32
    %c0_i32_0 = arith.constant 0 : i32
    return %arg0, %c0_i32, %c1_i32 : i32, i32, i32
  }
  func.func @transform_2(%arg0: i32, %arg1: i32) -> (i32, i32, i32) {
    %c0_i32 = arith.constant 0 : i32
    %c2_i32 = arith.constant 2 : i32
    %c0_i32_0 = arith.constant 0 : i32
    return %arg0, %c0_i32, %c2_i32 : i32, i32, i32
  }
  func.func @transform_3(%arg0: i32, %arg1: i32) -> (i32, i32, i32) {
    %c0_i32 = arith.constant 0 : i32
    %c0_i32_0 = arith.constant 0 : i32
    return %arg0, %arg1, %c0_i32 : i32, i32, i32
  }
}

module attributes {stable_mosaic.version = 11 : i64} {
  func.func @_linear_k1_kernel(%arg0: i32, %arg1: i32, %arg2: memref<8x128xf32, #tpu.memory_space<vmem>>, %arg3: memref<128x128xf32, #tpu.memory_space<vmem>>, %arg4: memref<1x128xf32, #tpu.memory_space<vmem>>, %arg5: memref<8x128xf32, #tpu.memory_space<vmem>>) attributes {dimension_semantics = [#tpu.dimension_semantics<parallel>, #tpu.dimension_semantics<parallel>], iteration_bounds = array<i64: 2, 1>, scalar_prefetch = 0 : i64, scratch_operands = 0 : i64, tpu.core_type = #tpu.core_type<tc>, window_params = [{transform_indices = @transform_0, window_bounds = array<i64: 8, 128>}, {transform_indices = @transform_1, window_bounds = array<i64: 128, 128>}, {transform_indices = @transform_2, window_bounds = array<i64: 1, 128>}, {transform_indices = @transform_3, window_bounds = array<i64: 8, 128>}]} {
    %c0 = arith.constant 0 : index
    %c0_0 = arith.constant 0 : index
    %0 = vector.load %arg2[%c0, %c0_0] : memref<8x128xf32, #tpu.memory_space<vmem>>, vector<8x128xf32>
    %1 = arith.truncf %0 : vector<8x128xf32> to vector<8x128xbf16>
    %c0_1 = arith.constant 0 : index
    %c0_2 = arith.constant 0 : index
    %2 = vector.load %arg3[%c0_1, %c0_2] : memref<128x128xf32, #tpu.memory_space<vmem>>, vector<128x128xf32>
    %3 = arith.truncf %2 : vector<128x128xf32> to vector<128x128xbf16>
    %cst = arith.constant dense<0.000000e+00> : vector<8x128xf32>
    %4 = tpu.matmul %1, %3, %cst {dimension_numbers = #tpu.dot_dimension_numbers<[1], [0], [0], [1], [0, 0, 1, 1], [], []>} : vector<8x128xbf16>, vector<128x128xbf16>, vector<8x128xf32> -> vector<8x128xf32>
    %c0_3 = arith.constant 0 : index
    %c0_4 = arith.constant 0 : index
    %5 = vector.load %arg4[%c0_3, %c0_4] : memref<1x128xf32, #tpu.memory_space<vmem>>, vector<1x128xf32>
    %6 = vector.broadcast %5 : vector<1x128xf32> to vector<8x128xf32>
    %7 = arith.addf %4, %6 : vector<8x128xf32>
    %c0_5 = arith.constant 0 : index
    %c0_6 = arith.constant 0 : index
    %8 = vector.load %arg5[%c0_5, %c0_6] : memref<8x128xf32, #tpu.memory_space<vmem>>, vector<8x128xf32>
    tpu.vector_store %arg5[%c0_5, %c0_6], %7 {strides = array<i32>} : memref<8x128xf32, #tpu.memory_space<vmem>>, vector<8x128xf32>,
    return
  }
  func.func @transform_0(%arg0: i32, %arg1: i32) -> (i32, i32) {
    %c0_i32 = arith.constant 0 : i32
    %c0_i32_0 = arith.constant 0 : i32
    return %arg0, %c0_i32 : i32, i32
  }
  func.func @transform_1(%arg0: i32, %arg1: i32) -> (i32, i32) {
    %c0_i32 = arith.constant 0 : i32
    %c0_i32_0 = arith.constant 0 : i32
    return %c0_i32, %arg1 : i32, i32
  }
  func.func @transform_2(%arg0: i32, %arg1: i32) -> (i32, i32) {
    %c0_i32 = arith.constant 0 : i32
    %c0_i32_0 = arith.constant 0 : i32
    return %c0_i32, %arg1 : i32, i32
  }
  func.func @transform_3(%arg0: i32, %arg1: i32) -> (i32, i32) {
    %c0_i32 = arith.constant 0 : i32
    return %arg0, %arg1 : i32, i32
  }
}

module attributes {stable_mosaic.version = 11 : i64} {
  func.func @_layernorm_kernel(%arg0: i32, %arg1: memref<8x128xf32, #tpu.memory_space<vmem>>, %arg2: memref<1x128xf32, #tpu.memory_space<vmem>>, %arg3: memref<1x128xf32, #tpu.memory_space<vmem>>, %arg4: memref<8x128xf32, #tpu.memory_space<vmem>>) attributes {dimension_semantics = [#tpu.dimension_semantics<parallel>], iteration_bounds = array<i64: 2>, scalar_prefetch = 0 : i64, scratch_operands = 0 : i64, tpu.core_type = #tpu.core_type<tc>, window_params = [{transform_indices = @transform_0, window_bounds = array<i64: 8, 128>}, {pipeline_mode = #tpu.pipeline_mode<synchronous>, transform_indices = @transform_1, window_bounds = array<i64: 1, 128>}, {pipeline_mode = #tpu.pipeline_mode<synchronous>, transform_indices = @transform_2, window_bounds = array<i64: 1, 128>}, {transform_indices = @transform_3, window_bounds = array<i64: 8, 128>}]} {
    %c0 = arith.constant 0 : index
    %c0_0 = arith.constant 0 : index
    %0 = vector.load %arg1[%c0, %c0_0] : memref<8x128xf32, #tpu.memory_space<vmem>>, vector<8x128xf32>
    %cst = arith.constant dense<0.000000e+00> : vector<8xf32>
    %1 = vector.multi_reduction <add>, %0, %cst [1] : vector<8x128xf32> to vector<8xf32>
    %2 = vector.shape_cast %1 : vector<8xf32> to vector<8x1xf32>
    %cst_1 = arith.constant 1.280000e+02 : f32
    %3 = vector.broadcast %cst_1 : f32 to vector<8x1xf32>
    %4 = arith.divf %2, %3 : vector<8x1xf32>
    %5 = vector.broadcast %4 : vector<8x1xf32> to vector<8x128xf32>
    %6 = arith.subf %0, %5 : vector<8x128xf32>
    %7 = arith.mulf %6, %6 : vector<8x128xf32>
    %cst_2 = arith.constant dense<0.000000e+00> : vector<8xf32>
    %8 = vector.multi_reduction <add>, %7, %cst_2 [1] : vector<8x128xf32> to vector<8xf32>
    %9 = vector.shape_cast %8 : vector<8xf32> to vector<8x1xf32>
    %cst_3 = arith.constant 1.280000e+02 : f32
    %10 = vector.broadcast %cst_3 : f32 to vector<8x1xf32>
    %11 = arith.divf %9, %10 : vector<8x1xf32>
    %12 = vector.broadcast %4 : vector<8x1xf32> to vector<8x128xf32>
    %13 = arith.subf %0, %12 : vector<8x128xf32>
    %cst_4 = arith.constant 9.99999974E-6 : f32
    %14 = vector.broadcast %cst_4 : f32 to vector<8x1xf32>
    %15 = arith.addf %11, %14 : vector<8x1xf32>
    %16 = math.rsqrt %15 : vector<8x1xf32>
    %17 = vector.broadcast %16 : vector<8x1xf32> to vector<8x128xf32>
    %18 = arith.mulf %13, %17 : vector<8x128xf32>
    %c0_5 = arith.constant 0 : index
    %c0_6 = arith.constant 0 : index
    %19 = vector.load %arg2[%c0_5, %c0_6] : memref<1x128xf32, #tpu.memory_space<vmem>>, vector<1x128xf32>
    %20 = vector.broadcast %19 : vector<1x128xf32> to vector<8x128xf32>
    %21 = arith.mulf %18, %20 : vector<8x128xf32>
    %c0_7 = arith.constant 0 : index
    %c0_8 = arith.constant 0 : index
    %22 = vector.load %arg3[%c0_7, %c0_8] : memref<1x128xf32, #tpu.memory_space<vmem>>, vector<1x128xf32>
    %23 = vector.broadcast %22 : vector<1x128xf32> to vector<8x128xf32>
    %24 = arith.addf %21, %23 : vector<8x128xf32>
    %c0_9 = arith.constant 0 : index
    %c0_10 = arith.constant 0 : index
    %25 = vector.load %arg4[%c0_9, %c0_10] : memref<8x128xf32, #tpu.memory_space<vmem>>, vector<8x128xf32>
    tpu.vector_store %arg4[%c0_9, %c0_10], %24 {strides = array<i32>} : memref<8x128xf32, #tpu.memory_space<vmem>>, vector<8x128xf32>,
    return
  }
  func.func @transform_0(%arg0: i32) -> (i32, i32) {
    %c0_i32 = arith.constant 0 : i32
    %c0_i32_0 = arith.constant 0 : i32
    return %arg0, %c0_i32 : i32, i32
  }
  func.func @transform_1(%arg0: i32) -> (i32, i32) {
    %c0_i32 = arith.constant 0 : i32
    %c0_i32_0 = arith.constant 0 : i32
    %c0_i32_1 = arith.constant 0 : i32
    return %c0_i32, %c0_i32_0 : i32, i32
  }
  func.func @transform_2(%arg0: i32) -> (i32, i32) {
    %c0_i32 = arith.constant 0 : i32
    %c0_i32_0 = arith.constant 0 : i32
    %c0_i32_1 = arith.constant 0 : i32
    return %c0_i32, %c0_i32_0 : i32, i32
  }
  func.func @transform_3(%arg0: i32) -> (i32, i32) {
    %c0_i32 = arith.constant 0 : i32
    %c0_i32_0 = arith.constant 0 : i32
    return %arg0, %c0_i32 : i32, i32
  }
}

module attributes {stable_mosaic.version = 11 : i64} {
  func.func @_linear_k1_kernel(%arg0: i32, %arg1: i32, %arg2: memref<8x128xf32, #tpu.memory_space<vmem>>, %arg3: memref<128x256xf32, #tpu.memory_space<vmem>>, %arg4: memref<1x256xf32, #tpu.memory_space<vmem>>, %arg5: memref<8x256xf32, #tpu.memory_space<vmem>>) attributes {dimension_semantics = [#tpu.dimension_semantics<parallel>, #tpu.dimension_semantics<parallel>], iteration_bounds = array<i64: 2, 1>, scalar_prefetch = 0 : i64, scratch_operands = 0 : i64, tpu.core_type = #tpu.core_type<tc>, window_params = [{transform_indices = @transform_0, window_bounds = array<i64: 8, 128>}, {transform_indices = @transform_1, window_bounds = array<i64: 128, 256>}, {transform_indices = @transform_2, window_bounds = array<i64: 1, 256>}, {transform_indices = @transform_3, window_bounds = array<i64: 8, 256>}]} {
    %c0 = arith.constant 0 : index
    %c0_0 = arith.constant 0 : index
    %0 = vector.load %arg2[%c0, %c0_0] : memref<8x128xf32, #tpu.memory_space<vmem>>, vector<8x128xf32>
    %1 = arith.truncf %0 : vector<8x128xf32> to vector<8x128xbf16>
    %c0_1 = arith.constant 0 : index
    %c0_2 = arith.constant 0 : index
    %2 = vector.load %arg3[%c0_1, %c0_2] : memref<128x256xf32, #tpu.memory_space<vmem>>, vector<128x256xf32>
    %3 = arith.truncf %2 : vector<128x256xf32> to vector<128x256xbf16>
    %cst = arith.constant dense<0.000000e+00> : vector<8x256xf32>
    %4 = tpu.matmul %1, %3, %cst {dimension_numbers = #tpu.dot_dimension_numbers<[1], [0], [0], [1], [0, 0, 1, 1], [], []>} : vector<8x128xbf16>, vector<128x256xbf16>, vector<8x256xf32> -> vector<8x256xf32>
    %c0_3 = arith.constant 0 : index
    %c0_4 = arith.constant 0 : index
    %5 = vector.load %arg4[%c0_3, %c0_4] : memref<1x256xf32, #tpu.memory_space<vmem>>, vector<1x256xf32>
    %6 = vector.broadcast %5 : vector<1x256xf32> to vector<8x256xf32>
    %7 = arith.addf %4, %6 : vector<8x256xf32>
    %c0_5 = arith.constant 0 : index
    %c0_6 = arith.constant 0 : index
    %8 = vector.load %arg5[%c0_5, %c0_6] : memref<8x256xf32, #tpu.memory_space<vmem>>, vector<8x256xf32>
    tpu.vector_store %arg5[%c0_5, %c0_6], %7 {strides = array<i32>} : memref<8x256xf32, #tpu.memory_space<vmem>>, vector<8x256xf32>,
    return
  }
  func.func @transform_0(%arg0: i32, %arg1: i32) -> (i32, i32) {
    %c0_i32 = arith.constant 0 : i32
    %c0_i32_0 = arith.constant 0 : i32
    return %arg0, %c0_i32 : i32, i32
  }
  func.func @transform_1(%arg0: i32, %arg1: i32) -> (i32, i32) {
    %c0_i32 = arith.constant 0 : i32
    %c0_i32_0 = arith.constant 0 : i32
    return %c0_i32, %arg1 : i32, i32
  }
  func.func @transform_2(%arg0: i32, %arg1: i32) -> (i32, i32) {
    %c0_i32 = arith.constant 0 : i32
    %c0_i32_0 = arith.constant 0 : i32
    return %c0_i32, %arg1 : i32, i32
  }
  func.func @transform_3(%arg0: i32, %arg1: i32) -> (i32, i32) {
    %c0_i32 = arith.constant 0 : i32
    return %arg0, %arg1 : i32, i32
  }
}

module attributes {stable_mosaic.version = 11 : i64} {
  func.func @_ffn_addnorm_kernel(%arg0: i32, %arg1: memref<8x128xf32, #tpu.memory_space<vmem>>, %arg2: memref<128x256xf32, #tpu.memory_space<vmem>>, %arg3: memref<1x256xf32, #tpu.memory_space<vmem>>, %arg4: memref<256x128xf32, #tpu.memory_space<vmem>>, %arg5: memref<1x128xf32, #tpu.memory_space<vmem>>, %arg6: memref<1x128xf32, #tpu.memory_space<vmem>>, %arg7: memref<1x128xf32, #tpu.memory_space<vmem>>, %arg8: memref<8x128xf32, #tpu.memory_space<vmem>>) attributes {dimension_semantics = [#tpu.dimension_semantics<parallel>], iteration_bounds = array<i64: 2>, scalar_prefetch = 0 : i64, scratch_operands = 0 : i64, tpu.core_type = #tpu.core_type<tc>, window_params = [{transform_indices = @transform_0, window_bounds = array<i64: 8, 128>}, {pipeline_mode = #tpu.pipeline_mode<synchronous>, transform_indices = @transform_1, window_bounds = array<i64: 128, 256>}, {pipeline_mode = #tpu.pipeline_mode<synchronous>, transform_indices = @transform_2, window_bounds = array<i64: 1, 256>}, {pipeline_mode = #tpu.pipeline_mode<synchronous>, transform_indices = @transform_3, window_bounds = array<i64: 256, 128>}, {pipeline_mode = #tpu.pipeline_mode<synchronous>, transform_indices = @transform_4, window_bounds = array<i64: 1, 128>}, {pipeline_mode = #tpu.pipeline_mode<synchronous>, transform_indices = @transform_5, window_bounds = array<i64: 1, 128>}, {pipeline_mode = #tpu.pipeline_mode<synchronous>, transform_indices = @transform_6, window_bounds = array<i64: 1, 128>}, {transform_indices = @transform_7, window_bounds = array<i64: 8, 128>}]} {
    %c0 = arith.constant 0 : index
    %c0_0 = arith.constant 0 : index
    %0 = vector.load %arg1[%c0, %c0_0] : memref<8x128xf32, #tpu.memory_space<vmem>>, vector<8x128xf32>
    %1 = arith.truncf %0 : vector<8x128xf32> to vector<8x128xbf16>
    %c0_1 = arith.constant 0 : index
    %c0_2 = arith.constant 0 : index
    %2 = vector.load %arg2[%c0_1, %c0_2] : memref<128x256xf32, #tpu.memory_space<vmem>>, vector<128x256xf32>
    %3 = arith.truncf %2 : vector<128x256xf32> to vector<128x256xbf16>
    %cst = arith.constant dense<0.000000e+00> : vector<8x256xf32>
    %4 = tpu.matmul %1, %3, %cst {dimension_numbers = #tpu.dot_dimension_numbers<[1], [0], [0], [1], [0, 0, 1, 1], [], []>} : vector<8x128xbf16>, vector<128x256xbf16>, vector<8x256xf32> -> vector<8x256xf32>
    %c0_3 = arith.constant 0 : index
    %c0_4 = arith.constant 0 : index
    %5 = vector.load %arg3[%c0_3, %c0_4] : memref<1x256xf32, #tpu.memory_space<vmem>>, vector<1x256xf32>
    %6 = vector.broadcast %5 : vector<1x256xf32> to vector<8x256xf32>
    %7 = arith.addf %4, %6 : vector<8x256xf32>
    %cst_5 = arith.constant 0.000000e+00 : f32
    %8 = vector.broadcast %cst_5 : f32 to vector<8x256xf32>
    %9 = arith.maximumf %7, %8 : vector<8x256xf32>
    %10 = arith.truncf %9 : vector<8x256xf32> to vector<8x256xbf16>
    %c0_6 = arith.constant 0 : index
    %c0_7 = arith.constant 0 : index
    %11 = vector.load %arg4[%c0_6, %c0_7] : memref<256x128xf32, #tpu.memory_space<vmem>>, vector<256x128xf32>
    %12 = arith.truncf %11 : vector<256x128xf32> to vector<256x128xbf16>
    %cst_8 = arith.constant dense<0.000000e+00> : vector<8x128xf32>
    %13 = tpu.matmul %10, %12, %cst_8 {dimension_numbers = #tpu.dot_dimension_numbers<[1], [0], [0], [1], [0, 0, 1, 1], [], []>} : vector<8x256xbf16>, vector<256x128xbf16>, vector<8x128xf32> -> vector<8x128xf32>
    %c0_9 = arith.constant 0 : index
    %c0_10 = arith.constant 0 : index
    %14 = vector.load %arg5[%c0_9, %c0_10] : memref<1x128xf32, #tpu.memory_space<vmem>>, vector<1x128xf32>
    %15 = vector.broadcast %14 : vector<1x128xf32> to vector<8x128xf32>
    %16 = arith.addf %13, %15 : vector<8x128xf32>
    %17 = arith.addf %0, %16 : vector<8x128xf32>
    %cst_11 = arith.constant dense<0.000000e+00> : vector<8xf32>
    %18 = vector.multi_reduction <add>, %17, %cst_11 [1] : vector<8x128xf32> to vector<8xf32>
    %19 = vector.shape_cast %18 : vector<8xf32> to vector<8x1xf32>
    %cst_12 = arith.constant 1.280000e+02 : f32
    %20 = vector.broadcast %cst_12 : f32 to vector<8x1xf32>
    %21 = arith.divf %19, %20 : vector<8x1xf32>
    %22 = vector.broadcast %21 : vector<8x1xf32> to vector<8x128xf32>
    %23 = arith.subf %17, %22 : vector<8x128xf32>
    %24 = arith.mulf %23, %23 : vector<8x128xf32>
    %cst_13 = arith.constant dense<0.000000e+00> : vector<8xf32>
    %25 = vector.multi_reduction <add>, %24, %cst_13 [1] : vector<8x128xf32> to vector<8xf32>
    %26 = vector.shape_cast %25 : vector<8xf32> to vector<8x1xf32>
    %cst_14 = arith.constant 1.280000e+02 : f32
    %27 = vector.broadcast %cst_14 : f32 to vector<8x1xf32>
    %28 = arith.divf %26, %27 : vector<8x1xf32>
    %29 = vector.broadcast %21 : vector<8x1xf32> to vector<8x128xf32>
    %30 = arith.subf %17, %29 : vector<8x128xf32>
    %cst_15 = arith.constant 9.99999974E-6 : f32
    %31 = vector.broadcast %cst_15 : f32 to vector<8x1xf32>
    %32 = arith.addf %28, %31 : vector<8x1xf32>
    %33 = math.rsqrt %32 : vector<8x1xf32>
    %34 = vector.broadcast %33 : vector<8x1xf32> to vector<8x128xf32>
    %35 = arith.mulf %30, %34 : vector<8x128xf32>
    %c0_16 = arith.constant 0 : index
    %c0_17 = arith.constant 0 : index
    %36 = vector.load %arg6[%c0_16, %c0_17] : memref<1x128xf32, #tpu.memory_space<vmem>>, vector<1x128xf32>
    %37 = vector.broadcast %36 : vector<1x128xf32> to vector<8x128xf32>
    %38 = arith.mulf %35, %37 : vector<8x128xf32>
    %c0_18 = arith.constant 0 : index
    %c0_19 = arith.constant 0 : index
    %39 = vector.load %arg7[%c0_18, %c0_19] : memref<1x128xf32, #tpu.memory_space<vmem>>, vector<1x128xf32>
    %40 = vector.broadcast %39 : vector<1x128xf32> to vector<8x128xf32>
    %41 = arith.addf %38, %40 : vector<8x128xf32>
    %c0_20 = arith.constant 0 : index
    %c0_21 = arith.constant 0 : index
    %42 = vector.load %arg8[%c0_20, %c0_21] : memref<8x128xf32, #tpu.memory_space<vmem>>, vector<8x128xf32>
    tpu.vector_store %arg8[%c0_20, %c0_21], %41 {strides = array<i32>} : memref<8x128xf32, #tpu.memory_space<vmem>>, vector<8x128xf32>,
    return
  }
  func.func @transform_0(%arg0: i32) -> (i32, i32) {
    %c0_i32 = arith.constant 0 : i32
    %c0_i32_0 = arith.constant 0 : i32
    return %arg0, %c0_i32 : i32, i32
  }
  func.func @transform_1(%arg0: i32) -> (i32, i32) {
    %c0_i32 = arith.constant 0 : i32
    %c0_i32_0 = arith.constant 0 : i32
    %c0_i32_1 = arith.constant 0 : i32
    return %c0_i32, %c0_i32_0 : i32, i32
  }
  func.func @transform_2(%arg0: i32) -> (i32, i32) {
    %c0_i32 = arith.constant 0 : i32
    %c0_i32_0 = arith.constant 0 : i32
    %c0_i32_1 = arith.constant 0 : i32
    return %c0_i32, %c0_i32_0 : i32, i32
  }
  func.func @transform_3(%arg0: i32) -> (i32, i32) {
    %c0_i32 = arith.constant 0 : i32
    %c0_i32_0 = arith.constant 0 : i32
    %c0_i32_1 = arith.constant 0 : i32
    return %c0_i32, %c0_i32_0 : i32, i32
  }
  func.func @transform_4(%arg0: i32) -> (i32, i32) {
    %c0_i32 = arith.constant 0 : i32
    %c0_i32_0 = arith.constant 0 : i32
    %c0_i32_1 = arith.constant 0 : i32
    return %c0_i32, %c0_i32_0 : i32, i32
  }
  func.func @transform_5(%arg0: i32) -> (i32, i32) {
    %c0_i32 = arith.constant 0 : i32
    %c0_i32_0 = arith.constant 0 : i32
    %c0_i32_1 = arith.constant 0 : i32
    return %c0_i32, %c0_i32_0 : i32, i32
  }
  func.func @transform_6(%arg0: i32) -> (i32, i32) {
    %c0_i32 = arith.constant 0 : i32
    %c0_i32_0 = arith.constant 0 : i32
    %c0_i32_1 = arith.constant 0 : i32
    return %c0_i32, %c0_i32_0 : i32, i32
  }
  func.func @transform_7(%arg0: i32) -> (i32, i32) {
    %c0_i32 = arith.constant 0 : i32
    %c0_i32_0 = arith.constant 0 : i32
    return %arg0, %c0_i32 : i32, i32
  }
}

module attributes {stable_mosaic.version = 11 : i64} {
  func.func @_attn_kernel(%arg0: i32, %arg1: i32, %arg2: memref<1x8x128xf32, #tpu.memory_space<vmem>>, %arg3: memref<1x8x128xf32, #tpu.memory_space<vmem>>, %arg4: memref<1x8x128xf32, #tpu.memory_space<vmem>>, %arg5: memref<1x8x128xf32, #tpu.memory_space<vmem>>) attributes {dimension_semantics = [#tpu.dimension_semantics<parallel>, #tpu.dimension_semantics<parallel>], iteration_bounds = array<i64: 2, 1>, scalar_prefetch = 0 : i64, scratch_operands = 0 : i64, tpu.core_type = #tpu.core_type<tc>, window_params = [{transform_indices = @transform_0, window_bounds = array<i64: 1, 8, 128>}, {transform_indices = @transform_1, window_bounds = array<i64: 1, 8, 128>}, {transform_indices = @transform_2, window_bounds = array<i64: 1, 8, 128>}, {transform_indices = @transform_3, window_bounds = array<i64: 1, 8, 128>}]} {
    %c0 = arith.constant 0 : index
    %c0_0 = arith.constant 0 : index
    %c0_1 = arith.constant 0 : index
    %0 = vector.load %arg2[%c0, %c0_0, %c0_1] : memref<1x8x128xf32, #tpu.memory_space<vmem>>, vector<1x8x128xf32>
    %1 = vector.shape_cast %0 : vector<1x8x128xf32> to vector<8x128xf32>
    %c0_2 = arith.constant 0 : index
    %c0_3 = arith.constant 0 : index
    %c0_4 = arith.constant 0 : index
    %2 = vector.load %arg3[%c0_2, %c0_3, %c0_4] : memref<1x8x128xf32, #tpu.memory_space<vmem>>, vector<1x8x128xf32>
    %3 = vector.shape_cast %2 : vector<1x8x128xf32> to vector<8x128xf32>
    %c0_5 = arith.constant 0 : index
    %c0_6 = arith.constant 0 : index
    %c0_7 = arith.constant 0 : index
    %4 = vector.load %arg4[%c0_5, %c0_6, %c0_7] : memref<1x8x128xf32, #tpu.memory_space<vmem>>, vector<1x8x128xf32>
    %5 = vector.shape_cast %4 : vector<1x8x128xf32> to vector<8x128xf32>
    %6 = vector.extract_strided_slice %1 {offsets = [0, 0], sizes = [8, 32], strides = [1, 1]} : vector<8x128xf32> to vector<8x32xf32>
    %7 = arith.truncf %6 : vector<8x32xf32> to vector<8x32xbf16>
    %8 = vector.extract_strided_slice %3 {offsets = [0, 0], sizes = [8, 32], strides = [1, 1]} : vector<8x128xf32> to vector<8x32xf32>
    %9 = arith.truncf %8 : vector<8x32xf32> to vector<8x32xbf16>
    %10 = vector.extract_strided_slice %5 {offsets = [0, 0], sizes = [8, 32], strides = [1, 1]} : vector<8x128xf32> to vector<8x32xf32>
    %11 = arith.truncf %10 : vector<8x32xf32> to vector<8x32xbf16>
    %cst = arith.constant dense<0.000000e+00> : vector<8x8xf32>
    %12 = tpu.matmul %7, %9, %cst {dimension_numbers = #tpu.dot_dimension_numbers<[1], [1], [0], [0], [0, 0, 1, 0], [], []>} : vector<8x32xbf16>, vector<8x32xbf16>, vector<8x8xf32> -> vector<8x8xf32>
    %cst_8 = arith.constant 0.176776692 : f32
    %13 = vector.broadcast %cst_8 : f32 to vector<8x8xf32>
    %14 = arith.mulf %12, %13 : vector<8x8xf32>
    %cst_9 = arith.constant dense<0xFF800000> : vector<8xf32>
    %15 = vector.multi_reduction <maximumf>, %14, %cst_9 [1] : vector<8x8xf32> to vector<8xf32>
    %16 = vector.shape_cast %15 : vector<8xf32> to vector<8x1xf32>
    %17 = vector.broadcast %16 : vector<8x1xf32> to vector<8x8xf32>
    %18 = arith.subf %14, %17 : vector<8x8xf32>
    %19 = math.exp %18 : vector<8x8xf32>
    %cst_10 = arith.constant dense<0.000000e+00> : vector<8xf32>
    %20 = vector.multi_reduction <add>, %19, %cst_10 [1] : vector<8x8xf32> to vector<8xf32>
    %21 = vector.shape_cast %20 : vector<8xf32> to vector<8x1xf32>
    %22 = tpu.reciprocal %21 {approx = true} : vector<8x1xf32> -> vector<8x1xf32>
    %23 = vector.broadcast %22 : vector<8x1xf32> to vector<8x8xf32>
    %24 = arith.mulf %19, %23 : vector<8x8xf32>
    %25 = arith.truncf %24 : vector<8x8xf32> to vector<8x8xbf16>
    %cst_11 = arith.constant dense<0.000000e+00> : vector<8x32xf32>
    %26 = tpu.matmul %25, %11, %cst_11 {dimension_numbers = #tpu.dot_dimension_numbers<[1], [0], [0], [1], [0, 0, 1, 1], [], []>} : vector<8x8xbf16>, vector<8x32xbf16>, vector<8x32xf32> -> vector<8x32xf32>
    %c0_12 = arith.constant 0 : index
    %c0_13 = arith.constant 0 : index
    %c0_14 = arith.constant 0 : index
    %27 = vector.load %arg5[%c0_12, %c0_13, %c0_14] : memref<1x8x128xf32, #tpu.memory_space<vmem>>, vector<1x8x32xf32>
    %28 = vector.shape_cast %27 : vector<1x8x32xf32> to vector<8x32xf32>
    %29 = vector.shape_cast %26 : vector<8x32xf32> to vector<1x8x32xf32>
    tpu.vector_store %arg5[%c0_12, %c0_13, %c0_14], %29 {strides = array<i32>} : memref<1x8x128xf32, #tpu.memory_space<vmem>>, vector<1x8x32xf32>,
    %30 = vector.extract_strided_slice %1 {offsets = [0, 32], sizes = [8, 32], strides = [1, 1]} : vector<8x128xf32> to vector<8x32xf32>
    %31 = arith.truncf %30 : vector<8x32xf32> to vector<8x32xbf16>
    %32 = vector.extract_strided_slice %3 {offsets = [0, 32], sizes = [8, 32], strides = [1, 1]} : vector<8x128xf32> to vector<8x32xf32>
    %33 = arith.truncf %32 : vector<8x32xf32> to vector<8x32xbf16>
    %34 = vector.extract_strided_slice %5 {offsets = [0, 32], sizes = [8, 32], strides = [1, 1]} : vector<8x128xf32> to vector<8x32xf32>
    %35 = arith.truncf %34 : vector<8x32xf32> to vector<8x32xbf16>
    %cst_15 = arith.constant dense<0.000000e+00> : vector<8x8xf32>
    %36 = tpu.matmul %31, %33, %cst_15 {dimension_numbers = #tpu.dot_dimension_numbers<[1], [1], [0], [0], [0, 0, 1, 0], [], []>} : vector<8x32xbf16>, vector<8x32xbf16>, vector<8x8xf32> -> vector<8x8xf32>
    %cst_16 = arith.constant 0.176776692 : f32
    %37 = vector.broadcast %cst_16 : f32 to vector<8x8xf32>
    %38 = arith.mulf %36, %37 : vector<8x8xf32>
    %cst_17 = arith.constant dense<0xFF800000> : vector<8xf32>
    %39 = vector.multi_reduction <maximumf>, %38, %cst_17 [1] : vector<8x8xf32> to vector<8xf32>
    %40 = vector.shape_cast %39 : vector<8xf32> to vector<8x1xf32>
    %41 = vector.broadcast %40 : vector<8x1xf32> to vector<8x8xf32>
    %42 = arith.subf %38, %41 : vector<8x8xf32>
    %43 = math.exp %42 : vector<8x8xf32>
    %cst_18 = arith.constant dense<0.000000e+00> : vector<8xf32>
    %44 = vector.multi_reduction <add>, %43, %cst_18 [1] : vector<8x8xf32> to vector<8xf32>
    %45 = vector.shape_cast %44 : vector<8xf32> to vector<8x1xf32>
    %46 = tpu.reciprocal %45 {approx = true} : vector<8x1xf32> -> vector<8x1xf32>
    %47 = vector.broadcast %46 : vector<8x1xf32> to vector<8x8xf32>
    %48 = arith.mulf %43, %47 : vector<8x8xf32>
    %49 = arith.truncf %48 : vector<8x8xf32> to vector<8x8xbf16>
    %cst_19 = arith.constant dense<0.000000e+00> : vector<8x32xf32>
    %50 = tpu.matmul %49, %35, %cst_19 {dimension_numbers = #tpu.dot_dimension_numbers<[1], [0], [0], [1], [0, 0, 1, 1], [], []>} : vector<8x8xbf16>, vector<8x32xbf16>, vector<8x32xf32> -> vector<8x32xf32>
    %c0_20 = arith.constant 0 : index
    %c0_21 = arith.constant 0 : index
    %c32 = arith.constant 32 : index
    %51 = vector.load %arg5[%c0_20, %c0_21, %c32] : memref<1x8x128xf32, #tpu.memory_space<vmem>>, vector<1x8x32xf32>
    %52 = vector.shape_cast %51 : vector<1x8x32xf32> to vector<8x32xf32>
    %53 = vector.shape_cast %50 : vector<8x32xf32> to vector<1x8x32xf32>
    tpu.vector_store %arg5[%c0_20, %c0_21, %c32], %53 {strides = array<i32>} : memref<1x8x128xf32, #tpu.memory_space<vmem>>, vector<1x8x32xf32>,
    %54 = vector.extract_strided_slice %1 {offsets = [0, 64], sizes = [8, 32], strides = [1, 1]} : vector<8x128xf32> to vector<8x32xf32>
    %55 = arith.truncf %54 : vector<8x32xf32> to vector<8x32xbf16>
    %56 = vector.extract_strided_slice %3 {offsets = [0, 64], sizes = [8, 32], strides = [1, 1]} : vector<8x128xf32> to vector<8x32xf32>
    %57 = arith.truncf %56 : vector<8x32xf32> to vector<8x32xbf16>
    %58 = vector.extract_strided_slice %5 {offsets = [0, 64], sizes = [8, 32], strides = [1, 1]} : vector<8x128xf32> to vector<8x32xf32>
    %59 = arith.truncf %58 : vector<8x32xf32> to vector<8x32xbf16>
    %cst_22 = arith.constant dense<0.000000e+00> : vector<8x8xf32>
    %60 = tpu.matmul %55, %57, %cst_22 {dimension_numbers = #tpu.dot_dimension_numbers<[1], [1], [0], [0], [0, 0, 1, 0], [], []>} : vector<8x32xbf16>, vector<8x32xbf16>, vector<8x8xf32> -> vector<8x8xf32>
    %cst_23 = arith.constant 0.176776692 : f32
    %61 = vector.broadcast %cst_23 : f32 to vector<8x8xf32>
    %62 = arith.mulf %60, %61 : vector<8x8xf32>
    %cst_24 = arith.constant dense<0xFF800000> : vector<8xf32>
    %63 = vector.multi_reduction <maximumf>, %62, %cst_24 [1] : vector<8x8xf32> to vector<8xf32>
    %64 = vector.shape_cast %63 : vector<8xf32> to vector<8x1xf32>
    %65 = vector.broadcast %64 : vector<8x1xf32> to vector<8x8xf32>
    %66 = arith.subf %62, %65 : vector<8x8xf32>
    %67 = math.exp %66 : vector<8x8xf32>
    %cst_25 = arith.constant dense<0.000000e+00> : vector<8xf32>
    %68 = vector.multi_reduction <add>, %67, %cst_25 [1] : vector<8x8xf32> to vector<8xf32>
    %69 = vector.shape_cast %68 : vector<8xf32> to vector<8x1xf32>
    %70 = tpu.reciprocal %69 {approx = true} : vector<8x1xf32> -> vector<8x1xf32>
    %71 = vector.broadcast %70 : vector<8x1xf32> to vector<8x8xf32>
    %72 = arith.mulf %67, %71 : vector<8x8xf32>
    %73 = arith.truncf %72 : vector<8x8xf32> to vector<8x8xbf16>
    %cst_26 = arith.constant dense<0.000000e+00> : vector<8x32xf32>
    %74 = tpu.matmul %73, %59, %cst_26 {dimension_numbers = #tpu.dot_dimension_numbers<[1], [0], [0], [1], [0, 0, 1, 1], [], []>} : vector<8x8xbf16>, vector<8x32xbf16>, vector<8x32xf32> -> vector<8x32xf32>
    %c0_27 = arith.constant 0 : index
    %c0_28 = arith.constant 0 : index
    %c64 = arith.constant 64 : index
    %75 = vector.load %arg5[%c0_27, %c0_28, %c64] : memref<1x8x128xf32, #tpu.memory_space<vmem>>, vector<1x8x32xf32>
    %76 = vector.shape_cast %75 : vector<1x8x32xf32> to vector<8x32xf32>
    %77 = vector.shape_cast %74 : vector<8x32xf32> to vector<1x8x32xf32>
    tpu.vector_store %arg5[%c0_27, %c0_28, %c64], %77 {strides = array<i32>} : memref<1x8x128xf32, #tpu.memory_space<vmem>>, vector<1x8x32xf32>,
    %78 = vector.extract_strided_slice %1 {offsets = [0, 96], sizes = [8, 32], strides = [1, 1]} : vector<8x128xf32> to vector<8x32xf32>
    %79 = arith.truncf %78 : vector<8x32xf32> to vector<8x32xbf16>
    %80 = vector.extract_strided_slice %3 {offsets = [0, 96], sizes = [8, 32], strides = [1, 1]} : vector<8x128xf32> to vector<8x32xf32>
    %81 = arith.truncf %80 : vector<8x32xf32> to vector<8x32xbf16>
    %82 = vector.extract_strided_slice %5 {offsets = [0, 96], sizes = [8, 32], strides = [1, 1]} : vector<8x128xf32> to vector<8x32xf32>
    %83 = arith.truncf %82 : vector<8x32xf32> to vector<8x32xbf16>
    %cst_29 = arith.constant dense<0.000000e+00> : vector<8x8xf32>
    %84 = tpu.matmul %79, %81, %cst_29 {dimension_numbers = #tpu.dot_dimension_numbers<[1], [1], [0], [0], [0, 0, 1, 0], [], []>} : vector<8x32xbf16>, vector<8x32xbf16>, vector<8x8xf32> -> vector<8x8xf32>
    %cst_30 = arith.constant 0.176776692 : f32
    %85 = vector.broadcast %cst_30 : f32 to vector<8x8xf32>
    %86 = arith.mulf %84, %85 : vector<8x8xf32>
    %cst_31 = arith.constant dense<0xFF800000> : vector<8xf32>
    %87 = vector.multi_reduction <maximumf>, %86, %cst_31 [1] : vector<8x8xf32> to vector<8xf32>
    %88 = vector.shape_cast %87 : vector<8xf32> to vector<8x1xf32>
    %89 = vector.broadcast %88 : vector<8x1xf32> to vector<8x8xf32>
    %90 = arith.subf %86, %89 : vector<8x8xf32>
    %91 = math.exp %90 : vector<8x8xf32>
    %cst_32 = arith.constant dense<0.000000e+00> : vector<8xf32>
    %92 = vector.multi_reduction <add>, %91, %cst_32 [1] : vector<8x8xf32> to vector<8xf32>
    %93 = vector.shape_cast %92 : vector<8xf32> to vector<8x1xf32>
    %94 = tpu.reciprocal %93 {approx = true} : vector<8x1xf32> -> vector<8x1xf32>
    %95 = vector.broadcast %94 : vector<8x1xf32> to vector<8x8xf32>
    %96 = arith.mulf %91, %95 : vector<8x8xf32>
    %97 = arith.truncf %96 : vector<8x8xf32> to vector<8x8xbf16>
    %cst_33 = arith.constant dense<0.000000e+00> : vector<8x32xf32>
    %98 = tpu.matmul %97, %83, %cst_33 {dimension_numbers = #tpu.dot_dimension_numbers<[1], [0], [0], [1], [0, 0, 1, 1], [], []>} : vector<8x8xbf16>, vector<8x32xbf16>, vector<8x32xf32> -> vector<8x32xf32>
    %c0_34 = arith.constant 0 : index
    %c0_35 = arith.constant 0 : index
    %c96 = arith.constant 96 : index
    %99 = vector.load %arg5[%c0_34, %c0_35, %c96] : memref<1x8x128xf32, #tpu.memory_space<vmem>>, vector<1x8x32xf32>
    %100 = vector.shape_cast %99 : vector<1x8x32xf32> to vector<8x32xf32>
    %101 = vector.shape_cast %98 : vector<8x32xf32> to vector<1x8x32xf32>
    tpu.vector_store %arg5[%c0_34, %c0_35, %c96], %101 {strides = array<i32>} : memref<1x8x128xf32, #tpu.memory_space<vmem>>, vector<1x8x32xf32>,
    return
  }
  func.func @transform_0(%arg0: i32, %arg1: i32) -> (i32, i32, i32) {
    %c0_i32 = arith.constant 0 : i32
    %c0_i32_0 = arith.constant 0 : i32
    return %arg0, %arg1, %c0_i32 : i32, i32, i32
  }
  func.func @transform_1(%arg0: i32, %arg1: i32) -> (i32, i32, i32) {
    %c0_i32 = arith.constant 0 : i32
    %c0_i32_0 = arith.constant 0 : i32
    %c0_i32_1 = arith.constant 0 : i32
    return %arg0, %c0_i32, %c0_i32_0 : i32, i32, i32
  }
  func.func @transform_2(%arg0: i32, %arg1: i32) -> (i32, i32, i32) {
    %c0_i32 = arith.constant 0 : i32
    %c1_i32 = arith.constant 1 : i32
    %c0_i32_0 = arith.constant 0 : i32
    return %arg0, %c0_i32, %c1_i32 : i32, i32, i32
  }
  func.func @transform_3(%arg0: i32, %arg1: i32) -> (i32, i32, i32) {
    %c0_i32 = arith.constant 0 : i32
    %c0_i32_0 = arith.constant 0 : i32
    return %arg0, %arg1, %c0_i32 : i32, i32, i32
  }
}

module attributes {stable_mosaic.version = 11 : i64} {
  func.func @_layernorm_kernel(%arg0: i32, %arg1: memref<8x128xf32, #tpu.memory_space<vmem>>, %arg2: memref<1x128xf32, #tpu.memory_space<vmem>>, %arg3: memref<1x128xf32, #tpu.memory_space<vmem>>, %arg4: memref<8x128xf32, #tpu.memory_space<vmem>>) attributes {dimension_semantics = [#tpu.dimension_semantics<parallel>], iteration_bounds = array<i64: 2>, scalar_prefetch = 0 : i64, scratch_operands = 0 : i64, tpu.core_type = #tpu.core_type<tc>, window_params = [{transform_indices = @transform_0, window_bounds = array<i64: 8, 128>}, {pipeline_mode = #tpu.pipeline_mode<synchronous>, transform_indices = @transform_1, window_bounds = array<i64: 1, 128>}, {pipeline_mode = #tpu.pipeline_mode<synchronous>, transform_indices = @transform_2, window_bounds = array<i64: 1, 128>}, {transform_indices = @transform_3, window_bounds = array<i64: 8, 128>}]} {
    %c0 = arith.constant 0 : index
    %c0_0 = arith.constant 0 : index
    %0 = vector.load %arg1[%c0, %c0_0] : memref<8x128xf32, #tpu.memory_space<vmem>>, vector<8x128xf32>
    %cst = arith.constant dense<0.000000e+00> : vector<8xf32>
    %1 = vector.multi_reduction <add>, %0, %cst [1] : vector<8x128xf32> to vector<8xf32>
    %2 = vector.shape_cast %1 : vector<8xf32> to vector<8x1xf32>
    %cst_1 = arith.constant 1.280000e+02 : f32
    %3 = vector.broadcast %cst_1 : f32 to vector<8x1xf32>
    %4 = arith.divf %2, %3 : vector<8x1xf32>
    %5 = vector.broadcast %4 : vector<8x1xf32> to vector<8x128xf32>
    %6 = arith.subf %0, %5 : vector<8x128xf32>
    %7 = arith.mulf %6, %6 : vector<8x128xf32>
    %cst_2 = arith.constant dense<0.000000e+00> : vector<8xf32>
    %8 = vector.multi_reduction <add>, %7, %cst_2 [1] : vector<8x128xf32> to vector<8xf32>
    %9 = vector.shape_cast %8 : vector<8xf32> to vector<8x1xf32>
    %cst_3 = arith.constant 1.280000e+02 : f32
    %10 = vector.broadcast %cst_3 : f32 to vector<8x1xf32>
    %11 = arith.divf %9, %10 : vector<8x1xf32>
    %12 = vector.broadcast %4 : vector<8x1xf32> to vector<8x128xf32>
    %13 = arith.subf %0, %12 : vector<8x128xf32>
    %cst_4 = arith.constant 9.99999974E-6 : f32
    %14 = vector.broadcast %cst_4 : f32 to vector<8x1xf32>
    %15 = arith.addf %11, %14 : vector<8x1xf32>
    %16 = math.rsqrt %15 : vector<8x1xf32>
    %17 = vector.broadcast %16 : vector<8x1xf32> to vector<8x128xf32>
    %18 = arith.mulf %13, %17 : vector<8x128xf32>
    %c0_5 = arith.constant 0 : index
    %c0_6 = arith.constant 0 : index
    %19 = vector.load %arg2[%c0_5, %c0_6] : memref<1x128xf32, #tpu.memory_space<vmem>>, vector<1x128xf32>
    %20 = vector.broadcast %19 : vector<1x128xf32> to vector<8x128xf32>
    %21 = arith.mulf %18, %20 : vector<8x128xf32>
    %c0_7 = arith.constant 0 : index
    %c0_8 = arith.constant 0 : index
    %22 = vector.load %arg3[%c0_7, %c0_8] : memref<1x128xf32, #tpu.memory_space<vmem>>, vector<1x128xf32>
    %23 = vector.broadcast %22 : vector<1x128xf32> to vector<8x128xf32>
    %24 = arith.addf %21, %23 : vector<8x128xf32>
    %c0_9 = arith.constant 0 : index
    %c0_10 = arith.constant 0 : index
    %25 = vector.load %arg4[%c0_9, %c0_10] : memref<8x128xf32, #tpu.memory_space<vmem>>, vector<8x128xf32>
    tpu.vector_store %arg4[%c0_9, %c0_10], %24 {strides = array<i32>} : memref<8x128xf32, #tpu.memory_space<vmem>>, vector<8x128xf32>,
    return
  }
  func.func @transform_0(%arg0: i32) -> (i32, i32) {
    %c0_i32 = arith.constant 0 : i32
    %c0_i32_0 = arith.constant 0 : i32
    return %arg0, %c0_i32 : i32, i32
  }
  func.func @transform_1(%arg0: i32) -> (i32, i32) {
    %c0_i32 = arith.constant 0 : i32
    %c0_i32_0 = arith.constant 0 : i32
    %c0_i32_1 = arith.constant 0 : i32
    return %c0_i32, %c0_i32_0 : i32, i32
  }
  func.func @transform_2(%arg0: i32) -> (i32, i32) {
    %c0_i32 = arith.constant 0 : i32
    %c0_i32_0 = arith.constant 0 : i32
    %c0_i32_1 = arith.constant 0 : i32
    return %c0_i32, %c0_i32_0 : i32, i32
  }
  func.func @transform_3(%arg0: i32) -> (i32, i32) {
    %c0_i32 = arith.constant 0 : i32
    %c0_i32_0 = arith.constant 0 : i32
    return %arg0, %c0_i32 : i32, i32
  }
}

</mosaic_0001>

<bundles_post_ra>
// kernel: transformer_forward.39
= control target key start
LH: loop header
LB: loop body
LE: loop exit
PB: predicated region body
PF: predicated region fallthrough
CT: control target
= control target key end

     0   :  { %8 = vsyncpa [#allocation3], 0  ;;  %s1027_s0 = inlined_call_operand.hbm [shape: f32[16,128], index: 0, kind: input, shape index: {}]   ;;  %s1028_s1 = inlined_call_operand.hbm [shape: f32[128,128], index: 1, kind: input, shape index: {}]   ;;  %s1029_s2 = inlined_call_operand.hbm [shape: f32[1,128], index: 2, kind: input, shape index: {}]   ;;  %s1030_s3 = inlined_call_operand.hbm [shape: f32[16,128], index: 3, kind: output, shape index: {}]  }
   0x1   :  { %10 = vsyncpa [#allocation3 + $0x1], 0 }
   0x2   :  { %11 = vsyncpa [#allocation6], 0 }
   0x3   :  { %12 = vsyncpa [#allocation4], 0 }
   0x4   :  { %14 = vsyncpa [#allocation4 + $0x1], 0  ;;  %s769_s12 = smov 0   ;;  %s771_s13 = smov 0  }
   0x5   :  { %s773_s14 = smov 0   ;;  %s775_s15 = smov 0  }
   0x6   :  { %s777_s16 = smov 0   ;;  %s779_s17 = smov 0  }
   0x7 LB: > { %s433_s18 = sadd.s32 4294967295, %s739_s17   ;;  %s434_s19 = sadd.s32 4294967294, %s739_s17   ;;  %s739_s17 = sphi %s779_s17, %s20_s17   ;;  %s735_s16 = sphi %s777_s16, %s1052_s16   ;;  %s731_s15 = sphi %s775_s15, %s1051_s15   ;;  %s727_s14 = sphi %s773_s14, %s1050_s14   ;;  %s723_s13 = sphi %s771_s13, %s1049_s13   ;;  %s719_s12 = sphi %s769_s12, %s1048_s12  }
   0x8   : > { %p52_p0 = scmp.ne.s32.totalorder %s723_s13, %s719_s12  ;;  %p803_p1 = scmp.eq.s32.totalorder %s433_s18, 0 }
   0x9   : > { %p807_p2 = scmp.eq.s32.totalorder %s433_s18, 1  ;;  %p136_p3 = scmp.eq.s32.totalorder %s434_s19, 1 }
   0xa   : > { %s1035_s20 = scalar_select %p803_p1, 1, 0 }
   0xb   : > { %p813_p4 = por %p803_p1, %p52_p0  ;;  %p435_p5 = scmp.ge.s32.totalorder %s739_s17, 1 }
   0xc   : > { %p818_p6 = por %p136_p3, %p52_p0  ;;  %p143_p7 = scmp.lt.s32.totalorder %s739_s17, 3 }
   0xd   : > { %s1037_s22 = scalar_select %p813_p4, 1, 0 }
   0xe   : > { %s1038_s23 = scalar_select %p818_p6, 1, 0 }
   0xf   : > { %p823_p8 = pnand %p435_p5, %p143_p7  ;;  %s741_s25 = smov [#allocation5]  }
  0x10   : > { %s157_s26 = sshll.u32 %s741_s25, 4  ;;  %s742_s28 = smov [#allocation7]   ;;  %s827_s26 = int_to_ptr.vmem [resolvable:$true] %s157_s26 }
  0x11   : > { %p492_p9 = pneg %p823_p8  ;;  %s173_s29 = sshll.u32 %s742_s28, 4  ;;  %s838_s29 = int_to_ptr.vmem [resolvable:$true] %s173_s29 }
  0x12   : > { %s567_s5 = scalar_lea.hbm %s1028_s1, 2048 }
  0x13   : > { %p834_p11 = pnand %p492_p9, %p803_p1  ;;  %p568_p12 = scmp.ne.s32.totalorder %s1028_s1, %s567_s5 }
  0x14   : > { %p574_p5 = scmp.lt.u32.totalorder %s567_s5, %s1028_s1 }
  0x15   : > { %p569_p13 = pneg %p834_p11 }
  0x17   : > { %p570_p0 = pnand %p569_p13, %p568_p12 }
  0x19   : > { %p571_p3 = pneg %p570_p0 }
  0x1b   : > { %p576_p7 = pnand %p574_p5, %p571_p3 }
  0x1d   : > { %579 = shalt.err (!%p576_p7)
}
  0x1e   : > { %s580_s10 = scalar_lea.vmem %s827_s26, 2048  ;;  %p588_p1 = scmp.lt.s32.totalorder %s827_s26, %s827_s26 }
  0x1f   : > { %p581_p9 = scmp.ne.s32.totalorder %s827_s26, %s580_s10  ;;  %p589_p12 = scmp.lt.s32.totalorder %s580_s10, %s580_s10 }
  0x21   : > { %p583_p10 = pnand %p581_p9, %p569_p13  ;;  %p590_p0 = por %p589_p12, %p588_p1 }
  0x23   : > { %p584_p6 = pneg %p583_p10 }
  0x25   : > { %p591_p4 = pnand %p590_p0, %p584_p6 }
  0x27   : > { %594 = shalt.err (!%p591_p4)
}
  0x28   : > { %s743_s11 = smov 128   ;;  %s744_s18 = smov 8  }
  0x29   : > { %495 = dma.hbm_to_vmem [thread:$0]  (!%p834_p11), %s1028_s1, 2048, %s827_s26, [#allocation6], %s743_s11, %s743_s11, %s744_s18  }
  0x2a   : > { %s595_s4 = scalar_lea.hbm %s1029_s2, 16 }
  0x2b   : > { %p596_p1 = scmp.ne.s32.totalorder %s1029_s2, %s595_s4  ;;  %p602_p10 = scmp.lt.u32.totalorder %s595_s4, %s1029_s2 }
  0x2d   : > { %p598_p4 = pnand %p596_p1, %p569_p13 }
  0x2f   : > { %p599_p6 = pneg %p598_p4 }
  0x31   : > { %p604_p3 = pnand %p602_p10, %p599_p6 }
  0x33   : > { %607 = shalt.err (!%p604_p3)
}
  0x34   : > { %s608_s26 = scalar_lea.vmem %s838_s29, 16  ;;  %s615_s9 = scalar_lea.vmem %s838_s29, 32 }
  0x35   : > { %p609_p5 = scmp.ne.s32.totalorder %s838_s29, %s608_s26  ;;  %p616_p12 = scmp.lt.s32.totalorder %s838_s29, %s838_s29 }
  0x36   : > { %p617_p0 = scmp.lt.s32.totalorder %s615_s9, %s608_s26 }
  0x37   : > { %p611_p7 = pnand %p609_p5, %p569_p13 }
  0x38   : > { %p618_p1 = por %p617_p0, %p616_p12 }
  0x39   : > { %p612_p9 = pneg %p611_p7 }
  0x3b   : > { %p619_p4 = pnand %p618_p1, %p612_p9 }
  0x3d   : > { %622 = shalt.err (!%p619_p4)
}
  0x3e   : > { %498 = dma.hbm_to_vmem [thread:$0]  (!%p834_p11), %s1029_s2, 16, %s838_s29, [#allocation6]  }
  0x3f   : > { %s32_s18 = sadd.s32 1, %s735_s16  ;;  %s39_s19 = sadd.s32 1, %s727_s14 }
  0x40   : > { %p34_p13 = scmp.ge.s32.totalorder %s32_s18, 2  ;;  %p46_p6 = scmp.ne.s32.totalorder %s727_s14, %s723_s13 }
  0x41   : > { %p47_p10 = scmp.eq.s32.totalorder %s739_s17, 0  ;;  %p509_p3 = scmp.lt.s32.totalorder %s739_s17, 2 }
  0x42   : > { %s1054_s18 = smov (%p34_p13, %s32_s18), 0  ;;  %p903_p7 = por %p807_p2, %p46_p6 }
  0x43   : > { %p48_p5 = por %p47_p10, %p46_p6  ;;  %s36_s25 = ssub.s32 %s735_s16, %s1054_s18 }
  0x44   : > { %s1041_s27 = scalar_select %p903_p7, 1, 0 }
  0x45   : > { %s184_s28 = sand.u32 1, %s727_s14   ;;  %p37_p9 = scmp.eq.s32.totalorder %s36_s25, 0 }
  0x46   : > { %s439_s29 = sshll.u32 %s184_s28, 3  ;;  %s440_s30 = sshll.u32 %s735_s16, 7 }
  0x47   : > { %s912_s4 = scalar_select %p37_p9, %s727_s14, %s39_s19  }
  0x48   : > { %s917_s7 = scalar_lea.hbm %s1027_s0, %s440_s30  ;;  %s188_s21 = scalar_lea.vmem [#allocation2], %s439_s29 }
  0x49   : > { %s195_s8 = sshll.u32 %s188_s21, 4  ;;  %p921_p2 = pnand %p509_p3, %p48_p5  ;;  %s925_s8 = int_to_ptr.vmem [resolvable:$true] %s195_s8 }
  0x4a   : > { %s185_s9 = scalar_lea.sflag [#allocation3], %s184_s28  ;;  %s623_s10 = scalar_lea.hbm %s917_s7, 128 }
  0x4b   : > { %p624_p11 = scmp.ne.s32.totalorder %s917_s7, %s623_s10  ;;  %p625_p12 = pneg %p921_p2 }
  0x4c   : > { %s628_s25 = scalar_lea.hbm %s1027_s0, 256  ;;  %p629_p4 = scmp.lt.u32.totalorder %s917_s7, %s1027_s0 }
  0x4d   : > { %p626_p0 = pnand %p625_p12, %p624_p11  ;;  %p630_p13 = scmp.lt.u32.totalorder %s628_s25, %s623_s10 }
  0x4e   : > { %p632_p10 = scmp.lt.u32.totalorder %s623_s10, %s917_s7 }
  0x4f   : > { %p627_p1 = pneg %p626_p0  ;;  %p631_p6 = por %p630_p13, %p629_p4 }
  0x51   : > { %p633_p3 = por %p632_p10, %p631_p6 }
  0x53   : > { %p634_p5 = pnand %p633_p3, %p627_p1 }
  0x55   : > { %637 = shalt.err (!%p634_p5)
}
  0x56   : > { %s638_s28 = scalar_lea.vmem %s925_s8, 128  ;;  %s745_s5 = smov [#allocation2]  }
  0x57   : > { %p639_p9 = scmp.ne.s32.totalorder %s925_s8, %s638_s28  ;;  %s643_s6 = sshll.u32 %s745_s5, 4  ;;  %s644_s6 = int_to_ptr.vmem [resolvable:$false] %s643_s6 }
  0x58   : > { %s645_s21 = scalar_lea.vmem %s644_s6, 256  ;;  %p646_p7 = scmp.lt.s32.totalorder %s925_s8, %s644_s6 }
  0x59   : > { %p641_p11 = pnand %p639_p9, %p625_p12  ;;  %p647_p4 = scmp.lt.s32.totalorder %s645_s21, %s638_s28 }
  0x5b   : > { %p642_p0 = pneg %p641_p11  ;;  %p648_p13 = por %p647_p4, %p646_p7 }
  0x5d   : > { %p649_p6 = pnand %p648_p13, %p642_p0 }
  0x5f   : > { %652 = shalt.err (!%p649_p6)
}
  0x60   : > { %502 = dma.hbm_to_vmem [thread:$0]  (!%p921_p2), %s917_s7, 128, %s925_s8, %s185_s9  }
  0x61   : > { %204 = sbr.rel (%p823_p8) target bundleno = 370 (0x172), region = 32  ;;  %s955_s10 = sand.u32 (!%p823_p8), 1, %s723_s13  }
  0x62   : > { %s442_s11 = sshll.u32 (!%p823_p8), %s955_s10, 3  ;;  %s207_s19 = scalar_lea.sflag (!%p823_p8), [#allocation3], %s955_s10 }
  0x63   : > { %s961_s25 = scalar_lea.vmem (!%p823_p8), [#allocation2], %s442_s11  ;;  %p1043_p7 = scmp.ne.s32.totalorder (!%p823_p8), %s1037_s22, 0 }
  0x68   : > { %706 = dma.done.wait (%p1043_p7), %s207_s19, 128  }
  0x69   : > { %708 = vsyncadd (%p1043_p7), %s207_s19, 4294967168  ;;  %p1044_p2 = scmp.ne.s32.totalorder %s1035_s20, 0 }
  0x6b   : > { %710 = dma.done.wait (%p1044_p2), [#allocation6], 2064  }
  0x6c   : > { %712 = vsyncadd (%p1044_p2), [#allocation6], 4294965232  ;;  %v746_v0 = vmov 0.0   ;;  %vm747_vm0 = vmmov 0   ;;  %v244_v1 = vld [vmem:[#allocation5] sm:$0xff]  ;;  %v245_v2 = vld [vmem:[#allocation5 + $0x8] sm:$0xff] }
  0x6d   : > { %460 = vmatprep.subr.bf16.mxu0 %v746_v0  ;;  %476 = vmatprep.mubr.msk.bf16.mxu0 %vm747_vm0, %v746_v0  ;;  %v246_v3 = vld [vmem:[#allocation5 + $0x10] sm:$0xff]  ;;  %v260_v4 = vpack.c.bf16 %v245_v2, %v244_v1  ;;  %v247_v5 = vld [vmem:[#allocation5 + $0x18] sm:$0xff]  ;;  %v248_v7 = vld [vmem:[#allocation5 + $0x20] sm:$0xff]  ;;  %s448_s20 = sshll.u32 %s731_s15, 7  ;;  %s240_s22 = scalar_lea.vmem [#allocation8], %s442_s11 }
  0x6e   : > { %v261_v6 = vpack.c.bf16 %v247_v5, %v246_v3  ;;  %v249_v8 = vld [vmem:[#allocation5 + $0x28] sm:$0xff]  ;;  %v250_v10 = vld [vmem:[#allocation5 + $0x30] sm:$0xff]  ;;  %v251_v11 = vld [vmem:[#allocation5 + $0x38] sm:$0xff]  ;;  %s331_s24 = sshll.u32 %s240_s22, 4  ;;  %s978_s26 = scalar_lea.hbm %s1030_s3, %s448_s20  ;;  %s980_s24 = int_to_ptr.vmem [resolvable:$true] %s331_s24 }
  0x6f   : > { %461 = vmatpush3.bf16.msra.mxu0 %v260_v4  ;;  %v262_v9 = vpack.c.bf16 %v249_v8, %v248_v7  ;;  %v263_v12 = vpack.c.bf16 %v251_v11, %v250_v10  ;;  %v252_v13 = vld [vmem:[#allocation5 + $0x40] sm:$0xff]  ;;  %v253_v14 = vld [vmem:[#allocation5 + $0x48] sm:$0xff]  ;;  %v254_v16 = vld [vmem:[#allocation5 + $0x50] sm:$0xff]  ;;  %s317_s15 = scalar_lea.sflag [#allocation4], %s955_s10  ;;  %s653_s9 = scalar_lea.vmem %s980_s24, 128 }
  0x70   : > { %462 = vmatprep.subr.bf16.mxu0 %v746_v0  ;;  %v264_v15 = vpack.c.bf16 %v253_v14, %v252_v13  ;;  %v255_v17 = vld [vmem:[#allocation5 + $0x58] sm:$0xff]  ;;  %v256_v19 = vld [vmem:[#allocation5 + $0x60] sm:$0xff]  ;;  %v257_v20 = vld [vmem:[#allocation5 + $0x68] sm:$0xff]  ;;  %p654_p8 = scmp.ne.s32.totalorder %s980_s24, %s653_s9  ;;  %p1045_p12 = scmp.ne.s32.totalorder %s1041_s27, 0 }
  0x71   : > { %v265_v18 = vpack.c.bf16 %v255_v17, %v254_v16  ;;  %v266_v21 = vpack.c.bf16 %v257_v20, %v256_v19  ;;  %v258_v22 = vld [vmem:[#allocation5 + $0x70] sm:$0xff]  ;;  %v259_v23 = vld [vmem:[#allocation5 + $0x78] sm:$0xff]  ;;  %v446_v27 = vld [vmem:[#allocation7] ss:$0 sm:$0xff]  ;;  %s748_s29 = smov [#allocation8]  }
  0x72   : > { %v267_v24 = vpack.c.bf16 %v259_v23, %v258_v22  ;;  %v242_v25 = vld [vmem:[%s961_s25] sm:$0xff]  ;;  %p655_p1 = pnand %p654_p8, %p1045_p12  ;;  %s657_s30 = sshll.u32 %s748_s29, 4  ;;  %s658_s30 = int_to_ptr.vmem [resolvable:$false] %s657_s30 }
  0x73   : > { %463 = vmatpush3.bf16.msra.mxu0 %v261_v6  ;;  %v243_v26 = vpack.c.bf16 %v242_v25, %v242_v25  ;;  %s659_s28 = scalar_lea.vmem %s658_s30, 256  ;;  %p660_p3 = scmp.lt.s32.totalorder %s980_s24, %s658_s30 }
  0x74   : > { %464 = vmatprep.subr.bf16.mxu0 %v746_v0  ;;  %p656_p10 = pneg %p655_p1  ;;  %p661_p5 = scmp.lt.s32.totalorder %s659_s28, %s653_s9 }
  0x76   : > { %p662_p9 = por %p661_p5, %p660_p3 }
  0x77   : > { %465 = vmatpush3.bf16.msra.mxu0 %v262_v9 }
  0x78   : > { %466 = vmatprep.subr.bf16.mxu0 %v746_v0  ;;  %p663_p11 = pnand %p662_p9, %p656_p10 }
  0x7b   : > { %467 = vmatpush3.bf16.msra.mxu0 %v263_v12 }
  0x7c   : > { %468 = vmatprep.subr.bf16.mxu0 %v746_v0 }
  0x7f   : > { %469 = vmatpush3.bf16.msra.mxu0 %v264_v15 }
  0x80   : > { %470 = vmatprep.subr.bf16.mxu0 %v746_v0 }
  0x83   : > { %471 = vmatpush3.bf16.msra.mxu0 %v265_v18 }
  0x84   : > { %472 = vmatprep.subr.bf16.mxu0 %v746_v0 }
  0x87   : > { %473 = vmatpush3.bf16.msra.mxu0 %v266_v21 }
  0x88   : > { %474 = vmatprep.subr.bf16.mxu0 %v746_v0 }
  0x8b   : > { %475 = vmatpush3.bf16.msra.mxu0 %v267_v24 }
  0x8e   : > { %477 = vmatmul.mubr.bf16.vlgmr.msra.gmra.mrb[0].mxu0 %v243_v26 }
 0x161   : > { %v309_v28 = vpop.f32.mrb[0].mxu0 }
 0x162   : > { %v310_v29 = vadd.f32 %v446_v27, %v309_v28  ;;  %v478_v30 = vpop.f32.mrb[1].mxu0 }
 0x163   : > { %v312_v31 = vpop.f32.mrb[2].mxu0 }
 0x164   : > { %315 = vst [vmem:[%s240_s22] sm:$0xff] %v310_v29  ;;  %v479_v32 = vpop.f32.mrb[3].mxu0 }
 0x165   : > { %666 = shalt.err (!%p663_p11)
}
 0x166   : > { %s667_s5 = scalar_lea.hbm %s978_s26, 128  ;;  %s671_s10 = scalar_lea.hbm %s1030_s3, 256 }
 0x167   : > { %p668_p0 = scmp.ne.s32.totalorder %s978_s26, %s667_s5  ;;  %p672_p6 = scmp.lt.u32.totalorder %s978_s26, %s1030_s3 }
 0x168   : > { %p673_p7 = scmp.lt.u32.totalorder %s671_s10, %s667_s5  ;;  %p675_p8 = scmp.lt.u32.totalorder %s667_s5, %s978_s26 }
 0x169   : > { %p669_p4 = pnand %p668_p0, %p1045_p12 }
 0x16a   : > { %p674_p2 = por %p673_p7, %p672_p6 }
 0x16b   : > { %p670_p13 = pneg %p669_p4 }
 0x16c   : > { %p676_p1 = por %p675_p8, %p674_p2 }
 0x16e   : > { %p677_p10 = pnand %p676_p1, %p670_p13 }
 0x170   : > { %680 = shalt.err (!%p677_p10)
}
 0x171   : > { %490 = dma.vmem_to_hbm [thread:$0]  (%p1045_p12), %s980_s24, 128, %s978_s26, %s317_s15  }
 0x172 PF: > { %s343_s25 = sand.u32 1, %s719_s12   ;;  %p1046_p3 = scmp.ne.s32.totalorder %s1038_s23, 0 }
 0x173   : > { %p1047_p5 = scmp.ge.s32.totalorder %s739_s17, 2  ;;  %s344_s20 = scalar_lea.sflag [#allocation4], %s343_s25 }
 0x175   : > { %p504_p9 = pnand %p1047_p5, %p1046_p3 }
 0x177   : > { %714 = dma.done.wait (!%p504_p9), %s344_s20, 128  }
 0x178   : > { %716 = vsyncadd (!%p504_p9), %s344_s20, 4294967168  ;;  %s20_s17 = sadd.s32 1, %s739_s17   ;;  %s1048_s12 = smov %s723_s13 }
 0x179   : > { %p17_p11 = scmp.ge.s32.totalorder %s20_s17, 4   ;;  %s1049_s13 = smov %s727_s14 }
 0x17a   : > { %s1050_s14 = smov %s912_s4  ;;  %s1051_s15 = smov %s735_s16 }
 0x17b   : > { %s1052_s16 = smov %s1054_s18  ;;  %19 = sbr.rel (!%p17_p11) target bundleno = 7 (0x7), region = 87 }
 0x182   :  { %349 = vsyncpa [#allocation3], 1 }
 0x183   :  { %351 = vsyncpa [#allocation3 + $0x1], 1 }
 0x184   :  { %352 = vsyncpa [#allocation6], 1 }
 0x185   :  { %353 = vsyncpa [#allocation4], 1 }
 0x186   :  { %355 = vsyncpa [#allocation4 + $0x1], 1 }

// kernel: transformer_forward.38
= control target key start
LH: loop header
LB: loop body
LE: loop exit
PB: predicated region body
PF: predicated region fallthrough
CT: control target
= control target key end

     0   :  { %s1392_s0 = inlined_call_operand.hbm [shape: f32[16,128], index: 0, kind: input, shape index: {}]   ;;  %s1393_s1 = inlined_call_operand.hbm [shape: f32[128,128], index: 1, kind: input, shape index: {}]   ;;  %s1394_s2 = inlined_call_operand.hbm [shape: f32[1,128], index: 2, kind: input, shape index: {}]   ;;  %s1395_s3 = inlined_call_operand.hbm [shape: f32[16,128], index: 3, kind: input, shape index: {}]   ;;  %s1396_s4 = inlined_call_operand.hbm [shape: f32[1,128], index: 4, kind: input, shape index: {}]   ;;  %s1397_s5 = inlined_call_operand.hbm [shape: f32[1,128], index: 5, kind: input, shape index: {}]   ;;  %s1398_s6 = inlined_call_operand.hbm [shape: f32[16,128], index: 6, kind: output, shape index: {}]  }
   0x1   :  { %1403 = sst [smem:[#allocation20_spill]] %s1393_s1 }
   0x2   :  { %1404 = sst [smem:[#allocation21_spill]] %s1394_s2 }
   0x3   :  { %1405 = sst [smem:[#allocation22_spill]] %s1396_s4 }
   0x4   :  { %11 = vsyncpa [#allocation3], 0 }
   0x5   :  { %13 = vsyncpa [#allocation3 + $0x1], 0 }
   0x6   :  { %14 = vsyncpa [#allocation6], 0 }
   0x7   :  { %15 = vsyncpa [#allocation9], 0 }
   0x8   :  { %17 = vsyncpa [#allocation9 + $0x1], 0 }
   0x9   :  { %18 = vsyncpa [#allocation12], 0 }
   0xa   :  { %19 = vsyncpa [#allocation4], 0 }
   0xb   :  { %21 = vsyncpa [#allocation4 + $0x1], 0  ;;  %s1061_s21 = smov 0   ;;  %s1063_s22 = smov 0  }
   0xc   :  { %s1065_s23 = smov 0   ;;  %s1067_s24 = smov 0  }
   0xd LB: > { %s1015_s25 = smov [#allocation5]   ;;  %s1082_s27 = sadd.s32 4294967295, %s1013_s24   ;;  %s1013_s24 = sphi %s1067_s24, %s1432_s24   ;;  %s1009_s23 = sphi %s1065_s23, %s1431_s23   ;;  %s1005_s22 = sphi %s1063_s22, %s1430_s22   ;;  %s1001_s21 = sphi %s1061_s21, %s1429_s21  }
   0xe   : > { %s206_s26 = sshll.u32 %s1015_s25, 4  ;;  %p607_p0 = scmp.ge.s32.totalorder %s1013_s24, 1  ;;  %s1087_s26 = int_to_ptr.vmem [resolvable:$true] %s206_s26 }
   0xf   : > { %p1399_p1 = scmp.eq.s32.totalorder %s1082_s27, 0  ;;  %p194_p2 = scmp.lt.s32.totalorder %s1013_s24, 3 }
  0x10   : > { %s1016_s29 = smov [#allocation10]   ;;  %s1017_s8 = smov [#allocation7]  }
  0x11   : > { %p1089_p3 = pnand %p607_p0, %p194_p2  ;;  %s231_s30 = sshll.u32 %s1016_s29, 4  ;;  %s1102_s30 = int_to_ptr.vmem [resolvable:$true] %s231_s30 }
  0x12   : > { %s220_s9 = sshll.u32 %s1017_s8, 4  ;;  %s1408_s1 = sld [smem:[#allocation20_spill]]  ;;  %s1104_s9 = int_to_ptr.vmem [resolvable:$true] %s220_s9 }
  0x13   : > { %s1406_s28 = scalar_select %p1089_p3, 1, 0 }
  0x14   : > { %p683_p5 = pneg %p1089_p3 }
  0x16   : > { %p1098_p6 = pnand %p683_p5, %p1399_p1 }
  0x18   : > { %s759_s12 = scalar_lea.hbm %s1408_s1, 2048  ;;  %p1114_p8 = pneg %p1098_p6 }
  0x19   : > { %p760_p7 = scmp.ne.s32.totalorder %s1408_s1, %s759_s12  ;;  %p766_p11 = scmp.lt.u32.totalorder %s759_s12, %s1408_s1 }
  0x1b   : > { %p762_p9 = pnand %p1114_p8, %p760_p7 }
  0x1d   : > { %p763_p10 = pneg %p762_p9 }
  0x1f   : > { %p768_p12 = pnand %p766_p11, %p763_p10 }
  0x21   : > { %771 = shalt.err (!%p768_p12)
}
  0x22   : > { %s772_s18 = scalar_lea.vmem %s1087_s26, 2048  ;;  %p780_p5 = scmp.lt.s32.totalorder %s1087_s26, %s1087_s26 }
  0x23   : > { %p773_p13 = scmp.ne.s32.totalorder %s1087_s26, %s772_s18  ;;  %p781_p4 = scmp.lt.s32.totalorder %s772_s18, %s772_s18 }
  0x25   : > { %p775_p0 = pnand %p773_p13, %p1114_p8  ;;  %p782_p7 = por %p781_p4, %p780_p5 }
  0x27   : > { %p776_p2 = pneg %p775_p0 }
  0x29   : > { %p783_p9 = pnand %p782_p7, %p776_p2 }
  0x2b   : > { %786 = shalt.err (!%p783_p9)
}
  0x2c   : > { %s1018_s19 = smov 128   ;;  %s1019_s20 = smov 8  }
  0x2d   : > { %686 = dma.hbm_to_vmem [thread:$0]  (!%p1098_p6), %s1408_s1, 2048, %s1087_s26, [#allocation6], %s1018_s19, %s1018_s19, %s1019_s20  }
  0x2e   : > { %s1410_s4 = sld [smem:[#allocation22_spill]] }
  0x34   : > { %s787_s11 = scalar_lea.hbm %s1410_s4, 16 }
  0x35   : > { %p788_p4 = scmp.ne.s32.totalorder %s1410_s4, %s787_s11  ;;  %p794_p12 = scmp.lt.u32.totalorder %s787_s11, %s1410_s4 }
  0x37   : > { %p790_p10 = pnand %p788_p4, %p1114_p8 }
  0x39   : > { %p791_p11 = pneg %p790_p10 }
  0x3b   : > { %p796_p13 = pnand %p794_p12, %p791_p11 }
  0x3d   : > { %799 = shalt.err (!%p796_p13)
}
  0x3e   : > { %s800_s26 = scalar_lea.vmem %s1102_s30, 16  ;;  %s807_s17 = scalar_lea.vmem %s1102_s30, 32 }
  0x3f   : > { %p801_p0 = scmp.ne.s32.totalorder %s1102_s30, %s800_s26  ;;  %p808_p7 = scmp.lt.s32.totalorder %s1102_s30, %s1102_s30 }
  0x40   : > { %p809_p9 = scmp.lt.s32.totalorder %s807_s17, %s800_s26 }
  0x41   : > { %p803_p2 = pnand %p801_p0, %p1114_p8 }
  0x42   : > { %p810_p4 = por %p809_p9, %p808_p7 }
  0x43   : > { %p804_p5 = pneg %p803_p2 }
  0x45   : > { %p811_p10 = pnand %p810_p4, %p804_p5 }
  0x47   : > { %814 = shalt.err (!%p811_p10)
}
  0x48   : > { %692 = dma.hbm_to_vmem [thread:$0]  (!%p1098_p6), %s1410_s4, 16, %s1102_s30, [#allocation9]  }
  0x49   : > { %s1411_s2 = sld [smem:[#allocation21_spill]] }
  0x4f   : > { %s815_s29 = scalar_lea.hbm %s1411_s2, 16 }
  0x50   : > { %p816_p11 = scmp.ne.s32.totalorder %s1411_s2, %s815_s29  ;;  %p822_p0 = scmp.lt.u32.totalorder %s815_s29, %s1411_s2 }
  0x52   : > { %p818_p12 = pnand %p816_p11, %p1114_p8 }
  0x54   : > { %p819_p13 = pneg %p818_p12 }
  0x56   : > { %p824_p2 = pnand %p822_p0, %p819_p13 }
  0x58   : > { %827 = shalt.err (!%p824_p2)
}
  0x59   : > { %s828_s30 = scalar_lea.vmem %s1104_s9, 16  ;;  %s835_s13 = scalar_lea.vmem %s1104_s9, 32 }
  0x5a   : > { %p829_p5 = scmp.ne.s32.totalorder %s1104_s9, %s828_s30  ;;  %p836_p4 = scmp.lt.s32.totalorder %s1104_s9, %s1104_s9 }
  0x5b   : > { %p837_p10 = scmp.lt.s32.totalorder %s835_s13, %s828_s30 }
  0x5c   : > { %p831_p7 = pnand %p829_p5, %p1114_p8 }
  0x5d   : > { %p838_p11 = por %p837_p10, %p836_p4 }
  0x5e   : > { %p832_p9 = pneg %p831_p7 }
  0x60   : > { %p839_p12 = pnand %p838_p11, %p832_p9 }
  0x62   : > { %842 = shalt.err (!%p839_p12)
}
  0x63   : > { %689 = dma.hbm_to_vmem [thread:$0]  (!%p1098_p6), %s1411_s2, 16, %s1104_s9, [#allocation6]  }
  0x64   : > { %s1020_s26 = smov [#allocation11]   ;;  %s843_s20 = scalar_lea.hbm %s1397_s5, 16 }
  0x65   : > { %s242_s17 = sshll.u32 %s1020_s26, 4  ;;  %p844_p13 = scmp.ne.s32.totalorder %s1397_s5, %s843_s20  ;;  %s243_s17 = int_to_ptr.vmem [resolvable:$true] %s242_s17 }
  0x66   : > { %p850_p5 = scmp.lt.u32.totalorder %s843_s20, %s1397_s5 }
  0x67   : > { %p846_p0 = pnand %p844_p13, %p1114_p8 }
  0x69   : > { %p847_p2 = pneg %p846_p0 }
  0x6b   : > { %p852_p7 = pnand %p850_p5, %p847_p2 }
  0x6d   : > { %855 = shalt.err (!%p852_p7)
}
  0x6e   : > { %s856_s9 = scalar_lea.vmem %s243_s17, 16  ;;  %s863_s11 = scalar_lea.vmem %s243_s17, 32 }
  0x6f   : > { %p857_p9 = scmp.ne.s32.totalorder %s243_s17, %s856_s9  ;;  %p864_p11 = scmp.lt.s32.totalorder %s243_s17, %s243_s17 }
  0x70   : > { %p865_p12 = scmp.lt.s32.totalorder %s863_s11, %s856_s9 }
  0x71   : > { %p859_p4 = pnand %p857_p9, %p1114_p8 }
  0x72   : > { %p866_p1 = por %p865_p12, %p864_p11 }
  0x73   : > { %p860_p10 = pneg %p859_p4 }
  0x75   : > { %p867_p3 = pnand %p866_p1, %p860_p10 }
  0x77   : > { %870 = shalt.err (!%p867_p3)
}
  0x78   : > { %695 = dma.hbm_to_vmem [thread:$0]  (!%p1098_p6), %s1397_s5, 16, %s243_s17, [#allocation12]  }
  0x79   : > { %s606_s15 = sadd.s32 4294967294, %s1013_s24   ;;  %s1203_s7 = sadd.s32 1, %s1013_s24  }
  0x7a   : > { %s31_s13 = ssub.s32 %s1013_s24, %s1203_s7  ;;  %s34_s14 = sadd.s32 1, %s1009_s23 }
  0x7b   : > { %p32_p1 = scmp.eq.s32.totalorder %s31_s13, 0  ;;  %p41_p3 = scmp.ne.s32.totalorder %s1009_s23, %s1005_s22 }
  0x7c   : > { %p42_p8 = scmp.eq.s32.totalorder %s1013_s24, 0  ;;  %p47_p13 = scmp.ne.s32.totalorder %s1005_s22, %s1001_s21 }
  0x7d   : > { %s1214_s16 = scalar_select %p32_p1, %s1009_s23, %s34_s14  }
  0x7e   : > { %p1216_p0 = por %p42_p8, %p41_p3  ;;  %p1413_p2 = scmp.eq.s32.totalorder %s1082_s27, 0 }
  0x7f   : > { %p181_p5 = scmp.eq.s32.totalorder %s1082_s27, 1  ;;  %p187_p7 = scmp.eq.s32.totalorder %s606_s15, 1 }
  0x80   : > { %p1222_p6 = por %p1413_p2, %p47_p13  ;;  %p711_p9 = scmp.lt.s32.totalorder %s1013_s24, 2 }
  0x81   : > { %s253_s18 = sand.u32 1, %s1009_s23   ;;  %p1229_p4 = por %p181_p5, %p41_p3 }
  0x82   : > { %s1414_s17 = scalar_select %p1222_p6, 1, 0 }
  0x83   : > { %s1415_s19 = scalar_select %p1229_p4, 1, 0 }
  0x84   : > { %p1233_p10 = por %p187_p7, %p47_p13  ;;  %s1237_s25 = sshll.u32 %s253_s18, 3 }
  0x85   : > { %s614_s29 = sshll.u32 %s1013_s24, 7  ;;  %s257_s11 = scalar_lea.vmem [#allocation2], %s1237_s25 }
  0x86   : > { %s1416_s20 = scalar_select %p1233_p10, 1, 0 }
  0x87   : > { %s1243_s9 = scalar_lea.hbm %s1392_s0, %s614_s29  ;;  %s264_s12 = sshll.u32 %s257_s11, 4  ;;  %s1246_s12 = int_to_ptr.vmem [resolvable:$true] %s264_s12 }
  0x88   : > { %p1250_p11 = pnand %p711_p9, %p1216_p0  ;;  %s1257_s14 = scalar_lea.hbm %s1395_s3, %s614_s29 }
  0x89   : > { %s271_s8 = sand.u32 1, %s1013_s24   ;;  %s254_s10 = scalar_lea.sflag [#allocation3], %s253_s18 }
  0x8a   : > { %s871_s1 = scalar_lea.hbm %s1243_s9, 128  ;;  %p873_p1 = pneg %p1250_p11 }
  0x8b   : > { %p872_p12 = scmp.ne.s32.totalorder %s1243_s9, %s871_s1  ;;  %s876_s2 = scalar_lea.hbm %s1392_s0, 256 }
  0x8c   : > { %p877_p13 = scmp.lt.u32.totalorder %s1243_s9, %s1392_s0  ;;  %p878_p0 = scmp.lt.u32.totalorder %s876_s2, %s871_s1 }
  0x8d   : > { %p874_p3 = pnand %p873_p1, %p872_p12  ;;  %p880_p5 = scmp.lt.u32.totalorder %s871_s1, %s1243_s9 }
  0x8e   : > { %p879_p2 = por %p878_p0, %p877_p13 }
  0x8f   : > { %p875_p8 = pneg %p874_p3 }
  0x90   : > { %p881_p7 = por %p880_p5, %p879_p2 }
  0x92   : > { %p882_p9 = pnand %p881_p7, %p875_p8 }
  0x94   : > { %885 = shalt.err (!%p882_p9)
}
  0x95   : > { %s886_s18 = scalar_lea.vmem %s1246_s12, 128  ;;  %s1021_s29 = smov [#allocation2]  }
  0x96   : > { %p887_p12 = scmp.ne.s32.totalorder %s1246_s12, %s886_s18  ;;  %s891_s13 = sshll.u32 %s1021_s29, 4  ;;  %s892_s13 = int_to_ptr.vmem [resolvable:$false] %s891_s13 }
  0x97   : > { %s893_s4 = scalar_lea.vmem %s892_s13, 256  ;;  %p894_p4 = scmp.lt.s32.totalorder %s1246_s12, %s892_s13 }
  0x98   : > { %p889_p3 = pnand %p887_p12, %p873_p1  ;;  %p895_p13 = scmp.lt.s32.totalorder %s893_s4, %s886_s18 }
  0x9a   : > { %p890_p10 = pneg %p889_p3  ;;  %p896_p0 = por %p895_p13, %p894_p4 }
  0x9c   : > { %p897_p2 = pnand %p896_p0, %p890_p10 }
  0x9e   : > { %900 = shalt.err (!%p897_p2)
}
  0x9f   : > { %699 = dma.hbm_to_vmem [thread:$0]  (!%p1250_p11), %s1243_s9, 128, %s1246_s12, %s254_s10  }
  0xa0   : > { %s275_s1 = scalar_lea.vmem [#allocation8], %s1237_s25  ;;  %s272_s26 = scalar_lea.sflag [#allocation9], %s271_s8 }
  0xa1   : > { %s282_s2 = sshll.u32 %s275_s1, 4  ;;  %s901_s11 = scalar_lea.hbm %s1257_s14, 128  ;;  %s283_s2 = int_to_ptr.vmem [resolvable:$true] %s282_s2 }
  0xa2   : > { %p902_p4 = scmp.ne.s32.totalorder %s1257_s14, %s901_s11  ;;  %s906_s29 = scalar_lea.hbm %s1395_s3, 256 }
  0xa3   : > { %p907_p5 = scmp.lt.u32.totalorder %s1257_s14, %s1395_s3  ;;  %p908_p7 = scmp.lt.u32.totalorder %s906_s29, %s901_s11 }
  0xa4   : > { %p904_p10 = pnand %p902_p4, %p873_p1  ;;  %p910_p12 = scmp.lt.u32.totalorder %s901_s11, %s1257_s14 }
  0xa5   : > { %p909_p9 = por %p908_p7, %p907_p5 }
  0xa6   : > { %p905_p8 = pneg %p904_p10 }
  0xa7   : > { %p911_p3 = por %p910_p12, %p909_p9 }
  0xa9   : > { %p912_p13 = pnand %p911_p3, %p905_p8 }
  0xab   : > { %915 = shalt.err (!%p912_p13)
}
  0xac   : > { %s916_s25 = scalar_lea.vmem %s283_s2, 128  ;;  %s1022_s9 = smov [#allocation8]  }
  0xad   : > { %p917_p0 = scmp.ne.s32.totalorder %s283_s2, %s916_s25  ;;  %s921_s12 = sshll.u32 %s1022_s9, 4  ;;  %s922_s12 = int_to_ptr.vmem [resolvable:$false] %s921_s12 }
  0xae   : > { %s923_s8 = scalar_lea.vmem %s922_s12, 256  ;;  %p924_p10 = scmp.lt.s32.totalorder %s283_s2, %s922_s12 }
  0xaf   : > { %p919_p2 = pnand %p917_p0, %p873_p1  ;;  %p925_p6 = scmp.lt.s32.totalorder %s923_s8, %s916_s25 }
  0xb1   : > { %p920_p4 = pneg %p919_p2  ;;  %p926_p5 = por %p925_p6, %p924_p10 }
  0xb3   : > { %p927_p7 = pnand %p926_p5, %p920_p4 }
  0xb5   : > { %930 = shalt.err (!%p927_p7)
}
  0xb6   : > { %702 = dma.hbm_to_vmem [thread:$0]  (!%p1250_p11), %s1257_s14, 128, %s283_s2, %s272_s26  }
  0xb7   : > { %p1418_p8 = scmp.ne.s32.totalorder %s1406_s28, 0 }
  0xb8   : > { %s1310_s10 = sand.u32 (!%p1418_p8), 1, %s1005_s22   ;;  %p1419_p6 = scmp.ne.s32.totalorder (!%p1418_p8), %s1414_s17, 0 }
  0xb9   : > { %291 = sbr.rel (%p1418_p8) target bundleno = 780 (0x30c), region = 44  ;;  %s1313_s1 = sshll.u32 (!%p1418_p8), %s1310_s10, 3 }
  0xba   : > { %s294_s11 = scalar_lea.sflag (!%p1418_p8), [#allocation3], %s1310_s10  ;;  %s297_s15 = scalar_lea.vmem (!%p1418_p8), [#allocation2], %s1313_s1 }
  0xc0   : > { %976 = dma.done.wait (%p1419_p6), %s294_s11, 128  }
  0xc1   : > { %978 = vsyncadd (%p1419_p6), %s294_s11, 4294967168  ;;  %p1420_p11 = scmp.eq.s32.totalorder %s1082_s27, 0 }
  0xc3   : > { %980 = dma.done.wait (%p1420_p11), [#allocation6], 2064   ;;  %p1421_p1 = pmov %p1420_p11 }
  0xc4   : > { %s310_s28 = sand.u32 1, %s1082_s27   ;;  %s314_s14 = scalar_lea.vmem [#allocation8], %s1313_s1 }
  0xc5   : > { %982 = vsyncadd (%p1421_p1), [#allocation6], 4294965232  ;;  %s311_s30 = scalar_lea.sflag [#allocation9], %s310_s28 }
  0xc6   : > { %984 = dma.done.wait (%p1419_p6), %s311_s30, 128  }
  0xc7   : > { %986 = vsyncadd (%p1419_p6), %s311_s30, 4294967168  ;;  %p1422_p9 = pmov %p1421_p1 }
  0xc8   : > { %p1423_p12 = pmov %p1421_p1 }
  0xc9   : > { %988 = dma.done.wait (%p1422_p9), [#allocation9], 16  }
  0xca   : > { %990 = vsyncadd (%p1423_p12), [#allocation9], 4294967280  ;;  %p1424_p3 = pmov %p1421_p1 }
  0xcb   : > { %p1425_p13 = pmov %p1421_p1 }
  0xcc   : > { %992 = dma.done.wait (%p1424_p3), [#allocation12], 16  }
  0xcd   : > { %994 = vsyncadd (%p1425_p13), [#allocation12], 4294967280  ;;  %v1023_v0 = vmov 0.0   ;;  %vm1024_vm0 = vmmov 0   ;;  %v359_v1 = vld [vmem:[#allocation5] sm:$0xff]  ;;  %v360_v2 = vld [vmem:[#allocation5 + $0x8] sm:$0xff] }
  0xce   : > { %641 = vmatprep.subr.bf16.mxu0 %v1023_v0  ;;  %657 = vmatprep.mubr.msk.bf16.mxu0 %vm1024_vm0, %v1023_v0  ;;  %v361_v3 = vld [vmem:[#allocation5 + $0x10] sm:$0xff]  ;;  %v375_v4 = vpack.c.bf16 %v360_v2, %v359_v1  ;;  %v362_v5 = vld [vmem:[#allocation5 + $0x18] sm:$0xff]  ;;  %v363_v7 = vld [vmem:[#allocation5 + $0x20] sm:$0xff]  ;;  %s629_s17 = sshll.u32 %s1082_s27, 7  ;;  %s355_s2 = scalar_lea.vmem [#allocation13], %s1313_s1 }
  0xcf   : > { %v376_v6 = vpack.c.bf16 %v362_v5, %v361_v3  ;;  %v364_v8 = vld [vmem:[#allocation5 + $0x28] sm:$0xff]  ;;  %v365_v10 = vld [vmem:[#allocation5 + $0x30] sm:$0xff]  ;;  %v366_v11 = vld [vmem:[#allocation5 + $0x38] sm:$0xff]  ;;  %s475_s26 = sshll.u32 %s355_s2, 4  ;;  %s1348_s13 = scalar_lea.hbm %s1398_s6, %s629_s17  ;;  %s1350_s26 = int_to_ptr.vmem [resolvable:$true] %s475_s26 }
  0xd0   : > { %642 = vmatpush3.bf16.msra.mxu0 %v375_v4  ;;  %v377_v9 = vpack.c.bf16 %v364_v8, %v363_v7  ;;  %v378_v12 = vpack.c.bf16 %v366_v11, %v365_v10  ;;  %v367_v13 = vld [vmem:[#allocation5 + $0x40] sm:$0xff]  ;;  %v368_v14 = vld [vmem:[#allocation5 + $0x48] sm:$0xff]  ;;  %v369_v16 = vld [vmem:[#allocation5 + $0x50] sm:$0xff]  ;;  %s462_s4 = scalar_lea.sflag [#allocation4], %s1310_s10  ;;  %s931_s25 = scalar_lea.vmem %s1350_s26, 128 }
  0xd1   : > { %643 = vmatprep.subr.bf16.mxu0 %v1023_v0  ;;  %v379_v15 = vpack.c.bf16 %v368_v14, %v367_v13  ;;  %v370_v17 = vld [vmem:[#allocation5 + $0x58] sm:$0xff]  ;;  %v371_v19 = vld [vmem:[#allocation5 + $0x60] sm:$0xff]  ;;  %v372_v20 = vld [vmem:[#allocation5 + $0x68] sm:$0xff]  ;;  %p932_p0 = scmp.ne.s32.totalorder %s1350_s26, %s931_s25  ;;  %p1426_p2 = scmp.ne.s32.totalorder %s1415_s19, 0 }
  0xd2   : > { %v380_v18 = vpack.c.bf16 %v370_v17, %v369_v16  ;;  %v381_v21 = vpack.c.bf16 %v372_v20, %v371_v19  ;;  %v373_v22 = vld [vmem:[#allocation5 + $0x70] sm:$0xff]  ;;  %v374_v23 = vld [vmem:[#allocation5 + $0x78] sm:$0xff]  ;;  %v625_v27 = vld [vmem:[#allocation7] ss:$0 sm:$0xff]  ;;  %s1025_s27 = smov [#allocation13]  }
  0xd3   : > { %v382_v24 = vpack.c.bf16 %v374_v23, %v373_v22  ;;  %v357_v25 = vld [vmem:[%s297_s15] sm:$0xff]  ;;  %v430_v29 = vld [vmem:[%s314_s14] sm:$0xff]  ;;  %p933_p4 = pnand %p932_p0, %p1426_p2  ;;  %s935_s9 = sshll.u32 %s1025_s27, 4  ;;  %s936_s9 = int_to_ptr.vmem [resolvable:$false] %s935_s9 }
  0xd4   : > { %644 = vmatpush3.bf16.msra.mxu0 %v376_v6  ;;  %v358_v26 = vpack.c.bf16 %v357_v25, %v357_v25  ;;  %v626_v43 = vld [vmem:[#allocation10] ss:$0 sm:$0xff]  ;;  %v627_v45 = vld [vmem:[#allocation11] ss:$0 sm:$0xff]  ;;  %s937_s12 = scalar_lea.vmem %s936_s9, 256  ;;  %p938_p5 = scmp.lt.s32.totalorder %s1350_s26, %s936_s9 }
  0xd5   : > { %645 = vmatprep.subr.bf16.mxu0 %v1023_v0  ;;  %p934_p10 = pneg %p933_p4  ;;  %p939_p7 = scmp.lt.s32.totalorder %s937_s12, %s931_s25 }
  0xd7   : > { %p940_p8 = por %p939_p7, %p938_p5 }
  0xd8   : > { %646 = vmatpush3.bf16.msra.mxu0 %v377_v9 }
  0xd9   : > { %647 = vmatprep.subr.bf16.mxu0 %v1023_v0  ;;  %p941_p6 = pnand %p940_p8, %p934_p10 }
  0xdc   : > { %648 = vmatpush3.bf16.msra.mxu0 %v378_v12 }
  0xdd   : > { %649 = vmatprep.subr.bf16.mxu0 %v1023_v0 }
  0xe0   : > { %650 = vmatpush3.bf16.msra.mxu0 %v379_v15 }
  0xe1   : > { %651 = vmatprep.subr.bf16.mxu0 %v1023_v0 }
  0xe4   : > { %652 = vmatpush3.bf16.msra.mxu0 %v380_v18 }
  0xe5   : > { %653 = vmatprep.subr.bf16.mxu0 %v1023_v0 }
  0xe8   : > { %654 = vmatpush3.bf16.msra.mxu0 %v381_v21 }
  0xe9   : > { %655 = vmatprep.subr.bf16.mxu0 %v1023_v0 }
  0xec   : > { %656 = vmatpush3.bf16.msra.mxu0 %v382_v24 }
  0xef   : > { %658 = vmatmul.mubr.bf16.vlgmr.msra.gmra.mrb[0].mxu0 %v358_v26 }
 0x1c2   : > { %v424_v28 = vpop.f32.mrb[0].mxu0 }
 0x1c3   : > { %v425_v30 = vadd.f32 %v625_v27, %v424_v28  ;;  %v659_v31 = vpop.f32.mrb[1].mxu0 }
 0x1c4   : > { %v427_v32 = vpop.f32.mrb[2].mxu0 }
 0x1c5   : > { %v660_v33 = vpop.f32.mrb[3].mxu0  ;;  %v431_v34 = vadd.f32 %v430_v29, %v425_v30 }
 0x1c7   : > { %432 = vadd.xlane.f32.xlu0 %v431_v34 }
 0x254   : > { %v433_v35 = vpop.xlane.xlu0 %432 }
 0x255   : > { %v435_v36 = vmul.f32 0.0078125, %v433_v35 }
 0x257   : > { %v436_v37 = vsub.f32 %v431_v34, %v435_v36 }
 0x259   : > { %v437_v38 = vmul.f32 %v436_v37, %v436_v37 }
 0x25b   : > { %438 = vadd.xlane.f32.xlu0 %v437_v38 }
 0x2e8   : > { %v439_v39 = vpop.xlane.xlu0 %438 }
 0x2e9   : > { %v440_v40 = vmul.f32 0.0078125, %v439_v39 }
 0x2eb   : > { %v441_v41 = vadd.f32 1e-05, %v440_v40 }
 0x2ed   : > { %757 = vrsqrt.f32 %v441_v41 }
 0x2f7   : > { %v758_v42 = vpop.eup %757 }
 0x2f8   : > { %v443_v44 = vmul.f32 %v758_v42, %v436_v37 }
 0x2fa   : > { %v451_v46 = vmul.f32 %v626_v43, %v443_v44 }
 0x2fc   : > { %v459_v47 = vadd.f32 %v627_v45, %v451_v46 }
 0x2fe   : > { %460 = vst [vmem:[%s355_s2] sm:$0xff] %v459_v47 }
 0x2ff   : > { %944 = shalt.err (!%p941_p6)
}
 0x300   : > { %s945_s8 = scalar_lea.hbm %s1348_s13, 128  ;;  %s949_s11 = scalar_lea.hbm %s1398_s6, 256 }
 0x301   : > { %p946_p11 = scmp.ne.s32.totalorder %s1348_s13, %s945_s8  ;;  %p950_p12 = scmp.lt.u32.totalorder %s1348_s13, %s1398_s6 }
 0x302   : > { %p951_p3 = scmp.lt.u32.totalorder %s949_s11, %s945_s8  ;;  %p953_p0 = scmp.lt.u32.totalorder %s945_s8, %s1348_s13 }
 0x303   : > { %p947_p1 = pnand %p946_p11, %p1426_p2 }
 0x304   : > { %p952_p13 = por %p951_p3, %p950_p12 }
 0x305   : > { %p948_p9 = pneg %p947_p1 }
 0x306   : > { %p954_p4 = por %p953_p0, %p952_p13 }
 0x308   : > { %p955_p10 = pnand %p954_p4, %p948_p9 }
 0x30a   : > { %958 = shalt.err (!%p955_p10)
}
 0x30b   : > { %681 = dma.vmem_to_hbm [thread:$0]  (%p1426_p2), %s1350_s26, 128, %s1348_s13, %s462_s4  }
 0x30c PF: > { %s487_s30 = sand.u32 1, %s1001_s21   ;;  %p1427_p5 = scmp.ne.s32.totalorder %s1416_s20, 0 }
 0x30d   : > { %p1428_p7 = scmp.ge.s32.totalorder %s1013_s24, 2  ;;  %s488_s14 = scalar_lea.sflag [#allocation4], %s487_s30 }
 0x30f   : > { %p704_p8 = pnand %p1428_p7, %p1427_p5 }
 0x311   : > { %996 = dma.done.wait (!%p704_p8), %s488_s14, 128  }
 0x312   : > { %998 = vsyncadd (!%p704_p8), %s488_s14, 4294967168  ;;  %p24_p6 = scmp.ge.s32.totalorder %s1203_s7, 4   ;;  %s1429_s21 = smov %s1005_s22 }
 0x313   : > { %s1430_s22 = smov %s1009_s23  ;;  %s1431_s23 = smov %s1214_s16 }
 0x314   : > { %s1432_s24 = smov %s1203_s7  ;;  %26 = sbr.rel (!%p24_p6) target bundleno = 13 (0xd), region = 118 }
 0x31b   :  { %493 = vsyncpa [#allocation3], 1 }
 0x31c   :  { %495 = vsyncpa [#allocation3 + $0x1], 1 }
 0x31d   :  { %496 = vsyncpa [#allocation6], 1 }
 0x31e   :  { %497 = vsyncpa [#allocation9], 1 }
 0x31f   :  { %499 = vsyncpa [#allocation9 + $0x1], 1 }
 0x320   :  { %500 = vsyncpa [#allocation12], 1 }
 0x321   :  { %501 = vsyncpa [#allocation4], 1 }
 0x322   :  { %503 = vsyncpa [#allocation4 + $0x1], 1 }

// kernel: transformer_forward.36
= control target key start
LH: loop header
LB: loop body
LE: loop exit
PB: predicated region body
PF: predicated region fallthrough
CT: control target
= control target key end

     0   :  { %8 = vsyncpa [#allocation3], 0  ;;  %s1144_s0 = inlined_call_operand.hbm [shape: f32[16,128], index: 0, kind: input, shape index: {}]   ;;  %s1145_s1 = inlined_call_operand.hbm [shape: f32[128,384], index: 1, kind: input, shape index: {}]   ;;  %s1146_s2 = inlined_call_operand.hbm [shape: f32[1,384], index: 2, kind: input, shape index: {}]   ;;  %s1147_s3 = inlined_call_operand.hbm [shape: f32[16,384], index: 3, kind: output, shape index: {}]  }
   0x1   :  { %10 = vsyncpa [#allocation3 + $0x1], 0 }
   0x2   :  { %11 = vsyncpa [#allocation6], 0 }
   0x3   :  { %12 = vsyncpa [#allocation4], 0 }
   0x4   :  { %14 = vsyncpa [#allocation4 + $0x1], 0  ;;  %s880_s12 = smov 0   ;;  %s882_s13 = smov 0  }
   0x5   :  { %s884_s14 = smov 0   ;;  %s886_s15 = smov 0  }
   0x6   :  { %s888_s16 = smov 0   ;;  %s890_s17 = smov 0  }
   0x7 LB: > { %s543_s18 = sadd.s32 4294967295, %s849_s17   ;;  %s544_s19 = sadd.s32 4294967294, %s849_s17   ;;  %s849_s17 = sphi %s890_s17, %s20_s17   ;;  %s845_s16 = sphi %s888_s16, %s1169_s16   ;;  %s841_s15 = sphi %s886_s15, %s1168_s15   ;;  %s837_s14 = sphi %s884_s14, %s1167_s14   ;;  %s833_s13 = sphi %s882_s13, %s1166_s13   ;;  %s829_s12 = sphi %s880_s12, %s1165_s12  }
   0x8   : > { %p52_p0 = scmp.ne.s32.totalorder %s833_s13, %s829_s12  ;;  %p914_p1 = scmp.eq.s32.totalorder %s543_s18, 0 }
   0x9   : > { %p918_p2 = scmp.eq.s32.totalorder %s543_s18, 1  ;;  %p136_p3 = scmp.eq.s32.totalorder %s544_s19, 1 }
   0xa   : > { %s1152_s20 = scalar_select %p914_p1, 1, 0 }
   0xb   : > { %p924_p4 = por %p914_p1, %p52_p0  ;;  %p545_p5 = scmp.ge.s32.totalorder %s849_s17, 1 }
   0xc   : > { %p929_p6 = por %p136_p3, %p52_p0  ;;  %p143_p7 = scmp.lt.s32.totalorder %s849_s17, 3 }
   0xd   : > { %s1154_s22 = scalar_select %p924_p4, 1, 0 }
   0xe   : > { %s1155_s23 = scalar_select %p929_p6, 1, 0 }
   0xf   : > { %p934_p8 = pnand %p545_p5, %p143_p7  ;;  %s851_s25 = smov [#allocation5]  }
  0x10   : > { %s158_s26 = sshll.u32 %s851_s25, 4  ;;  %s852_s28 = smov [#allocation7]   ;;  %s938_s26 = int_to_ptr.vmem [resolvable:$true] %s158_s26 }
  0x11   : > { %p601_p9 = pneg %p934_p8  ;;  %s175_s29 = sshll.u32 %s852_s28, 4  ;;  %s949_s29 = int_to_ptr.vmem [resolvable:$true] %s175_s29 }
  0x12   : > { %s677_s5 = scalar_lea.hbm %s1145_s1, 6144 }
  0x13   : > { %p945_p11 = pnand %p601_p9, %p914_p1  ;;  %p678_p12 = scmp.ne.s32.totalorder %s1145_s1, %s677_s5 }
  0x14   : > { %p684_p5 = scmp.lt.u32.totalorder %s677_s5, %s1145_s1 }
  0x15   : > { %p679_p13 = pneg %p945_p11 }
  0x17   : > { %p680_p0 = pnand %p679_p13, %p678_p12 }
  0x19   : > { %p681_p3 = pneg %p680_p0 }
  0x1b   : > { %p686_p7 = pnand %p684_p5, %p681_p3 }
  0x1d   : > { %689 = shalt.err (!%p686_p7)
}
  0x1e   : > { %s690_s10 = scalar_lea.vmem %s938_s26, 6144  ;;  %p698_p1 = scmp.lt.s32.totalorder %s938_s26, %s938_s26 }
  0x1f   : > { %p691_p9 = scmp.ne.s32.totalorder %s938_s26, %s690_s10  ;;  %p699_p12 = scmp.lt.s32.totalorder %s690_s10, %s690_s10 }
  0x21   : > { %p693_p10 = pnand %p691_p9, %p679_p13  ;;  %p700_p0 = por %p699_p12, %p698_p1 }
  0x23   : > { %p694_p6 = pneg %p693_p10 }
  0x25   : > { %p701_p4 = pnand %p700_p0, %p694_p6 }
  0x27   : > { %704 = shalt.err (!%p701_p4)
}
  0x28   : > { %s853_s11 = smov 384   ;;  %s854_s18 = smov 24  }
  0x29   : > { %604 = dma.hbm_to_vmem [thread:$0]  (!%p945_p11), %s1145_s1, 6144, %s938_s26, [#allocation6], %s853_s11, %s853_s11, %s854_s18  }
  0x2a   : > { %s705_s4 = scalar_lea.hbm %s1146_s2, 48 }
  0x2b   : > { %p706_p1 = scmp.ne.s32.totalorder %s1146_s2, %s705_s4  ;;  %p712_p10 = scmp.lt.u32.totalorder %s705_s4, %s1146_s2 }
  0x2d   : > { %p708_p4 = pnand %p706_p1, %p679_p13 }
  0x2f   : > { %p709_p6 = pneg %p708_p4 }
  0x31   : > { %p714_p3 = pnand %p712_p10, %p709_p6 }
  0x33   : > { %717 = shalt.err (!%p714_p3)
}
  0x34   : > { %s718_s26 = scalar_lea.vmem %s949_s29, 48  ;;  %s725_s9 = scalar_lea.vmem %s949_s29, 64 }
  0x35   : > { %p719_p5 = scmp.ne.s32.totalorder %s949_s29, %s718_s26  ;;  %p726_p12 = scmp.lt.s32.totalorder %s949_s29, %s949_s29 }
  0x36   : > { %p727_p0 = scmp.lt.s32.totalorder %s725_s9, %s718_s26 }
  0x37   : > { %p721_p7 = pnand %p719_p5, %p679_p13 }
  0x38   : > { %p728_p1 = por %p727_p0, %p726_p12 }
  0x39   : > { %p722_p9 = pneg %p721_p7 }
  0x3b   : > { %p729_p4 = pnand %p728_p1, %p722_p9 }
  0x3d   : > { %732 = shalt.err (!%p729_p4)
}
  0x3e   : > { %607 = dma.hbm_to_vmem [thread:$0]  (!%p945_p11), %s1146_s2, 48, %s949_s29, [#allocation6]  }
  0x3f   : > { %s32_s18 = sadd.s32 1, %s845_s16  ;;  %s39_s19 = sadd.s32 1, %s837_s14 }
  0x40   : > { %p34_p13 = scmp.ge.s32.totalorder %s32_s18, 2  ;;  %p46_p6 = scmp.ne.s32.totalorder %s837_s14, %s833_s13 }
  0x41   : > { %p47_p10 = scmp.eq.s32.totalorder %s849_s17, 0  ;;  %p618_p3 = scmp.lt.s32.totalorder %s849_s17, 2 }
  0x42   : > { %s1171_s18 = smov (%p34_p13, %s32_s18), 0  ;;  %p1014_p7 = por %p918_p2, %p46_p6 }
  0x43   : > { %p48_p5 = por %p47_p10, %p46_p6  ;;  %s36_s25 = ssub.s32 %s845_s16, %s1171_s18 }
  0x44   : > { %s1158_s27 = scalar_select %p1014_p7, 1, 0 }
  0x45   : > { %s186_s28 = sand.u32 1, %s837_s14   ;;  %p37_p9 = scmp.eq.s32.totalorder %s36_s25, 0 }
  0x46   : > { %s549_s29 = sshll.u32 %s186_s28, 3  ;;  %s550_s30 = sshll.u32 %s845_s16, 7 }
  0x47   : > { %s1023_s4 = scalar_select %p37_p9, %s837_s14, %s39_s19  }
  0x48   : > { %s1028_s7 = scalar_lea.hbm %s1144_s0, %s550_s30  ;;  %s190_s21 = scalar_lea.vmem [#allocation2], %s549_s29 }
  0x49   : > { %s197_s8 = sshll.u32 %s190_s21, 4  ;;  %p1032_p2 = pnand %p618_p3, %p48_p5  ;;  %s1036_s8 = int_to_ptr.vmem [resolvable:$true] %s197_s8 }
  0x4a   : > { %s187_s9 = scalar_lea.sflag [#allocation3], %s186_s28  ;;  %s733_s10 = scalar_lea.hbm %s1028_s7, 128 }
  0x4b   : > { %p734_p11 = scmp.ne.s32.totalorder %s1028_s7, %s733_s10  ;;  %p735_p12 = pneg %p1032_p2 }
  0x4c   : > { %s738_s25 = scalar_lea.hbm %s1144_s0, 256  ;;  %p739_p4 = scmp.lt.u32.totalorder %s1028_s7, %s1144_s0 }
  0x4d   : > { %p736_p0 = pnand %p735_p12, %p734_p11  ;;  %p740_p13 = scmp.lt.u32.totalorder %s738_s25, %s733_s10 }
  0x4e   : > { %p742_p10 = scmp.lt.u32.totalorder %s733_s10, %s1028_s7 }
  0x4f   : > { %p737_p1 = pneg %p736_p0  ;;  %p741_p6 = por %p740_p13, %p739_p4 }
  0x51   : > { %p743_p3 = por %p742_p10, %p741_p6 }
  0x53   : > { %p744_p5 = pnand %p743_p3, %p737_p1 }
  0x55   : > { %747 = shalt.err (!%p744_p5)
}
  0x56   : > { %s748_s28 = scalar_lea.vmem %s1036_s8, 128  ;;  %s855_s5 = smov [#allocation2]  }
  0x57   : > { %p749_p9 = scmp.ne.s32.totalorder %s1036_s8, %s748_s28  ;;  %s753_s6 = sshll.u32 %s855_s5, 4  ;;  %s754_s6 = int_to_ptr.vmem [resolvable:$false] %s753_s6 }
  0x58   : > { %s755_s21 = scalar_lea.vmem %s754_s6, 256  ;;  %p756_p7 = scmp.lt.s32.totalorder %s1036_s8, %s754_s6 }
  0x59   : > { %p751_p11 = pnand %p749_p9, %p735_p12  ;;  %p757_p4 = scmp.lt.s32.totalorder %s755_s21, %s748_s28 }
  0x5b   : > { %p752_p0 = pneg %p751_p11  ;;  %p758_p13 = por %p757_p4, %p756_p7 }
  0x5d   : > { %p759_p6 = pnand %p758_p13, %p752_p0 }
  0x5f   : > { %762 = shalt.err (!%p759_p6)
}
  0x60   : > { %611 = dma.hbm_to_vmem [thread:$0]  (!%p1032_p2), %s1028_s7, 128, %s1036_s8, %s187_s9  }
  0x61   : > { %206 = sbr.rel (%p934_p8) target bundleno = 373 (0x175), region = 32  ;;  %s1066_s10 = sand.u32 (!%p934_p8), 1, %s833_s13  }
  0x62   : > { %s552_s11 = sshll.u32 (!%p934_p8), %s1066_s10, 3  ;;  %s209_s19 = scalar_lea.sflag (!%p934_p8), [#allocation3], %s1066_s10 }
  0x63   : > { %s1070_s25 = scalar_lea.vmem (!%p934_p8), [#allocation2], %s552_s11  ;;  %p1160_p7 = scmp.ne.s32.totalorder (!%p934_p8), %s1154_s22, 0 }
  0x68   : > { %816 = dma.done.wait (%p1160_p7), %s209_s19, 128  }
  0x69   : > { %818 = vsyncadd (%p1160_p7), %s209_s19, 4294967168  ;;  %p1161_p2 = scmp.ne.s32.totalorder %s1152_s20, 0 }
  0x6b   : > { %820 = dma.done.wait (%p1161_p2), [#allocation6], 6192  }
  0x6c   : > { %822 = vsyncadd (%p1161_p2), [#allocation6], 4294961104  ;;  %v856_v0 = vmov 0.0   ;;  %vm857_vm0 = vmmov 0   ;;  %v858_v1 = vmov 0   ;;  %v250_v2 = vld [vmem:[#allocation5 + $0x8] sm:$0xff] }
  0x6d   : > { %567 = vmatprep.subr.bf16.mxu1 %v856_v0  ;;  %583 = vmatprep.mubr.msk.bf16.mxu1 %vm857_vm0, %v856_v0  ;;  %v253_v3 = vld [vmem:[#allocation5 + $0x20] sm:$0xff]  ;;  %v251_v4 = vld [vmem:[#allocation5 + $0x10] sm:$0xff]  ;;  %v254_v6 = vld [vmem:[#allocation5 + $0x28] sm:$0xff]  ;;  %s587_s20 = smul.u32 24, %s1066_s10  ;;  %p1162_p12 = scmp.ne.s32.totalorder %s1158_s27, 0 }
  0x6e   : > { %370 = vmatprep.mubr.bf16.mxu0 %v858_v1  ;;  %v298_v5 = vpack.c.bf16 %v253_v3, %v250_v2  ;;  %v249_v7 = vld [vmem:[#allocation5] sm:$0xff]  ;;  %v252_v8 = vld [vmem:[#allocation5 + $0x18] sm:$0xff]  ;;  %v299_v9 = vpack.c.bf16 %v254_v6, %v251_v4  ;;  %v259_v12 = vld [vmem:[#allocation5 + $0x50] sm:$0xff]  ;;  %s588_s22 = smul.u32 384, %s841_s15  ;;  %s423_s15 = scalar_lea.sflag [#allocation4], %s1066_s10 }
  0x6f   : > { %v297_v10 = vpack.c.bf16 %v252_v8, %v249_v7  ;;  %v256_v11 = vld [vmem:[#allocation5 + $0x38] sm:$0xff]  ;;  %v257_v13 = vld [vmem:[#allocation5 + $0x40] sm:$0xff]  ;;  %v255_v16 = vld [vmem:[#allocation5 + $0x30] sm:$0xff]  ;;  %s242_s24 = scalar_lea.vmem [#allocation8], %s587_s20  ;;  %s859_s30 = smov [#allocation8]  }
  0x70   : > { %338 = vmatprep.subr.bf16.mxu0 %v298_v5  ;;  %v301_v14 = vpack.c.bf16 %v259_v12, %v256_v11  ;;  %v260_v15 = vld [vmem:[#allocation5 + $0x58] sm:$0xff]  ;;  %v258_v17 = vld [vmem:[#allocation5 + $0x48] sm:$0xff]  ;;  %568 = vmatpush3.bf16.msra.mxu1 %v299_v9  ;;  %v265_v21 = vld [vmem:[#allocation5 + $0x80] sm:$0xff]  ;;  %s439_s7 = sshll.u32 %s242_s24, 4  ;;  %s1095_s9 = scalar_lea.hbm %s1147_s3, %s588_s22  ;;  %s1097_s7 = int_to_ptr.vmem [resolvable:$true] %s439_s7 }
  0x71   : > { %339 = vmatpush1.bf16.msra.mxu0 %v297_v10  ;;  %v302_v18 = vpack.c.bf16 %v260_v15, %v257_v13  ;;  %v300_v19 = vpack.c.bf16 %v258_v17, %v255_v16  ;;  %v262_v20 = vld [vmem:[#allocation5 + $0x68] sm:$0xff]  ;;  %v263_v22 = vld [vmem:[#allocation5 + $0x70] sm:$0xff]  ;;  %569 = vmatprep.subr.bf16.mxu1 %v856_v0  ;;  %v261_v25 = vld [vmem:[#allocation5 + $0x60] sm:$0xff]  ;;  %v323_v13 = vlaneseq  ;;  %s763_s29 = scalar_lea.vmem %s1097_s7, 384  ;;  %s767_s28 = sshll.u32 %s859_s30, 4  ;;  %s768_s28 = int_to_ptr.vmem [resolvable:$false] %s767_s28 }
  0x72   : > { %340 = vmatprep.subr.bf16.mxu0 %v301_v14  ;;  %v304_v23 = vpack.c.bf16 %v265_v21, %v262_v20  ;;  %v266_v24 = vld [vmem:[#allocation5 + $0x88] sm:$0xff]  ;;  %v264_v26 = vld [vmem:[#allocation5 + $0x78] sm:$0xff]  ;;  %v271_v28 = vld [vmem:[#allocation5 + $0xb0] sm:$0xff]  ;;  %p764_p8 = scmp.ne.s32.totalorder %s1097_s7, %s763_s29  ;;  %s769_s5 = scalar_lea.vmem %s768_s28, 768 }
  0x73   : > { %v268_v27 = vld [vmem:[#allocation5 + $0x98] sm:$0xff]  ;;  %v305_v29 = vpack.c.bf16 %v266_v24, %v263_v22  ;;  %v303_v30 = vpack.c.bf16 %v264_v26, %v261_v25  ;;  %v269_v31 = vld [vmem:[#allocation5 + $0xa0] sm:$0xff]  ;;  %v267_v34 = vld [vmem:[#allocation5 + $0x90] sm:$0xff]  ;;  %v324_v14 = vshrl.u32 %v323_v13, 7  ;;  %p770_p3 = scmp.lt.s32.totalorder %s1097_s7, %s768_s28  ;;  %p771_p5 = scmp.lt.s32.totalorder %s769_s5, %s763_s29 }
  0x74   : > { %570 = vmatpush3.bf16.msra.mxu1 %v302_v18  ;;  %v307_v32 = vpack.c.bf16 %v271_v28, %v268_v27  ;;  %v272_v33 = vld [vmem:[#allocation5 + $0xb8] sm:$0xff]  ;;  %v270_v35 = vld [vmem:[#allocation5 + $0xa8] sm:$0xff]  ;;  %v277_v37 = vld [vmem:[#allocation5 + $0xe0] sm:$0xff]  ;;  %p765_p1 = pnand %p764_p8, %p1162_p12 }
  0x75   : > { %341 = vmatpush1.bf16.msra.mxu0 %v300_v19  ;;  %571 = vmatprep.subr.bf16.mxu1 %v856_v0  ;;  %v274_v36 = vld [vmem:[#allocation5 + $0xc8] sm:$0xff]  ;;  %v308_v38 = vpack.c.bf16 %v272_v33, %v269_v31  ;;  %v306_v39 = vpack.c.bf16 %v270_v35, %v267_v34  ;;  %v275_v40 = vld [vmem:[#allocation5 + $0xd0] sm:$0xff]  ;;  %v273_v43 = vld [vmem:[#allocation5 + $0xc0] sm:$0xff]  ;;  %v333_v15 = vsub.s32 2, %v324_v14  ;;  %v325_v16 = vsub.s32 0, %v324_v14  ;;  %p772_p9 = por %p771_p5, %p770_p3 }
  0x76   : > { %342 = vmatprep.subr.bf16.mxu0 %v304_v23  ;;  %v310_v41 = vpack.c.bf16 %v277_v37, %v274_v36  ;;  %v278_v42 = vld [vmem:[#allocation5 + $0xe8] sm:$0xff]  ;;  %v276_v44 = vld [vmem:[#allocation5 + $0xd8] sm:$0xff]  ;;  %v283_v46 = vld [vmem:[#allocation5 + $0x110] sm:$0xff]  ;;  %v329_v18 = vsub.s32 1, %v324_v14  ;;  %p766_p10 = pneg %p765_p1 }
  0x77   : > { %v280_v45 = vld [vmem:[#allocation5 + $0xf8] sm:$0xff]  ;;  %v311_v47 = vpack.c.bf16 %v278_v42, %v275_v40  ;;  %v309_v48 = vpack.c.bf16 %v276_v44, %v273_v43  ;;  %v281_v49 = vld [vmem:[#allocation5 + $0x100] sm:$0xff]  ;;  %v279_v52 = vld [vmem:[#allocation5 + $0xf0] sm:$0xff] }
  0x78   : > { %572 = vmatpush3.bf16.msra.mxu1 %v305_v29  ;;  %v313_v50 = vpack.c.bf16 %v283_v46, %v280_v45  ;;  %v284_v51 = vld [vmem:[#allocation5 + $0x118] sm:$0xff]  ;;  %v282_v53 = vld [vmem:[#allocation5 + $0x108] sm:$0xff]  ;;  %v289_v55 = vld [vmem:[#allocation5 + $0x140] sm:$0xff]  ;;  %p773_p11 = pnand %p772_p9, %p766_p10 }
  0x79   : > { %343 = vmatpush1.bf16.msra.mxu0 %v303_v30  ;;  %573 = vmatprep.subr.bf16.mxu1 %v856_v0  ;;  %v286_v54 = vld [vmem:[#allocation5 + $0x128] sm:$0xff]  ;;  %v314_v56 = vpack.c.bf16 %v284_v51, %v281_v49  ;;  %v312_v57 = vpack.c.bf16 %v282_v53, %v279_v52  ;;  %v287_v58 = vld [vmem:[#allocation5 + $0x130] sm:$0xff]  ;;  %v285_v61 = vld [vmem:[#allocation5 + $0x120] sm:$0xff] }
  0x7a   : > { %344 = vmatprep.subr.bf16.mxu0 %v307_v32  ;;  %v316_v59 = vpack.c.bf16 %v289_v55, %v286_v54  ;;  %v290_v60 = vld [vmem:[#allocation5 + $0x148] sm:$0xff]  ;;  %v288_v62 = vld [vmem:[#allocation5 + $0x138] sm:$0xff]  ;;  %v295_v1 = vld [vmem:[#allocation5 + $0x170] sm:$0xff] }
  0x7b   : > { %v292_v63 = vld [vmem:[#allocation5 + $0x158] sm:$0xff]  ;;  %v317_v2 = vpack.c.bf16 %v290_v60, %v287_v58  ;;  %v315_v3 = vpack.c.bf16 %v288_v62, %v285_v61  ;;  %v293_v4 = vld [vmem:[#allocation5 + $0x160] sm:$0xff]  ;;  %v291_v7 = vld [vmem:[#allocation5 + $0x150] sm:$0xff] }
  0x7c   : > { %574 = vmatpush3.bf16.msra.mxu1 %v308_v38  ;;  %v319_v5 = vpack.c.bf16 %v295_v1, %v292_v63  ;;  %v296_v6 = vld [vmem:[#allocation5 + $0x178] sm:$0xff]  ;;  %v294_v8 = vld [vmem:[#allocation5 + $0x168] sm:$0xff]  ;;  %v321_v17 = vld [vmem:[#allocation7] sm:$0x7] }
  0x7d   : > { %345 = vmatpush1.bf16.msra.mxu0 %v306_v39  ;;  %575 = vmatprep.subr.bf16.mxu1 %v856_v0  ;;  %v320_v9 = vpack.c.bf16 %v296_v6, %v293_v4  ;;  %v318_v10 = vpack.c.bf16 %v294_v8, %v291_v7  ;;  %v247_v11 = vld [vmem:[%s1070_s25] sm:$0xff]  ;;  %v334_v19 = vrot.slane %v321_v17, %v333_v15 }
  0x7e   : > { %346 = vmatprep.subr.bf16.mxu0 %v310_v41  ;;  %v248_v12 = vpack.c.bf16 %v247_v11, %v247_v11  ;;  %v326_v20 = vrot.slane %v321_v17, %v325_v16  ;;  %v330_v21 = vrot.slane %v321_v17, %v329_v18 }
  0x80   : > { %576 = vmatpush3.bf16.msra.mxu1 %v311_v47 }
  0x81   : > { %347 = vmatpush1.bf16.msra.mxu0 %v309_v48  ;;  %577 = vmatprep.subr.bf16.mxu1 %v856_v0 }
  0x82   : > { %348 = vmatprep.subr.bf16.mxu0 %v313_v50 }
  0x84   : > { %578 = vmatpush3.bf16.msra.mxu1 %v314_v56 }
  0x85   : > { %349 = vmatpush1.bf16.msra.mxu0 %v312_v57  ;;  %579 = vmatprep.subr.bf16.mxu1 %v856_v0 }
  0x86   : > { %350 = vmatprep.subr.bf16.mxu0 %v316_v59 }
  0x88   : > { %580 = vmatpush3.bf16.msra.mxu1 %v317_v2 }
  0x89   : > { %351 = vmatpush1.bf16.msra.mxu0 %v315_v3  ;;  %581 = vmatprep.subr.bf16.mxu1 %v856_v0 }
  0x8a   : > { %352 = vmatprep.subr.bf16.mxu0 %v319_v5 }
  0x8c   : > { %582 = vmatpush3.bf16.msra.mxu1 %v320_v9 }
  0x8d   : > { %353 = vmatpush1.bf16.msra.mxu0 %v318_v10 }
  0x8f   : > { %584 = vmatmul.mubr.bf16.vlgmr.msra.gmra.mrb[0].mxu1 %v248_v12 }
  0x90   : > { %371 = vmatmul.mubr.bf16.vlgmr.msra.gmra.mrb[0].mxu0 %v248_v12 }
 0x162   : > { %v413_v0 = vpop.f32.mrb[0].mxu1 }
 0x163   : > { %v372_v22 = vpop.f32.mrb[0].mxu0  ;;  %v414_v23 = vadd.f32 %v413_v0, %v334_v19  ;;  %v585_v25 = vpop.f32.mrb[1].mxu1 }
 0x164   : > { %v373_v24 = vadd.f32 %v372_v22, %v326_v20  ;;  %v374_v26 = vpop.f32.mrb[1].mxu0  ;;  %v416_v28 = vpop.f32.mrb[2].mxu1 }
 0x165   : > { %v375_v27 = vadd.f32 %v374_v26, %v330_v21  ;;  %v376_v29 = vpop.f32.mrb[2].mxu0  ;;  %421 = vst [vmem:[%s242_s24 + $0x10] sm:$0xff] %v414_v23  ;;  %v586_v30 = vpop.f32.mrb[3].mxu1 }
 0x166   : > { %419 = vst [vmem:[%s242_s24] sm:$0xff] %v373_v24  ;;  %v377_v31 = vpop.f32.mrb[3].mxu0 }
 0x167   : > { %420 = vst [vmem:[%s242_s24 + $0x8] sm:$0xff] %v375_v27 }
 0x168   : > { %776 = shalt.err (!%p773_p11)
}
 0x169   : > { %s777_s6 = scalar_lea.hbm %s1095_s9, 384  ;;  %s781_s11 = scalar_lea.hbm %s1147_s3, 768 }
 0x16a   : > { %p778_p0 = scmp.ne.s32.totalorder %s1095_s9, %s777_s6  ;;  %p782_p6 = scmp.lt.u32.totalorder %s1095_s9, %s1147_s3 }
 0x16b   : > { %p783_p7 = scmp.lt.u32.totalorder %s781_s11, %s777_s6  ;;  %p785_p8 = scmp.lt.u32.totalorder %s777_s6, %s1095_s9 }
 0x16c   : > { %p779_p4 = pnand %p778_p0, %p1162_p12 }
 0x16d   : > { %p784_p2 = por %p783_p7, %p782_p6 }
 0x16e   : > { %p780_p13 = pneg %p779_p4 }
 0x16f   : > { %p786_p1 = por %p785_p8, %p784_p2 }
 0x171   : > { %p787_p10 = pnand %p786_p1, %p780_p13 }
 0x173   : > { %790 = shalt.err (!%p787_p10)
}
 0x174   : > { %599 = dma.vmem_to_hbm [thread:$0]  (%p1162_p12), %s1097_s7, 384, %s1095_s9, %s423_s15  }
 0x175 PF: > { %s451_s20 = sand.u32 1, %s829_s12   ;;  %p1163_p3 = scmp.ne.s32.totalorder %s1155_s23, 0 }
 0x176   : > { %p1164_p5 = scmp.ge.s32.totalorder %s849_s17, 2  ;;  %s452_s22 = scalar_lea.sflag [#allocation4], %s451_s20 }
 0x178   : > { %p613_p9 = pnand %p1164_p5, %p1163_p3 }
 0x17a   : > { %824 = dma.done.wait (!%p613_p9), %s452_s22, 384  }
 0x17b   : > { %826 = vsyncadd (!%p613_p9), %s452_s22, 4294966912  ;;  %s20_s17 = sadd.s32 1, %s849_s17   ;;  %s1165_s12 = smov %s833_s13 }
 0x17c   : > { %p17_p11 = scmp.ge.s32.totalorder %s20_s17, 4   ;;  %s1166_s13 = smov %s837_s14 }
 0x17d   : > { %s1167_s14 = smov %s1023_s4  ;;  %s1168_s15 = smov %s845_s16 }
 0x17e   : > { %s1169_s16 = smov %s1171_s18  ;;  %19 = sbr.rel (!%p17_p11) target bundleno = 7 (0x7), region = 87 }
 0x185   :  { %457 = vsyncpa [#allocation3], 1 }
 0x186   :  { %459 = vsyncpa [#allocation3 + $0x1], 1 }
 0x187   :  { %460 = vsyncpa [#allocation6], 1 }
 0x188   :  { %461 = vsyncpa [#allocation4], 1 }
 0x189   :  { %463 = vsyncpa [#allocation4 + $0x1], 1 }

// kernel: transformer_forward.37
= control target key start
LH: loop header
LB: loop body
LE: loop exit
PB: predicated region body
PF: predicated region fallthrough
CT: control target
= control target key end

     0   :  { %s1610_s0 = inlined_call_operand.hbm [shape: f32[2,8,384], index: 0, kind: input, shape index: {}, may-alias: {0,1,2}]   ;;  %s1611_s1 = inlined_call_operand.hbm [shape: f32[2,8,384], index: 1, kind: input, shape index: {}, may-alias: {0,1,2}]   ;;  %s1612_s2 = inlined_call_operand.hbm [shape: f32[2,8,384], index: 2, kind: input, shape index: {}, may-alias: {0,1,2}]   ;;  %s1613_s3 = inlined_call_operand.hbm [shape: f32[2,8,128], index: 3, kind: output, shape index: {}]  }
   0x1   :  { %1622 = sst [smem:[#allocation16_spill]] %s1610_s0 }
   0x2   :  { %1623 = sst [smem:[#allocation17_spill]] %s1611_s1 }
   0x3   :  { %8 = vsyncpa [#allocation3], 0 }
   0x4   :  { %10 = vsyncpa [#allocation3 + $0x1], 0 }
   0x5   :  { %11 = vsyncpa [#allocation6], 0 }
   0x6   :  { %13 = vsyncpa [#allocation6 + $0x1], 0 }
   0x7   :  { %14 = vsyncpa [#allocation4], 0 }
   0x8   :  { %16 = vsyncpa [#allocation4 + $0x1], 0  ;;  %s1288_s12 = smov 0   ;;  %s1290_s13 = smov 0  }
   0x9   :  { %s1292_s14 = smov 0   ;;  %s1294_s15 = smov 0  }
   0xa   :  { %s1296_s16 = smov 0   ;;  %s1298_s17 = smov 0  }
   0xb LB: > { %1624 = sst [smem:[#allocation12_spill]] %s1245_s14  ;;  %s1319_s18 = sadd.s32 4294967295, %s1257_s17   ;;  %s1257_s17 = sphi %s1298_s17, %s22_s17   ;;  %s1253_s16 = sphi %s1296_s16, %s1649_s16   ;;  %s1249_s15 = sphi %s1294_s15, %s1648_s15   ;;  %s1245_s14 = sphi %s1292_s14, %s1647_s14   ;;  %s1241_s13 = sphi %s1290_s13, %s1651_s13   ;;  %s1237_s12 = sphi %s1288_s12, %s1650_s12  }
   0xc   : > { %1625 = sst [smem:[#allocation13_spill]] %s1253_s16  ;;  %s895_s19 = sadd.s32 4294967294, %s1257_s17  }
   0xd   : > { %s34_s20 = sadd.s32 1, %s1253_s16  ;;  %s43_s21 = sadd.s32 1, %s1245_s14 }
   0xe   : > { %p36_p0 = scmp.ge.s32.totalorder %s34_s20, 2  ;;  %p50_p1 = scmp.ne.s32.totalorder %s1245_s14, %s1241_s13 }
   0xf   : > { %p51_p2 = scmp.eq.s32.totalorder %s1257_s17, 0  ;;  %p56_p3 = scmp.ne.s32.totalorder %s1241_s13, %s1237_s12 }
  0x10   : > { %s1653_s20 = smov (%p36_p0, %s34_s20), 0  ;;  %p57_p5 = scmp.eq.s32.totalorder %s1319_s18, 0 }
  0x11   : > { %1626 = sst [smem:[#allocation14_spill]] %s1653_s20  ;;  %p1331_p4 = por %p51_p2, %p50_p1 }
  0x12   : > { %s38_s23 = ssub.s32 %s1253_s16, %s1653_s20  ;;  %p134_p6 = scmp.eq.s32.totalorder %s1319_s18, 1 }
  0x13   : > { %p41_p7 = scmp.eq.s32.totalorder %s38_s23, 0  ;;  %p1339_p8 = por %p57_p5, %p56_p3 }
  0x14   : > { %p1343_p9 = por %p134_p6, %p50_p1  ;;  %p140_p10 = scmp.eq.s32.totalorder %s895_s19, 1 }
  0x15   : > { %s1628_s24 = scalar_select %p1339_p8, 1, 0 }
  0x16   : > { %s1629_s25 = scalar_select %p1343_p9, 1, 0 }
  0x17   : > { %s1348_s26 = scalar_select %p41_p7, %s1245_s14, %s43_s21  }
  0x18   : > { %p1350_p11 = por %p140_p10, %p56_p3  ;;  %p1008_p13 = scmp.lt.s32.totalorder %s1257_s17, 2 }
  0x19   : > { %1630 = sst [smem:[#allocation15_spill]] %s1348_s26  ;;  %s1614_s28 = sand.u32 1, %s1245_s14  }
  0x1a   : > { %s1631_s27 = scalar_select %p1350_p11, 1, 0 }
  0x1b   : > { %s1359_s29 = sshll.u32 %s1614_s28, 3  ;;  %s1362_s30 = smul.u32 384, %s1253_s16 }
  0x1c   : > { %p1366_p0 = pnand %p1008_p13, %p1331_p4  ;;  %s181_s5 = sand.u32 1, %s1257_s17  }
  0x1d   : > { %s1633_s1 = sld [smem:[#allocation17_spill]]  ;;  %s185_s10 = scalar_lea.vmem [#allocation5], %s1359_s29 }
  0x1e   : > { %s1632_s4 = scalar_select %p1366_p0, 1, 0 }
  0x1f   : > { %s194_s11 = sshll.u32 %s185_s10, 4  ;;  %s1381_s19 = scalar_lea.sflag [#allocation6], %s181_s5  ;;  %s1378_s11 = int_to_ptr.vmem [resolvable:$true] %s194_s11 }
  0x20   : > { %p1386_p3 = pneg %p1366_p0 }
  0x23   : > { %s805_s8 = scalar_lea.hbm %s1633_s1, %s1362_s30  ;;  %s1084_s7 = scalar_lea.hbm %s1633_s1, 768 }
  0x24   : > { %s1375_s9 = scalar_lea.hbm %s805_s8, 128  ;;  %s1109_s21 = scalar_lea.hbm %s805_s8, 256 }
  0x25   : > { %p1080_p2 = scmp.ne.s32.totalorder %s1375_s9, %s1109_s21  ;;  %p1085_p6 = scmp.lt.u32.totalorder %s1375_s9, %s1633_s1 }
  0x26   : > { %p1086_p7 = scmp.lt.u32.totalorder %s1084_s7, %s1109_s21  ;;  %p1088_p13 = scmp.lt.u32.totalorder %s1109_s21, %s1375_s9 }
  0x27   : > { %p1082_p4 = pnand %p1386_p3, %p1080_p2 }
  0x28   : > { %p1087_p10 = por %p1086_p7, %p1085_p6 }
  0x29   : > { %p1083_p5 = pneg %p1082_p4 }
  0x2a   : > { %p1089_p12 = por %p1088_p13, %p1087_p10 }
  0x2c   : > { %p1090_p1 = pnand %p1089_p12, %p1083_p5 }
  0x2e   : > { %1093 = shalt.err (!%p1090_p1)
}
  0x2f   : > { %s1094_s5 = scalar_lea.vmem %s1378_s11, 128  ;;  %s1259_s8 = smov [#allocation5]  }
  0x30   : > { %p1095_p2 = scmp.ne.s32.totalorder %s1378_s11, %s1094_s5  ;;  %s1099_s23 = sshll.u32 %s1259_s8, 4  ;;  %s1100_s23 = int_to_ptr.vmem [resolvable:$false] %s1099_s23 }
  0x31   : > { %s1101_s28 = scalar_lea.vmem %s1100_s23, 256  ;;  %p1102_p9 = scmp.lt.s32.totalorder %s1378_s11, %s1100_s23 }
  0x32   : > { %p1097_p4 = pnand %p1095_p2, %p1386_p3  ;;  %p1103_p8 = scmp.lt.s32.totalorder %s1101_s28, %s1094_s5 }
  0x34   : > { %p1098_p11 = pneg %p1097_p4  ;;  %p1104_p6 = por %p1103_p8, %p1102_p9 }
  0x36   : > { %p1105_p7 = pnand %p1104_p6, %p1098_p11 }
  0x38   : > { %1108 = shalt.err (!%p1105_p7)
}
  0x39   : > { %1000 = dma.hbm_to_vmem [thread:$0]  (!%p1366_p0), %s1375_s9, 128, %s1378_s11, %s1381_s19  }
  0x3a   : > { %p219_p12 = scmp.lt.s32.totalorder %s1257_s17, 3  ;;  %p1635_p1 = scmp.ge.s32.totalorder %s1257_s17, 1 }
  0x3b   : > { %s1637_s0 = sld [smem:[#allocation16_spill]]  ;;  %s164_s5 = scalar_lea.vmem [#allocation2], %s1359_s29 }
  0x3c   : > { %p1413_p5 = pnand %p1635_p1, %p219_p12  ;;  %s174_s8 = sshll.u32 %s164_s5, 4  ;;  %s175_s8 = int_to_ptr.vmem [resolvable:$true] %s174_s8 }
  0x3d   : > { %s1638_s23 = sand.u32 1, %s1245_s14  }
  0x3e   : > { %s1636_s21 = scalar_select %p1413_p5, 1, 0 }
  0x3f   : > { %s161_s9 = scalar_lea.sflag [#allocation3], %s1638_s23 }
  0x41   : > { %s1421_s10 = scalar_lea.hbm %s1637_s0, %s1362_s30  ;;  %s1115_s6 = scalar_lea.hbm %s1637_s0, 768 }
  0x42   : > { %s1110_s11 = scalar_lea.hbm %s1421_s10, 128  ;;  %p1116_p10 = scmp.lt.u32.totalorder %s1421_s10, %s1637_s0 }
  0x43   : > { %p1111_p8 = scmp.ne.s32.totalorder %s1421_s10, %s1110_s11  ;;  %p1117_p13 = scmp.lt.u32.totalorder %s1115_s6, %s1110_s11 }
  0x44   : > { %p1119_p4 = scmp.lt.u32.totalorder %s1110_s11, %s1421_s10 }
  0x45   : > { %p1113_p9 = pnand %p1111_p8, %p1386_p3  ;;  %p1118_p2 = por %p1117_p13, %p1116_p10 }
  0x47   : > { %p1114_p11 = pneg %p1113_p9  ;;  %p1120_p6 = por %p1119_p4, %p1118_p2 }
  0x49   : > { %p1121_p7 = pnand %p1120_p6, %p1114_p11 }
  0x4b   : > { %1124 = shalt.err (!%p1121_p7)
}
  0x4c   : > { %s1125_s5 = scalar_lea.vmem %s175_s8, 128  ;;  %s1260_s23 = smov [#allocation2]  }
  0x4d   : > { %p1126_p12 = scmp.ne.s32.totalorder %s175_s8, %s1125_s5  ;;  %s1130_s16 = sshll.u32 %s1260_s23, 4  ;;  %s1131_s16 = int_to_ptr.vmem [resolvable:$false] %s1130_s16 }
  0x4e   : > { %s1132_s1 = scalar_lea.vmem %s1131_s16, 256  ;;  %p1133_p9 = scmp.lt.s32.totalorder %s175_s8, %s1131_s16 }
  0x4f   : > { %p1128_p1 = pnand %p1126_p12, %p1386_p3  ;;  %p1134_p5 = scmp.lt.s32.totalorder %s1132_s1, %s1125_s5 }
  0x51   : > { %p1129_p8 = pneg %p1128_p1  ;;  %p1135_p0 = por %p1134_p5, %p1133_p9 }
  0x53   : > { %p1136_p10 = pnand %p1135_p0, %p1129_p8 }
  0x55   : > { %1139 = shalt.err (!%p1136_p10)
}
  0x56   : > { %p1639_p13 = scmp.ne.s32.totalorder %s1632_s4, 0  ;;  %s812_s28 = scalar_lea.hbm %s1612_s2, %s1362_s30 }
  0x57   : > { %s205_s6 = scalar_lea.vmem [#allocation7], %s1359_s29  ;;  %s813_s23 = scalar_lea.hbm %s812_s28, 256 }
  0x58   : > { %997 = dma.hbm_to_vmem [thread:$0]  (!%p1639_p13), %s1421_s10, 128, %s175_s8, %s161_s9  }
  0x59   : > { %s214_s7 = sshll.u32 %s205_s6, 4  ;;  %s1170_s16 = scalar_lea.hbm %s812_s28, 384  ;;  %s215_s7 = int_to_ptr.vmem [resolvable:$true] %s214_s7 }
  0x5a   : > { %p1141_p11 = scmp.ne.s32.totalorder %s813_s23, %s1170_s16  ;;  %s1145_s0 = scalar_lea.hbm %s1612_s2, 768 }
  0x5b   : > { %p1146_p2 = scmp.lt.u32.totalorder %s813_s23, %s1612_s2  ;;  %p1147_p4 = scmp.lt.u32.totalorder %s1145_s0, %s1170_s16 }
  0x5c   : > { %p1143_p0 = pnand %p1141_p11, %p1386_p3  ;;  %p1149_p7 = scmp.lt.u32.totalorder %s1170_s16, %s813_s23 }
  0x5d   : > { %p1148_p6 = por %p1147_p4, %p1146_p2 }
  0x5e   : > { %p1144_p5 = pneg %p1143_p0 }
  0x5f   : > { %p1150_p12 = por %p1149_p7, %p1148_p6 }
  0x61   : > { %p1151_p1 = pnand %p1150_p12, %p1144_p5 }
  0x63   : > { %1154 = shalt.err (!%p1151_p1)
}
  0x64   : > { %s1155_s29 = scalar_lea.vmem %s215_s7, 128  ;;  %s1261_s30 = smov [#allocation7]  }
  0x65   : > { %p1156_p8 = scmp.ne.s32.totalorder %s215_s7, %s1155_s29  ;;  %s1160_s10 = sshll.u32 %s1261_s30, 4  ;;  %s1161_s10 = int_to_ptr.vmem [resolvable:$false] %s1160_s10 }
  0x66   : > { %s1162_s8 = scalar_lea.vmem %s1161_s10, 256  ;;  %p1163_p11 = scmp.lt.s32.totalorder %s215_s7, %s1161_s10 }
  0x67   : > { %p1158_p9 = pnand %p1156_p8, %p1386_p3  ;;  %p1164_p0 = scmp.lt.s32.totalorder %s1162_s8, %s1155_s29 }
  0x69   : > { %p1159_p10 = pneg %p1158_p9  ;;  %p1165_p13 = por %p1164_p0, %p1163_p11 }
  0x6b   : > { %p1166_p2 = pnand %p1165_p13, %p1159_p10 }
  0x6d   : > { %1169 = shalt.err (!%p1166_p2)
}
  0x6e   : > { %p1640_p4 = scmp.ne.s32.totalorder %s1632_s4, 0  ;;  %p1641_p5 = scmp.ne.s32.totalorder %s1636_s21, 0 }
  0x6f   : > { %s1464_s0 = sand.u32 (!%p1641_p5), 1, %s1241_s13   ;;  %p1642_p3 = scmp.ne.s32.totalorder (!%p1641_p5), %s1628_s24, 0 }
  0x70   : > { %1003 = dma.hbm_to_vmem [thread:$0]  (!%p1640_p4), %s813_s23, 128, %s215_s7, %s1381_s19  }
  0x71   : > { %223 = sbr.rel (%p1641_p5) target bundleno = 1597 (0x63d), region = 32  ;;  %s1467_s14 = sshll.u32 (!%p1641_p5), %s1464_s0, 3 }
  0x72   : > { %s226_s26 = scalar_lea.sflag (!%p1641_p5), [#allocation3], %s1464_s0  ;;  %s229_s22 = scalar_lea.vmem (!%p1641_p5), [#allocation2], %s1467_s14 }
  0x78   : > { %1224 = dma.done.wait (%p1642_p3), %s226_s26, 128  }
  0x79   : > { %1226 = vsyncadd (%p1642_p3), %s226_s26, 4294967168  ;;  %s234_s4 = sand.u32 1, %s1319_s18   ;;  %s238_s21 = scalar_lea.vmem [#allocation5], %s1467_s14 }
  0x7a   : > { %s235_s19 = scalar_lea.sflag [#allocation6], %s234_s4 }
  0x7b   : > { %1228 = dma.done.wait (%p1642_p3), %s235_s19, 256  }
  0x7c   : > { %1230 = vsyncadd (%p1642_p3), %s235_s19, 4294967040  ;;  %v1262_v0 = vmov 0.0   ;;  %vm1263_vm0 = vmmov 0   ;;  %v282_v1 = vld [vmem:[%s238_s21] sm:$0xff]  ;;  %vm287_vm1 = vcmask 261120   ;;  %v281_v4 = vld [vmem:[%s229_s22] sm:$0xff] }
  0x7d   : > { %937 = vmatprep.subr.bf16.mxu0 %v1262_v0  ;;  %939 = vmatprep.mubr.msk.bf16.mxu0 %vm1263_vm0, %v1262_v0  ;;  %v285_v2 = vpack.c.bf16 %v282_v1, %v282_v1  ;;  %v284_v5 = vpack.c.bf16 %v281_v4, %v281_v4  ;;  %vm335_vm2 = vcmask 64512   ;;  %s1264_s18 = smov 96   ;;  %s1265_s24 = smov 64   ;;  %vm351_vm3 = vcmask 1043456  }
  0x7e   : > { %943 = vmatprep.subr.bf16.mxu1 %v1262_v0  ;;  %945 = vmatprep.mubr.msk.bf16.mxu1 %vm1263_vm0, %v1262_v0  ;;  %s1266_s9 = smov 32   ;;  %s247_s20 = scalar_lea.vmem [#allocation7], %s1467_s14  ;;  %vm514_vm4 = vcmask 523520   ;;  %vm631_vm5 = vcmask 785920   ;;  %vm748_vm6 = vcmask 1048320  }
  0x7f   : > { %v292_v3 = vsel %vm287_vm1, %v285_v2, 0  ;;  %400 = vrot.lane.b32.xlu1 %v285_v2, %s1264_s18  ;;  %v283_v17 = vld [vmem:[%s247_s20] sm:$0xff]  ;;  %s1522_s11 = scalar_lea.vmem [#allocation8], %s1467_s14  ;;  %s918_s28 = sshll.u32 %s1249_s15, 7 }
  0x80   : > { %938 = vmatpush3.bf16.xpose.msra.mxu0 %v292_v3  ;;  %v1500_v18 = vpack.c.bf16 %v283_v17, %v283_v17  ;;  %s765_s6 = sshll.u32 %s1522_s11, 4  ;;  %s1560_s16 = scalar_lea.hbm %s1613_s3, %s918_s28  ;;  %s1562_s6 = int_to_ptr.vmem [resolvable:$true] %s765_s6 }
  0x81   : > { %955 = vmatprep.subr.bf16.mxu0 %v1262_v0  ;;  %s751_s5 = scalar_lea.sflag [#allocation4], %s1464_s0  ;;  %s1171_s1 = scalar_lea.vmem %s1562_s6, 128 }
  0x82   : > { %v353_v19 = vsel %vm351_vm3, %v1500_v18, 0  ;;  %p1172_p13 = scmp.ne.s32.totalorder %s1562_s6, %s1171_s1  ;;  %p1643_p6 = scmp.ne.s32.totalorder %s1629_s25, 0 }
  0x83   : > { %397 = vrot.lane.b32.xlu1 %v284_v5, %s1264_s18  ;;  %944 = vmatpush3.bf16.msra.mxu1 %v353_v19  ;;  %s1267_s15 = smov [#allocation8]  }
  0x84   : > { %949 = vmatprep.subr.bf16.mxu1 %v1262_v0  ;;  %p1173_p7 = pnand %p1172_p13, %p1643_p6  ;;  %s1175_s29 = sshll.u32 %s1267_s15, 4  ;;  %s1176_s29 = int_to_ptr.vmem [resolvable:$false] %s1175_s29 }
  0x85   : > { %s1177_s30 = scalar_lea.vmem %s1176_s29, 256  ;;  %p1178_p1 = scmp.lt.s32.totalorder %s1562_s6, %s1176_s29 }
  0x86   : > { %p1174_p12 = pneg %p1173_p7  ;;  %p1179_p8 = scmp.lt.s32.totalorder %s1177_s30, %s1171_s1 }
  0x87   : > { %940 = vmatmul.mubr.msk.bf16.vlgmr.msra.gmra.mrb[0].mxu0 %vm287_vm1, %v284_v5  ;;  %516 = vrot.lane.b32.xlu1 %v284_v5, %s1265_s24 }
  0x88   : > { %957 = vmatprep.mubr.msk.bf16.mxu0 %vm1263_vm0, %v1262_v0  ;;  %p1180_p9 = por %p1179_p8, %p1178_p1 }
  0x8a   : > { %p1181_p10 = pnand %p1180_p9, %p1174_p12 }
  0x8b   : > { %635 = vrot.lane.b32.xlu1 %v285_v2, %s1266_s9 }
  0x8f   : > { %633 = vrot.lane.b32.xlu1 %v284_v5, %s1266_s9 }
  0xf1   : > { %v401_v22 = vpop.permute.xlu1 %400 }
  0xf2   : > { %v406_v24 = vsel %vm287_vm1, %v401_v22, 0 }
  0xf5   : > { %v398_v26 = vpop.permute.xlu1 %397 }
  0xf9   : > { %v517_v28 = vpop.permute.xlu1 %516 }
  0xfd   : > { %v636_v30 = vpop.permute.xlu1 %635 }
  0xfe   : > { %v641_v31 = vsel %vm287_vm1, %v636_v30, 0 }
 0x101   : > { %v634_v32 = vpop.permute.xlu1 %633 }
 0x15a   : > { %v328_v6 = vpop.f32.mrb[0].mxu0 }
 0x15b   : > { %v334_v7 = vmul.f32 0.17677669, %v328_v6  ;;  %v941_v8 = vpop.f32.mrb[1].mxu0 }
 0x15c   : > { %v331_v9 = vpop.f32.mrb[2].mxu0 }
 0x15d   : > { %v942_v10 = vpop.f32.mrb[3].mxu0  ;;  %v336_v11 = vsel %vm335_vm2, %v334_v7, -inf }
 0x15e   : > { %337 = vmax.xlane.f32.xlu0 %v336_v11 }
 0x1eb   : > { %v338_v12 = vpop.xlane.xlu0 %337 }
 0x1ec   : > { %v339_v13 = vsub.f32 %v334_v7, %v338_v12 }
 0x1ee   : > { %v340_v14 = vmul.f32 1.442695, %v339_v13 }
 0x1f0   : > { %1063 = vpow2.f32 %v340_v14 }
 0x1fa   : > { %v1064_v15 = vpop.eup %1063 }
 0x1fb   : > { %v342_v16 = vsel %vm335_vm2, %v1064_v15, 0.0 }
 0x1fc   : > { %343 = vadd.xlane.f32.xlu0 %v342_v16 }
 0x212   : > { %518 = vrot.lane.b32.xlu0 %v285_v2, %s1265_s24 }
 0x289   : > { %v344_v20 = vpop.xlane.xlu0 %343 }
 0x28a   : > { %1065 = vrcp.f32 %v344_v20 }
 0x28d   : > { %v519_v27 = vpop.permute.xlu0 %518 }
 0x28e   : > { %v524_v29 = vsel %vm287_vm1, %v519_v27, 0 }
 0x294   : > { %v1066_v21 = vpop.eup %1065 }
 0x295   : > { %v346_v23 = vmul.f32 %v1066_v21, %v1064_v15 }
 0x297   : > { %v347_v25 = vpack.c.bf16 %v346_v23, %v346_v23 }
 0x299   : > { %946 = vmatmul.mubr.msk.bf16.vlgmr.msra.gmra.mrb[0].mxu1 %vm335_vm2, %v347_v25 }
 0x29a   : > { %950 = vmatpush3.bf16.xpose.msra.mxu1 %v406_v24  ;;  %951 = vmatprep.mubr.msk.bf16.mxu1 %vm1263_vm0, %v1262_v0 }
 0x29b   : > { %961 = vmatprep.subr.bf16.mxu1 %v1262_v0 }
 0x2a1   : > { %952 = vmatmul.mubr.msk.bf16.vlgmr.msra.gmra.mrb[4].mxu1 %vm287_vm1, %v398_v26 }
 0x2a2   : > { %962 = vmatpush3.bf16.xpose.msra.mxu1 %v524_v29  ;;  %963 = vmatprep.mubr.msk.bf16.mxu1 %vm1263_vm0, %v1262_v0 }
 0x2a3   : > { %973 = vmatprep.subr.bf16.mxu1 %v1262_v0 }
 0x2a9   : > { %964 = vmatmul.mubr.msk.bf16.vlgmr.msra.gmra.mrb[8].mxu1 %vm287_vm1, %v517_v28 }
 0x2aa   : > { %974 = vmatpush3.bf16.xpose.msra.mxu1 %v641_v31  ;;  %975 = vmatprep.mubr.msk.bf16.mxu1 %vm1263_vm0, %v1262_v0 }
 0x2b1   : > { %976 = vmatmul.mubr.msk.bf16.vlgmr.msra.gmra.mrb[12].mxu1 %vm287_vm1, %v634_v32 }
 0x36c   : > { %v389_v33 = vpop.f32.mrb[0].mxu1 }
 0x36d   : > { %395 = vst.msk [vmem:[%s1522_s11] sm:$0xff] %vm287_vm1, %v389_v33  ;;  %v947_v34 = vpop.f32.mrb[1].mxu1 }
 0x36e   : > { %v392_v35 = vpop.f32.mrb[2].mxu1 }
 0x36f   : > { %v948_v36 = vpop.f32.mrb[3].mxu1 }
 0x374   : > { %v442_v37 = vpop.f32.mrb[4].mxu1 }
 0x375   : > { %v448_v38 = vmul.f32 0.17677669, %v442_v37  ;;  %v953_v39 = vpop.f32.mrb[5].mxu1 }
 0x376   : > { %v445_v40 = vpop.f32.mrb[6].mxu1 }
 0x377   : > { %v954_v41 = vpop.f32.mrb[7].mxu1  ;;  %v449_v42 = vsel %vm335_vm2, %v448_v38, -inf }
 0x378   : > { %450 = vmax.xlane.f32.xlu1 %v449_v42 }
 0x37c   : > { %v560_v43 = vpop.f32.mrb[8].mxu1 }
 0x37d   : > { %v566_v44 = vmul.f32 0.17677669, %v560_v43  ;;  %v965_v45 = vpop.f32.mrb[9].mxu1 }
 0x37e   : > { %v563_v46 = vpop.f32.mrb[10].mxu1 }
 0x37f   : > { %v567_v47 = vsel %vm335_vm2, %v566_v44, -inf  ;;  %v966_v48 = vpop.f32.mrb[11].mxu1 }
 0x380   : > { %568 = vmax.xlane.f32.xlu0 %v567_v47 }
 0x384   : > { %v677_v49 = vpop.f32.mrb[12].mxu1 }
 0x385   : > { %v683_v50 = vmul.f32 0.17677669, %v677_v49  ;;  %v977_v51 = vpop.f32.mrb[13].mxu1 }
 0x386   : > { %v680_v52 = vpop.f32.mrb[14].mxu1 }
 0x387   : > { %v684_v53 = vsel %vm335_vm2, %v683_v50, -inf  ;;  %v978_v54 = vpop.f32.mrb[15].mxu1 }
 0x388   : > { %685 = vmax.xlane.f32.xlu1 %v684_v53 }
 0x405   : > { %v451_v55 = vpop.xlane.xlu1 %450 }
 0x406   : > { %v452_v56 = vsub.f32 %v448_v38, %v451_v55 }
 0x408   : > { %v453_v57 = vmul.f32 1.442695, %v452_v56 }
 0x40a   : > { %1067 = vpow2.f32 %v453_v57 }
 0x40d   : > { %v569_v58 = vpop.xlane.xlu0 %568 }
 0x40e   : > { %v570_v59 = vsub.f32 %v566_v44, %v569_v58 }
 0x410   : > { %v571_v60 = vmul.f32 1.442695, %v570_v59 }
 0x412   : > { %1069 = vpow2.f32 %v571_v60 }
 0x414   : > { %v1068_v61 = vpop.eup %1067 }
 0x415   : > { %v455_v62 = vsel %vm335_vm2, %v1068_v61, 0.0  ;;  %v686_v2 = vpop.xlane.xlu1 %685 }
 0x416   : > { %456 = vadd.xlane.f32.xlu1 %v455_v62  ;;  %v687_v3 = vsub.f32 %v683_v50, %v686_v2 }
 0x418   : > { %v688_v4 = vmul.f32 1.442695, %v687_v3 }
 0x41a   : > { %1071 = vpow2.f32 %v688_v4 }
 0x41c   : > { %v1070_v63 = vpop.eup %1069 }
 0x41d   : > { %v573_v1 = vsel %vm335_vm2, %v1070_v63, 0.0 }
 0x41e   : > { %574 = vadd.xlane.f32.xlu0 %v573_v1 }
 0x424   : > { %v1072_v5 = vpop.eup %1071 }
 0x425   : > { %v690_v6 = vsel %vm335_vm2, %v1072_v5, 0.0 }
 0x427   : > { %579 = vrot.lane.b32.xlu1 %v1500_v18, %s1265_s24 }
 0x434   : > { %462 = vrot.lane.b32.xlu0 %v1500_v18, %s1264_s18 }
 0x44b   : > { %691 = vadd.xlane.f32.xlu1 %v690_v6 }
 0x45c   : > { %696 = vrot.lane.b32.xlu1 %v1500_v18, %s1266_s9 }
 0x4a3   : > { %v457_v7 = vpop.xlane.xlu1 %456 }
 0x4a4   : > { %1073 = vrcp.f32 %v457_v7 }
 0x4a7   : > { %v580_v13 = vpop.permute.xlu1 %579 }
 0x4a8   : > { %v585_v15 = vsel %vm351_vm3, %v580_v13, 0 }
 0x4ab   : > { %v575_v8 = vpop.xlane.xlu0 %574 }
 0x4ac   : > { %1075 = vrcp.f32 %v575_v8 }
 0x4ae   : > { %v1074_v9 = vpop.eup %1073 }
 0x4af   : > { %v459_v10 = vmul.f32 %v1074_v9, %v1068_v61  ;;  %v463_v11 = vpop.permute.xlu0 %462 }
 0x4b0   : > { %v468_v12 = vsel %vm351_vm3, %v463_v11, 0 }
 0x4b1   : > { %956 = vmatpush3.bf16.msra.mxu0 %v468_v12  ;;  %v460_v14 = vpack.c.bf16 %v459_v10, %v459_v10 }
 0x4b2   : > { %967 = vmatprep.subr.bf16.mxu0 %v1262_v0 }
 0x4b4   : > { %958 = vmatmul.mubr.msk.bf16.vlgmr.msra.gmra.mrb[4].mxu0 %vm335_vm2, %v460_v14 }
 0x4b5   : > { %968 = vmatpush3.bf16.msra.mxu0 %v585_v15  ;;  %969 = vmatprep.mubr.msk.bf16.mxu0 %vm1263_vm0, %v1262_v0 }
 0x4b6   : > { %v1076_v16 = vpop.eup %1075  ;;  %979 = vmatprep.subr.bf16.mxu0 %v1262_v0 }
 0x4b7   : > { %v577_v17 = vmul.f32 %v1076_v16, %v1070_v63 }
 0x4b9   : > { %v578_v18 = vpack.c.bf16 %v577_v17, %v577_v17 }
 0x4bc   : > { %970 = vmatmul.mubr.msk.bf16.vlgmr.msra.gmra.mrb[8].mxu0 %vm335_vm2, %v578_v18 }
 0x4bd   : > { %981 = vmatprep.mubr.msk.bf16.mxu0 %vm1263_vm0, %v1262_v0 }
 0x4d8   : > { %v692_v19 = vpop.xlane.xlu1 %691 }
 0x4d9   : > { %1077 = vrcp.f32 %v692_v19 }
 0x4dc   : > { %v697_v20 = vpop.permute.xlu1 %696 }
 0x4dd   : > { %v702_v21 = vsel %vm351_vm3, %v697_v20, 0 }
 0x4de   : > { %980 = vmatpush3.bf16.msra.mxu0 %v702_v21 }
 0x4e3   : > { %v1078_v22 = vpop.eup %1077 }
 0x4e4   : > { %v694_v23 = vmul.f32 %v1078_v22, %v1072_v5 }
 0x4e6   : > { %v695_v24 = vpack.c.bf16 %v694_v23, %v694_v23 }
 0x4e8   : > { %982 = vmatmul.mubr.msk.bf16.vlgmr.msra.gmra.mrb[12].mxu0 %vm335_vm2, %v695_v24 }
 0x587   : > { %v504_v25 = vpop.f32.mrb[4].mxu0 }
 0x588   : > { %511 = vrot.lane.b32.xlu0 %v504_v25, %s1266_s9  ;;  %v959_v26 = vpop.f32.mrb[5].mxu0 }
 0x589   : > { %v507_v27 = vpop.f32.mrb[6].mxu0 }
 0x58a   : > { %v960_v28 = vpop.f32.mrb[7].mxu0 }
 0x58f   : > { %v621_v0 = vpop.f32.mrb[8].mxu0 }
 0x590   : > { %628 = vrot.lane.b32.xlu1 %v621_v0, %s1265_s24  ;;  %v971_v29 = vpop.f32.mrb[9].mxu0 }
 0x591   : > { %v624_v30 = vpop.f32.mrb[10].mxu0 }
 0x592   : > { %v972_v31 = vpop.f32.mrb[11].mxu0 }
 0x5bb   : > { %v738_v32 = vpop.f32.mrb[12].mxu0 }
 0x5bc   : > { %745 = vrot.lane.b32.xlu0 %v738_v32, %s1264_s18  ;;  %v983_v33 = vpop.f32.mrb[13].mxu0 }
 0x5bd   : > { %v741_v34 = vpop.f32.mrb[14].mxu0 }
 0x5be   : > { %v984_v35 = vpop.f32.mrb[15].mxu0 }
 0x5fa   : > { %v512_v36 = vpop.permute.xlu0 %511 }
 0x5fb   : > { %515 = vst.msk [vmem:[%s1522_s11] sm:$0xff] %vm514_vm4, %v512_v36 }
 0x602   : > { %v629_v37 = vpop.permute.xlu1 %628 }
 0x603   : > { %632 = vst.msk [vmem:[%s1522_s11] sm:$0xff] %vm631_vm5, %v629_v37 }
 0x62e   : > { %v746_v38 = vpop.permute.xlu0 %745 }
 0x62f   : > { %749 = vst.msk [vmem:[%s1522_s11] sm:$0xff] %vm748_vm6, %v746_v38 }
 0x630   : > { %1184 = shalt.err (!%p1181_p10)
}
 0x631   : > { %s1185_s10 = scalar_lea.hbm %s1560_s16, 128  ;;  %s1189_s14 = scalar_lea.hbm %s1613_s3, 256 }
 0x632   : > { %p1186_p11 = scmp.ne.s32.totalorder %s1560_s16, %s1185_s10  ;;  %p1190_p4 = scmp.lt.u32.totalorder %s1560_s16, %s1613_s3 }
 0x633   : > { %p1191_p5 = scmp.lt.u32.totalorder %s1189_s14, %s1185_s10  ;;  %p1193_p13 = scmp.lt.u32.totalorder %s1185_s10, %s1560_s16 }
 0x634   : > { %p1187_p0 = pnand %p1186_p11, %p1643_p6 }
 0x635   : > { %p1192_p3 = por %p1191_p5, %p1190_p4 }
 0x636   : > { %p1188_p2 = pneg %p1187_p0 }
 0x637   : > { %p1194_p7 = por %p1193_p13, %p1192_p3 }
 0x639   : > { %p1195_p12 = pnand %p1194_p7, %p1188_p2 }
 0x63b   : > { %1198 = shalt.err (!%p1195_p12)
}
 0x63c   : > { %992 = dma.vmem_to_hbm [thread:$0]  (%p1643_p6), %s1562_s6, 128, %s1560_s16, %s751_s5  }
 0x63d PF: > { %s777_s4 = sand.u32 1, %s1237_s12   ;;  %p1644_p1 = scmp.ne.s32.totalorder %s1631_s27, 0 }
 0x63e   : > { %p1645_p8 = scmp.ge.s32.totalorder %s1257_s17, 2  ;;  %s778_s19 = scalar_lea.sflag [#allocation4], %s777_s4 }
 0x640   : > { %p1005_p9 = pnand %p1645_p8, %p1644_p1 }
 0x642   : > { %1232 = dma.done.wait (!%p1005_p9), %s778_s19, 128  }
 0x643   : > { %1234 = vsyncadd (!%p1005_p9), %s778_s19, 4294967168  ;;  %s22_s17 = sadd.s32 1, %s1257_s17   ;;  %s1646_s21 = sld [smem:[#allocation12_spill]] }
 0x644   : > { %p19_p10 = scmp.ge.s32.totalorder %s22_s17, 4   ;;  %s1647_s14 = sld [smem:[#allocation15_spill]] }
 0x645   : > { %s1648_s15 = sld [smem:[#allocation13_spill]]  ;;  %s1649_s16 = sld [smem:[#allocation14_spill]] }
 0x646   : > { %s1650_s12 = smov %s1241_s13  ;;  %21 = sbr.rel (!%p19_p10) target bundleno = 11 (0xb), region = 101 }
 0x649   : > { %s1651_s13 = smov %s1646_s21 }
 0x64d   :  { %783 = vsyncpa [#allocation3], 1 }
 0x64e   :  { %785 = vsyncpa [#allocation3 + $0x1], 1 }
 0x64f   :  { %786 = vsyncpa [#allocation6], 1 }
 0x650   :  { %788 = vsyncpa [#allocation6 + $0x1], 1 }
 0x651   :  { %789 = vsyncpa [#allocation4], 1 }
 0x652   :  { %791 = vsyncpa [#allocation4 + $0x1], 1 }

// kernel: transformer_forward.35
= control target key start
LH: loop header
LB: loop body
LE: loop exit
PB: predicated region body
PF: predicated region fallthrough
CT: control target
= control target key end

     0   :  { %8 = vsyncpa [#allocation3], 0  ;;  %s839_s0 = inlined_call_operand.hbm [shape: f32[16,128], index: 0, kind: input, shape index: {}]   ;;  %s840_s1 = inlined_call_operand.hbm [shape: f32[1,128], index: 1, kind: input, shape index: {}]   ;;  %s841_s2 = inlined_call_operand.hbm [shape: f32[1,128], index: 2, kind: input, shape index: {}]   ;;  %s842_s3 = inlined_call_operand.hbm [shape: f32[16,128], index: 3, kind: output, shape index: {}]  }
   0x1   :  { %10 = vsyncpa [#allocation3 + $0x1], 0 }
   0x2   :  { %11 = vsyncpa [#allocation6], 0 }
   0x3   :  { %12 = vsyncpa [#allocation4], 0 }
   0x4   :  { %14 = vsyncpa [#allocation4 + $0x1], 0  ;;  %s613_s12 = smov 0   ;;  %s615_s13 = smov 0  }
   0x5   :  { %s617_s14 = smov 0   ;;  %s619_s15 = smov 0  }
   0x6 LB: > { %s634_s16 = sadd.s32 4294967295, %s587_s15   ;;  %s344_s17 = sadd.s32 4294967294, %s587_s15   ;;  %s587_s15 = sphi %s619_s15, %s862_s15   ;;  %s583_s14 = sphi %s617_s14, %s861_s14   ;;  %s579_s13 = sphi %s615_s13, %s860_s13   ;;  %s575_s12 = sphi %s613_s12, %s859_s12  }
   0x7   : > { %p40_p0 = scmp.ne.s32.totalorder %s579_s13, %s575_s12  ;;  %p843_p1 = scmp.eq.s32.totalorder %s634_s16, 0 }
   0x8   : > { %p112_p3 = scmp.eq.s32.totalorder %s344_s17, 1  ;;  %p345_p5 = scmp.ge.s32.totalorder %s587_s15, 1 }
   0x9   : > { %p643_p4 = por %p843_p1, %p40_p0  ;;  %p119_p7 = scmp.lt.s32.totalorder %s587_s15, 3 }
   0xa   : > { %p648_p6 = por %p112_p3, %p40_p0  ;;  %s589_s21 = smov [#allocation5]  }
   0xb   : > { %s846_s18 = scalar_select %p643_p4, 1, 0 }
   0xc   : > { %s847_s19 = scalar_select %p648_p6, 1, 0 }
   0xd   : > { %p653_p8 = pnand %p345_p5, %p119_p7  ;;  %s132_s22 = sshll.u32 %s589_s21, 4  ;;  %s133_s22 = int_to_ptr.vmem [resolvable:$true] %s132_s22 }
   0xe   : > { %s590_s23 = smov [#allocation7]   ;;  %s669_s26 = sadd.s32 1, %s587_s15  }
   0xf   : > { %s848_s20 = scalar_select %p653_p8, 1, 0 }
  0x10   : > { %p374_p10 = pneg %p653_p8  ;;  %s143_s24 = sshll.u32 %s590_s23, 4  ;;  %s666_s24 = int_to_ptr.vmem [resolvable:$true] %s143_s24 }
  0x11   : > { %s24_s27 = ssub.s32 %s587_s15, %s669_s26  ;;  %s431_s30 = scalar_lea.hbm %s840_s1, 16 }
  0x12   : > { %p662_p11 = pnand %p374_p10, %p843_p1  ;;  %p432_p12 = scmp.ne.s32.totalorder %s840_s1, %s431_s30 }
  0x13   : > { %p438_p5 = scmp.lt.u32.totalorder %s431_s30, %s840_s1 }
  0x14   : > { %p433_p13 = pneg %p662_p11 }
  0x16   : > { %p434_p0 = pnand %p433_p13, %p432_p12 }
  0x18   : > { %p435_p3 = pneg %p434_p0 }
  0x1a   : > { %p440_p7 = pnand %p438_p5, %p435_p3 }
  0x1c   : > { %443 = shalt.err (!%p440_p7)
}
  0x1d   : > { %s444_s8 = scalar_lea.vmem %s133_s22, 16  ;;  %s451_s9 = scalar_lea.vmem %s133_s22, 32 }
  0x1e   : > { %p445_p10 = scmp.ne.s32.totalorder %s133_s22, %s444_s8  ;;  %p452_p2 = scmp.lt.s32.totalorder %s133_s22, %s133_s22 }
  0x1f   : > { %p453_p6 = scmp.lt.s32.totalorder %s451_s9, %s444_s8 }
  0x20   : > { %p447_p9 = pnand %p445_p10, %p433_p13 }
  0x21   : > { %p454_p4 = por %p453_p6, %p452_p2 }
  0x22   : > { %p448_p1 = pneg %p447_p9 }
  0x24   : > { %p455_p8 = pnand %p454_p4, %p448_p1 }
  0x26   : > { %458 = shalt.err (!%p455_p8)
}
  0x27   : > { %377 = dma.hbm_to_vmem [thread:$0]  (!%p662_p11), %s840_s1, 16, %s133_s22, [#allocation6]  }
  0x28   : > { %s459_s23 = scalar_lea.hbm %s841_s2, 16 }
  0x29   : > { %p460_p9 = scmp.ne.s32.totalorder %s841_s2, %s459_s23  ;;  %p466_p4 = scmp.lt.u32.totalorder %s459_s23, %s841_s2 }
  0x2b   : > { %p462_p2 = pnand %p460_p9, %p433_p13 }
  0x2d   : > { %p463_p1 = pneg %p462_p2 }
  0x2f   : > { %p468_p6 = pnand %p466_p4, %p463_p1 }
  0x31   : > { %471 = shalt.err (!%p468_p6)
}
  0x32   : > { %s472_s22 = scalar_lea.vmem %s666_s24, 16  ;;  %s479_s5 = scalar_lea.vmem %s666_s24, 32 }
  0x33   : > { %p473_p8 = scmp.ne.s32.totalorder %s666_s24, %s472_s22  ;;  %p480_p3 = scmp.lt.s32.totalorder %s666_s24, %s666_s24 }
  0x34   : > { %p481_p5 = scmp.lt.s32.totalorder %s479_s5, %s472_s22 }
  0x35   : > { %p475_p12 = pnand %p473_p8, %p433_p13 }
  0x36   : > { %p482_p7 = por %p481_p5, %p480_p3 }
  0x37   : > { %p476_p0 = pneg %p475_p12 }
  0x39   : > { %p483_p10 = pnand %p482_p7, %p476_p0 }
  0x3b   : > { %486 = shalt.err (!%p483_p10)
}
  0x3c   : > { %380 = dma.hbm_to_vmem [thread:$0]  (!%p662_p11), %s841_s2, 16, %s666_s24, [#allocation6]  }
  0x3d   : > { %p25_p13 = scmp.eq.s32.totalorder %s24_s27, 0  ;;  %s27_s8 = sadd.s32 1, %s583_s14 }
  0x3e   : > { %p34_p9 = scmp.ne.s32.totalorder %s583_s14, %s579_s13  ;;  %p35_p2 = scmp.eq.s32.totalorder %s587_s15, 0 }
  0x3f   : > { %s729_s25 = scalar_select %p25_p13, %s583_s14, %s27_s8  }
  0x40   : > { %p36_p1 = por %p35_p2, %p34_p9  ;;  %p850_p4 = scmp.eq.s32.totalorder %s634_s16, 1 }
  0x41   : > { %p391_p8 = scmp.lt.s32.totalorder %s587_s15, 2  ;;  %s154_s10 = sand.u32 1, %s583_s14  }
  0x42   : > { %p733_p6 = por %p850_p4, %p34_p9  ;;  %s349_s11 = sshll.u32 %s154_s10, 3 }
  0x43   : > { %s350_s17 = sshll.u32 %s587_s15, 7  ;;  %s158_s27 = scalar_lea.vmem [#allocation2], %s349_s11 }
  0x44   : > { %s743_s24 = scalar_lea.hbm %s839_s0, %s350_s17  ;;  %s165_s28 = sshll.u32 %s158_s27, 4  ;;  %s745_s28 = int_to_ptr.vmem [resolvable:$true] %s165_s28 }
  0x45   : > { %p747_p11 = pnand %p391_p8, %p36_p1  ;;  %s155_s30 = scalar_lea.sflag [#allocation3], %s154_s10 }
  0x46   : > { %s487_s4 = scalar_lea.hbm %s743_s24, 128  ;;  %s492_s6 = scalar_lea.hbm %s839_s0, 256 }
  0x47   : > { %p488_p12 = scmp.ne.s32.totalorder %s743_s24, %s487_s4  ;;  %p489_p0 = pneg %p747_p11 }
  0x48   : > { %p493_p7 = scmp.lt.u32.totalorder %s743_s24, %s839_s0  ;;  %p494_p10 = scmp.lt.u32.totalorder %s492_s6, %s487_s4 }
  0x49   : > { %p490_p3 = pnand %p489_p0, %p488_p12  ;;  %p496_p9 = scmp.lt.u32.totalorder %s487_s4, %s743_s24 }
  0x4a   : > { %p495_p13 = por %p494_p10, %p493_p7 }
  0x4b   : > { %p491_p5 = pneg %p490_p3 }
  0x4c   : > { %p497_p2 = por %p496_p9, %p495_p13 }
  0x4e   : > { %p498_p1 = pnand %p497_p2, %p491_p5 }
  0x50   : > { %501 = shalt.err (!%p498_p1)
}
  0x51   : > { %s502_s10 = scalar_lea.vmem %s745_s28, 128  ;;  %s591_s11 = smov [#allocation2]  }
  0x52   : > { %p503_p4 = scmp.ne.s32.totalorder %s745_s28, %s502_s10  ;;  %s507_s17 = sshll.u32 %s591_s11, 4  ;;  %s508_s17 = int_to_ptr.vmem [resolvable:$false] %s507_s17 }
  0x53   : > { %s509_s21 = scalar_lea.vmem %s508_s17, 256  ;;  %p510_p3 = scmp.lt.s32.totalorder %s745_s28, %s508_s17 }
  0x54   : > { %p505_p8 = pnand %p503_p4, %p489_p0  ;;  %p511_p7 = scmp.lt.s32.totalorder %s509_s21, %s502_s10 }
  0x56   : > { %p506_p12 = pneg %p505_p8  ;;  %p512_p10 = por %p511_p7, %p510_p3 }
  0x58   : > { %p513_p13 = pnand %p512_p10, %p506_p12 }
  0x5a   : > { %516 = shalt.err (!%p513_p13)
}
  0x5b   : > { %384 = dma.hbm_to_vmem [thread:$0]  (!%p747_p11), %s743_s24, 128, %s745_s28, %s155_s30  }
  0x5c   : > { %p853_p5 = scmp.ne.s32.totalorder %s848_s20, 0 }
  0x5d   : > { %s779_s23 = sand.u32 (!%p853_p5), 1, %s579_s13   ;;  %p854_p0 = scmp.ne.s32.totalorder (!%p853_p5), %s846_s18, 0 }
  0x5e   : > { %174 = sbr.rel (%p853_p5) target bundleno = 431 (0x1af), region = 32  ;;  %s352_s27 = sshll.u32 (!%p853_p5), %s779_s23, 3 }
  0x5f   : > { %s177_s4 = scalar_lea.sflag (!%p853_p5), [#allocation3], %s779_s23  ;;  %s180_s22 = scalar_lea.vmem (!%p853_p5), [#allocation2], %s352_s27 }
  0x65   : > { %562 = dma.done.wait (%p854_p0), %s177_s4, 128  }
  0x66   : > { %564 = vsyncadd (%p854_p0), %s177_s4, 4294967168  ;;  %p855_p9 = scmp.eq.s32.totalorder %s634_s16, 0 }
  0x68   : > { %566 = dma.done.wait (%p855_p9), [#allocation6], 32   ;;  %p856_p11 = pmov %p855_p9 }
  0x69   : > { %v211_v0 = vld [vmem:[%s180_s22] sm:$0xff]  ;;  %v356_v9 = vld [vmem:[#allocation5] ss:$0 sm:$0xff]  ;;  %v357_v11 = vld [vmem:[#allocation7] ss:$0 sm:$0xff]  ;;  %s359_s18 = sshll.u32 %s634_s16, 7 }
  0x6a   : > { %568 = vsyncadd (%p856_p11), [#allocation6], 4294967264  ;;  %212 = vadd.xlane.f32.xlu0 %v211_v0  ;;  %s210_s20 = scalar_lea.vmem [#allocation8], %s352_s27  ;;  %s795_s30 = scalar_lea.hbm %s842_s3, %s359_s18 }
  0x6b   : > { %s255_s24 = sshll.u32 %s210_s20, 4  ;;  %s242_s5 = scalar_lea.sflag [#allocation4], %s779_s23  ;;  %s797_s24 = int_to_ptr.vmem [resolvable:$true] %s255_s24 }
  0x6c   : > { %s517_s6 = scalar_lea.vmem %s797_s24, 128  ;;  %s592_s16 = smov [#allocation8]  }
  0x6d   : > { %p518_p2 = scmp.ne.s32.totalorder %s797_s24, %s517_s6  ;;  %s521_s7 = sshll.u32 %s592_s16, 4  ;;  %s522_s7 = int_to_ptr.vmem [resolvable:$false] %s521_s7 }
  0x6e   : > { %s523_s8 = scalar_lea.vmem %s522_s7, 256  ;;  %p524_p8 = scmp.lt.s32.totalorder %s797_s24, %s522_s7 }
  0x6f   : > { %p519_p1 = pnand %p518_p2, %p733_p6  ;;  %p525_p12 = scmp.lt.s32.totalorder %s523_s8, %s517_s6 }
  0x71   : > { %p520_p4 = pneg %p519_p1  ;;  %p526_p3 = por %p525_p12, %p524_p8 }
  0x73   : > { %p527_p7 = pnand %p526_p3, %p520_p4 }
  0xf7   : > { %v213_v1 = vpop.xlane.xlu0 %212 }
  0xf8   : > { %v215_v2 = vmul.f32 0.0078125, %v213_v1 }
  0xfa   : > { %v216_v3 = vsub.f32 %v211_v0, %v215_v2 }
  0xfc   : > { %v217_v4 = vmul.f32 %v216_v3, %v216_v3 }
  0xfe   : > { %218 = vadd.xlane.f32.xlu0 %v217_v4 }
 0x18b   : > { %v219_v5 = vpop.xlane.xlu0 %218 }
 0x18c   : > { %v220_v6 = vmul.f32 0.0078125, %v219_v5 }
 0x18e   : > { %v221_v7 = vadd.f32 1e-05, %v220_v6 }
 0x190   : > { %429 = vrsqrt.f32 %v221_v7 }
 0x19a   : > { %v430_v8 = vpop.eup %429 }
 0x19b   : > { %v223_v10 = vmul.f32 %v430_v8, %v216_v3 }
 0x19d   : > { %v231_v12 = vmul.f32 %v356_v9, %v223_v10 }
 0x19f   : > { %v239_v13 = vadd.f32 %v357_v11, %v231_v12 }
 0x1a1   : > { %240 = vst [vmem:[%s210_s20] sm:$0xff] %v239_v13 }
 0x1a2   : > { %530 = shalt.err (!%p527_p7)
}
 0x1a3   : > { %s531_s10 = scalar_lea.hbm %s795_s30, 128  ;;  %s535_s21 = scalar_lea.hbm %s842_s3, 256 }
 0x1a4   : > { %p532_p10 = scmp.ne.s32.totalorder %s795_s30, %s531_s10  ;;  %p536_p0 = scmp.lt.u32.totalorder %s795_s30, %s842_s3 }
 0x1a5   : > { %p537_p9 = scmp.lt.u32.totalorder %s535_s21, %s531_s10  ;;  %p539_p2 = scmp.lt.u32.totalorder %s531_s10, %s795_s30 }
 0x1a6   : > { %p533_p13 = pnand %p532_p10, %p733_p6 }
 0x1a7   : > { %p538_p11 = por %p537_p9, %p536_p0 }
 0x1a8   : > { %p534_p5 = pneg %p533_p13 }
 0x1a9   : > { %p540_p1 = por %p539_p2, %p538_p11 }
 0x1ab   : > { %p541_p4 = pnand %p540_p1, %p534_p5 }
 0x1ad   : > { %544 = shalt.err (!%p541_p4)
}
 0x1ae   : > { %372 = dma.vmem_to_hbm [thread:$0]  (%p733_p6), %s797_s24, 128, %s795_s30, %s242_s5  }
 0x1af PF: > { %s267_s4 = sand.u32 1, %s575_s12   ;;  %p857_p8 = scmp.ne.s32.totalorder %s847_s19, 0 }
 0x1b0   : > { %p858_p12 = scmp.ge.s32.totalorder %s587_s15, 2  ;;  %s268_s22 = scalar_lea.sflag [#allocation4], %s267_s4 }
 0x1b2   : > { %p386_p3 = pnand %p858_p12, %p857_p8 }
 0x1b4   : > { %570 = dma.done.wait (!%p386_p3), %s268_s22, 128  }
 0x1b5   : > { %572 = vsyncadd (!%p386_p3), %s268_s22, 4294967168  ;;  %p17_p7 = scmp.ge.s32.totalorder %s669_s26, 4   ;;  %s859_s12 = smov %s579_s13 }
 0x1b6   : > { %s860_s13 = smov %s583_s14  ;;  %s861_s14 = smov %s729_s25 }
 0x1b7   : > { %s862_s15 = smov %s669_s26  ;;  %19 = sbr.rel (!%p17_p7) target bundleno = 6 (0x6), region = 85 }
 0x1be   :  { %273 = vsyncpa [#allocation3], 1 }
 0x1bf   :  { %275 = vsyncpa [#allocation3 + $0x1], 1 }
 0x1c0   :  { %276 = vsyncpa [#allocation6], 1 }
 0x1c1   :  { %277 = vsyncpa [#allocation4], 1 }
 0x1c2   :  { %279 = vsyncpa [#allocation4 + $0x1], 1 }

// kernel: transformer_forward.48
= control target key start
LH: loop header
LB: loop body
LE: loop exit
PB: predicated region body
PF: predicated region fallthrough
CT: control target
= control target key end

     0   :  { %8 = vsyncpa [#allocation3], 0  ;;  %s1033_s0 = inlined_call_operand.hbm [shape: f32[16,128], index: 0, kind: input, shape index: {}]   ;;  %s1034_s1 = inlined_call_operand.hbm [shape: f32[128,256], index: 1, kind: input, shape index: {}]   ;;  %s1035_s2 = inlined_call_operand.hbm [shape: f32[1,256], index: 2, kind: input, shape index: {}]   ;;  %s1036_s3 = inlined_call_operand.hbm [shape: f32[16,256], index: 3, kind: output, shape index: {}]  }
   0x1   :  { %10 = vsyncpa [#allocation3 + $0x1], 0 }
   0x2   :  { %11 = vsyncpa [#allocation6], 0 }
   0x3   :  { %12 = vsyncpa [#allocation4], 0 }
   0x4   :  { %14 = vsyncpa [#allocation4 + $0x1], 0  ;;  %s779_s12 = smov 0   ;;  %s781_s13 = smov 0  }
   0x5   :  { %s783_s14 = smov 0   ;;  %s785_s15 = smov 0  }
   0x6   :  { %s787_s16 = smov 0   ;;  %s789_s17 = smov 0  }
   0x7 LB: > { %s473_s18 = sadd.s32 4294967295, %s750_s17   ;;  %s474_s19 = sadd.s32 4294967294, %s750_s17   ;;  %s750_s17 = sphi %s789_s17, %s20_s17   ;;  %s746_s16 = sphi %s787_s16, %s1058_s16   ;;  %s742_s15 = sphi %s785_s15, %s1057_s15   ;;  %s738_s14 = sphi %s783_s14, %s1056_s14   ;;  %s734_s13 = sphi %s781_s13, %s1055_s13   ;;  %s730_s12 = sphi %s779_s12, %s1054_s12  }
   0x8   : > { %p52_p0 = scmp.ne.s32.totalorder %s734_s13, %s730_s12  ;;  %p813_p1 = scmp.eq.s32.totalorder %s473_s18, 0 }
   0x9   : > { %p817_p2 = scmp.eq.s32.totalorder %s473_s18, 1  ;;  %p136_p3 = scmp.eq.s32.totalorder %s474_s19, 1 }
   0xa   : > { %s1041_s20 = scalar_select %p813_p1, 1, 0 }
   0xb   : > { %p823_p4 = por %p813_p1, %p52_p0  ;;  %p475_p5 = scmp.ge.s32.totalorder %s750_s17, 1 }
   0xc   : > { %p828_p6 = por %p136_p3, %p52_p0  ;;  %p143_p7 = scmp.lt.s32.totalorder %s750_s17, 3 }
   0xd   : > { %s1043_s22 = scalar_select %p823_p4, 1, 0 }
   0xe   : > { %s1044_s23 = scalar_select %p828_p6, 1, 0 }
   0xf   : > { %p833_p8 = pnand %p475_p5, %p143_p7  ;;  %s752_s25 = smov [#allocation5]  }
  0x10   : > { %s158_s26 = sshll.u32 %s752_s25, 4  ;;  %s753_s28 = smov [#allocation7]   ;;  %s837_s26 = int_to_ptr.vmem [resolvable:$true] %s158_s26 }
  0x11   : > { %p504_p9 = pneg %p833_p8  ;;  %s175_s29 = sshll.u32 %s753_s28, 4  ;;  %s848_s29 = int_to_ptr.vmem [resolvable:$true] %s175_s29 }
  0x12   : > { %s578_s5 = scalar_lea.hbm %s1034_s1, 4096 }
  0x13   : > { %p844_p11 = pnand %p504_p9, %p813_p1  ;;  %p579_p12 = scmp.ne.s32.totalorder %s1034_s1, %s578_s5 }
  0x14   : > { %p585_p5 = scmp.lt.u32.totalorder %s578_s5, %s1034_s1 }
  0x15   : > { %p580_p13 = pneg %p844_p11 }
  0x17   : > { %p581_p0 = pnand %p580_p13, %p579_p12 }
  0x19   : > { %p582_p3 = pneg %p581_p0 }
  0x1b   : > { %p587_p7 = pnand %p585_p5, %p582_p3 }
  0x1d   : > { %590 = shalt.err (!%p587_p7)
}
  0x1e   : > { %s591_s10 = scalar_lea.vmem %s837_s26, 4096  ;;  %p599_p1 = scmp.lt.s32.totalorder %s837_s26, %s837_s26 }
  0x1f   : > { %p592_p9 = scmp.ne.s32.totalorder %s837_s26, %s591_s10  ;;  %p600_p12 = scmp.lt.s32.totalorder %s591_s10, %s591_s10 }
  0x21   : > { %p594_p10 = pnand %p592_p9, %p580_p13  ;;  %p601_p0 = por %p600_p12, %p599_p1 }
  0x23   : > { %p595_p6 = pneg %p594_p10 }
  0x25   : > { %p602_p4 = pnand %p601_p0, %p595_p6 }
  0x27   : > { %605 = shalt.err (!%p602_p4)
}
  0x28   : > { %s754_s11 = smov 256   ;;  %s755_s18 = smov 16  }
  0x29   : > { %507 = dma.hbm_to_vmem [thread:$0]  (!%p844_p11), %s1034_s1, 4096, %s837_s26, [#allocation6], %s754_s11, %s754_s11, %s755_s18  }
  0x2a   : > { %s606_s4 = scalar_lea.hbm %s1035_s2, 32 }
  0x2b   : > { %p607_p1 = scmp.ne.s32.totalorder %s1035_s2, %s606_s4  ;;  %p613_p10 = scmp.lt.u32.totalorder %s606_s4, %s1035_s2 }
  0x2d   : > { %p609_p4 = pnand %p607_p1, %p580_p13 }
  0x2f   : > { %p610_p6 = pneg %p609_p4 }
  0x31   : > { %p615_p3 = pnand %p613_p10, %p610_p6 }
  0x33   : > { %618 = shalt.err (!%p615_p3)
}
  0x34   : > { %s619_s26 = scalar_lea.vmem %s848_s29, 32  ;;  %p627_p12 = scmp.lt.s32.totalorder %s848_s29, %s848_s29 }
  0x35   : > { %p620_p5 = scmp.ne.s32.totalorder %s848_s29, %s619_s26  ;;  %p628_p0 = scmp.lt.s32.totalorder %s619_s26, %s619_s26 }
  0x37   : > { %p622_p7 = pnand %p620_p5, %p580_p13  ;;  %p629_p1 = por %p628_p0, %p627_p12 }
  0x39   : > { %p623_p9 = pneg %p622_p7 }
  0x3b   : > { %p630_p4 = pnand %p629_p1, %p623_p9 }
  0x3d   : > { %633 = shalt.err (!%p630_p4)
}
  0x3e   : > { %510 = dma.hbm_to_vmem [thread:$0]  (!%p844_p11), %s1035_s2, 32, %s848_s29, [#allocation6]  }
  0x3f   : > { %s32_s11 = sadd.s32 1, %s746_s16  ;;  %s39_s18 = sadd.s32 1, %s738_s14 }
  0x40   : > { %p34_p13 = scmp.ge.s32.totalorder %s32_s11, 2  ;;  %p46_p6 = scmp.ne.s32.totalorder %s738_s14, %s734_s13 }
  0x41   : > { %p47_p10 = scmp.eq.s32.totalorder %s750_s17, 0  ;;  %p521_p3 = scmp.lt.s32.totalorder %s750_s17, 2 }
  0x42   : > { %s1060_s11 = smov (%p34_p13, %s32_s11), 0  ;;  %p912_p7 = por %p817_p2, %p46_p6 }
  0x43   : > { %p48_p5 = por %p47_p10, %p46_p6  ;;  %s36_s19 = ssub.s32 %s746_s16, %s1060_s11 }
  0x44   : > { %s1047_s27 = scalar_select %p912_p7, 1, 0 }
  0x45   : > { %s186_s25 = sand.u32 1, %s738_s14   ;;  %p37_p9 = scmp.eq.s32.totalorder %s36_s19, 0 }
  0x46   : > { %s479_s29 = sshll.u32 %s186_s25, 3  ;;  %s480_s28 = sshll.u32 %s746_s16, 7 }
  0x47   : > { %s921_s30 = scalar_select %p37_p9, %s738_s14, %s39_s18  }
  0x48   : > { %s926_s6 = scalar_lea.hbm %s1033_s0, %s480_s28  ;;  %s190_s21 = scalar_lea.vmem [#allocation2], %s479_s29 }
  0x49   : > { %s197_s7 = sshll.u32 %s190_s21, 4  ;;  %p930_p2 = pnand %p521_p3, %p48_p5  ;;  %s934_s7 = int_to_ptr.vmem [resolvable:$true] %s197_s7 }
  0x4a   : > { %s187_s26 = scalar_lea.sflag [#allocation3], %s186_s25  ;;  %s634_s9 = scalar_lea.hbm %s926_s6, 128 }
  0x4b   : > { %p635_p11 = scmp.ne.s32.totalorder %s926_s6, %s634_s9  ;;  %p636_p12 = pneg %p930_p2 }
  0x4c   : > { %s639_s19 = scalar_lea.hbm %s1033_s0, 256  ;;  %p640_p4 = scmp.lt.u32.totalorder %s926_s6, %s1033_s0 }
  0x4d   : > { %p637_p0 = pnand %p636_p12, %p635_p11  ;;  %p641_p13 = scmp.lt.u32.totalorder %s639_s19, %s634_s9 }
  0x4e   : > { %p643_p10 = scmp.lt.u32.totalorder %s634_s9, %s926_s6 }
  0x4f   : > { %p638_p1 = pneg %p637_p0  ;;  %p642_p6 = por %p641_p13, %p640_p4 }
  0x51   : > { %p644_p3 = por %p643_p10, %p642_p6 }
  0x53   : > { %p645_p5 = pnand %p644_p3, %p638_p1 }
  0x55   : > { %648 = shalt.err (!%p645_p5)
}
  0x56   : > { %s649_s25 = scalar_lea.vmem %s934_s7, 128  ;;  %s756_s4 = smov [#allocation2]  }
  0x57   : > { %p650_p9 = scmp.ne.s32.totalorder %s934_s7, %s649_s25  ;;  %s654_s5 = sshll.u32 %s756_s4, 4  ;;  %s655_s5 = int_to_ptr.vmem [resolvable:$false] %s654_s5 }
  0x58   : > { %s656_s21 = scalar_lea.vmem %s655_s5, 256  ;;  %p657_p7 = scmp.lt.s32.totalorder %s934_s7, %s655_s5 }
  0x59   : > { %p652_p11 = pnand %p650_p9, %p636_p12  ;;  %p658_p4 = scmp.lt.s32.totalorder %s656_s21, %s649_s25 }
  0x5b   : > { %p653_p0 = pneg %p652_p11  ;;  %p659_p13 = por %p658_p4, %p657_p7 }
  0x5d   : > { %p660_p6 = pnand %p659_p13, %p653_p0 }
  0x5f   : > { %663 = shalt.err (!%p660_p6)
}
  0x60   : > { %514 = dma.hbm_to_vmem [thread:$0]  (!%p930_p2), %s926_s6, 128, %s934_s7, %s187_s26  }
  0x61   : > { %206 = sbr.rel (%p833_p8) target bundleno = 372 (0x174), region = 32  ;;  %s964_s9 = sand.u32 (!%p833_p8), 1, %s734_s13  }
  0x62   : > { %s482_s10 = sshll.u32 (!%p833_p8), %s964_s9, 3  ;;  %s209_s18 = scalar_lea.sflag (!%p833_p8), [#allocation3], %s964_s9 }
  0x63   : > { %s968_s19 = scalar_lea.vmem (!%p833_p8), [#allocation2], %s482_s10  ;;  %p1049_p7 = scmp.ne.s32.totalorder (!%p833_p8), %s1043_s22, 0 }
  0x68   : > { %717 = dma.done.wait (%p1049_p7), %s209_s18, 128  }
  0x69   : > { %719 = vsyncadd (%p1049_p7), %s209_s18, 4294967168  ;;  %p1050_p2 = scmp.ne.s32.totalorder %s1041_s20, 0 }
  0x6b   : > { %721 = dma.done.wait (%p1050_p2), [#allocation6], 4128  }
  0x6c   : > { %723 = vsyncadd (%p1050_p2), [#allocation6], 4294963168  ;;  %v757_v0 = vmov 0   ;;  %v250_v1 = vld [vmem:[#allocation5 + $0x8] sm:$0xff]  ;;  %v252_v2 = vld [vmem:[#allocation5 + $0x18] sm:$0xff]  ;;  %v299_v51 = vlaneseq  ;;  %s485_s20 = sshll.u32 %s964_s9, 4 }
  0x6d   : > { %341 = vmatprep.mubr.bf16.mxu0 %v757_v0  ;;  %v249_v3 = vld [vmem:[#allocation5] sm:$0xff]  ;;  %v282_v4 = vpack.c.bf16 %v252_v2, %v250_v1  ;;  %v251_v5 = vld [vmem:[#allocation5 + $0x10] sm:$0xff]  ;;  %v254_v6 = vld [vmem:[#allocation5 + $0x28] sm:$0xff]  ;;  %s491_s22 = sshll.u32 %s742_s15, 8  ;;  %s242_s24 = scalar_lea.vmem [#allocation8], %s485_s20 }
  0x6e   : > { %v256_v7 = vld [vmem:[#allocation5 + $0x38] sm:$0xff]  ;;  %v281_v8 = vpack.c.bf16 %v251_v5, %v249_v3  ;;  %v253_v10 = vld [vmem:[#allocation5 + $0x20] sm:$0xff]  ;;  %v255_v11 = vld [vmem:[#allocation5 + $0x30] sm:$0xff]  ;;  %v300_v52 = vshrl.u32 %v299_v51, 7  ;;  %s369_s6 = sshll.u32 %s242_s24, 4  ;;  %s984_s26 = scalar_lea.hbm %s1036_s3, %s491_s22  ;;  %s986_s6 = int_to_ptr.vmem [resolvable:$true] %s369_s6 }
  0x6f   : > { %v284_v9 = vpack.c.bf16 %v256_v7, %v254_v6  ;;  %v258_v12 = vld [vmem:[#allocation5 + $0x48] sm:$0xff]  ;;  %309 = vmatprep.subr.bf16.mxu0 %v282_v4  ;;  %v260_v13 = vld [vmem:[#allocation5 + $0x58] sm:$0xff]  ;;  %v283_v14 = vpack.c.bf16 %v255_v11, %v253_v10  ;;  %v257_v16 = vld [vmem:[#allocation5 + $0x40] sm:$0xff]  ;;  %s353_s15 = scalar_lea.sflag [#allocation4], %s964_s9  ;;  %s664_s29 = scalar_lea.vmem %s986_s6, 256 }
  0x70   : > { %310 = vmatpush1.bf16.msra.mxu0 %v281_v8  ;;  %v286_v15 = vpack.c.bf16 %v260_v13, %v258_v12  ;;  %v259_v17 = vld [vmem:[#allocation5 + $0x50] sm:$0xff]  ;;  %v262_v18 = vld [vmem:[#allocation5 + $0x68] sm:$0xff]  ;;  %v264_v19 = vld [vmem:[#allocation5 + $0x78] sm:$0xff]  ;;  %v301_v53 = vsub.s32 0, %v300_v52  ;;  %v305_v55 = vsub.s32 1, %v300_v52  ;;  %p665_p8 = scmp.ne.s32.totalorder %s986_s6, %s664_s29  ;;  %p1051_p12 = scmp.ne.s32.totalorder %s1047_s27, 0 }
  0x71   : > { %311 = vmatprep.subr.bf16.mxu0 %v284_v9  ;;  %v285_v20 = vpack.c.bf16 %v259_v17, %v257_v16  ;;  %v288_v21 = vpack.c.bf16 %v264_v19, %v262_v18  ;;  %v261_v22 = vld [vmem:[#allocation5 + $0x60] sm:$0xff]  ;;  %v263_v23 = vld [vmem:[#allocation5 + $0x70] sm:$0xff]  ;;  %v266_v24 = vld [vmem:[#allocation5 + $0x88] sm:$0xff]  ;;  %s758_s28 = smov [#allocation8]  }
  0x72   : > { %v268_v25 = vld [vmem:[#allocation5 + $0x98] sm:$0xff]  ;;  %v287_v26 = vpack.c.bf16 %v263_v23, %v261_v22  ;;  %v265_v28 = vld [vmem:[#allocation5 + $0x80] sm:$0xff]  ;;  %v267_v29 = vld [vmem:[#allocation5 + $0x90] sm:$0xff]  ;;  %p666_p1 = pnand %p665_p8, %p1051_p12  ;;  %s668_s25 = sshll.u32 %s758_s28, 4  ;;  %s669_s25 = int_to_ptr.vmem [resolvable:$false] %s668_s25 }
  0x73   : > { %v290_v27 = vpack.c.bf16 %v268_v25, %v266_v24  ;;  %v270_v30 = vld [vmem:[#allocation5 + $0xa8] sm:$0xff]  ;;  %v272_v31 = vld [vmem:[#allocation5 + $0xb8] sm:$0xff]  ;;  %v289_v32 = vpack.c.bf16 %v267_v29, %v265_v28  ;;  %v269_v34 = vld [vmem:[#allocation5 + $0xa0] sm:$0xff]  ;;  %s670_s4 = scalar_lea.vmem %s669_s25, 512  ;;  %p671_p3 = scmp.lt.s32.totalorder %s986_s6, %s669_s25 }
  0x74   : > { %312 = vmatpush1.bf16.msra.mxu0 %v283_v14  ;;  %v292_v33 = vpack.c.bf16 %v272_v31, %v270_v30  ;;  %v271_v35 = vld [vmem:[#allocation5 + $0xb0] sm:$0xff]  ;;  %v274_v36 = vld [vmem:[#allocation5 + $0xc8] sm:$0xff]  ;;  %v276_v37 = vld [vmem:[#allocation5 + $0xd8] sm:$0xff]  ;;  %p667_p10 = pneg %p666_p1  ;;  %p672_p5 = scmp.lt.s32.totalorder %s670_s4, %s664_s29 }
  0x75   : > { %313 = vmatprep.subr.bf16.mxu0 %v286_v15  ;;  %v291_v38 = vpack.c.bf16 %v271_v35, %v269_v34  ;;  %v294_v39 = vpack.c.bf16 %v276_v37, %v274_v36  ;;  %v273_v40 = vld [vmem:[#allocation5 + $0xc0] sm:$0xff]  ;;  %v275_v41 = vld [vmem:[#allocation5 + $0xd0] sm:$0xff]  ;;  %v278_v42 = vld [vmem:[#allocation5 + $0xe8] sm:$0xff] }
  0x76   : > { %v280_v43 = vld [vmem:[#allocation5 + $0xf8] sm:$0xff]  ;;  %v293_v44 = vpack.c.bf16 %v275_v41, %v273_v40  ;;  %v277_v46 = vld [vmem:[#allocation5 + $0xe0] sm:$0xff]  ;;  %v279_v47 = vld [vmem:[#allocation5 + $0xf0] sm:$0xff]  ;;  %p673_p9 = por %p672_p5, %p671_p3 }
  0x77   : > { %v296_v45 = vpack.c.bf16 %v280_v43, %v278_v42  ;;  %v295_v48 = vpack.c.bf16 %v279_v47, %v277_v46  ;;  %v247_v49 = vld [vmem:[%s968_s19] sm:$0xff]  ;;  %v297_v54 = vld [vmem:[#allocation7] sm:$0x3] }
  0x78   : > { %314 = vmatpush1.bf16.msra.mxu0 %v285_v20  ;;  %v248_v50 = vpack.c.bf16 %v247_v49, %v247_v49  ;;  %v302_v56 = vrot.slane %v297_v54, %v301_v53  ;;  %v306_v57 = vrot.slane %v297_v54, %v305_v55  ;;  %p674_p11 = pnand %p673_p9, %p667_p10 }
  0x79   : > { %315 = vmatprep.subr.bf16.mxu0 %v288_v21 }
  0x7c   : > { %316 = vmatpush1.bf16.msra.mxu0 %v287_v26 }
  0x7d   : > { %317 = vmatprep.subr.bf16.mxu0 %v290_v27 }
  0x80   : > { %318 = vmatpush1.bf16.msra.mxu0 %v289_v32 }
  0x81   : > { %319 = vmatprep.subr.bf16.mxu0 %v292_v33 }
  0x84   : > { %320 = vmatpush1.bf16.msra.mxu0 %v291_v38 }
  0x85   : > { %321 = vmatprep.subr.bf16.mxu0 %v294_v39 }
  0x88   : > { %322 = vmatpush1.bf16.msra.mxu0 %v293_v44 }
  0x89   : > { %323 = vmatprep.subr.bf16.mxu0 %v296_v45 }
  0x8c   : > { %324 = vmatpush1.bf16.msra.mxu0 %v295_v48 }
  0x8f   : > { %342 = vmatmul.mubr.bf16.vlgmr.msra.gmra.mrb[0].mxu0 %v248_v50 }
 0x162   : > { %v343_v58 = vpop.f32.mrb[0].mxu0 }
 0x163   : > { %v344_v59 = vadd.f32 %v343_v58, %v302_v56  ;;  %v345_v60 = vpop.f32.mrb[1].mxu0 }
 0x164   : > { %v346_v61 = vadd.f32 %v345_v60, %v306_v57  ;;  %v347_v62 = vpop.f32.mrb[2].mxu0 }
 0x165   : > { %350 = vst [vmem:[%s242_s24] sm:$0xff] %v344_v59  ;;  %v348_v63 = vpop.f32.mrb[3].mxu0 }
 0x166   : > { %351 = vst [vmem:[%s242_s24 + $0x8] sm:$0xff] %v346_v61 }
 0x167   : > { %677 = shalt.err (!%p674_p11)
}
 0x168   : > { %s678_s5 = scalar_lea.hbm %s984_s26, 256  ;;  %s682_s10 = scalar_lea.hbm %s1036_s3, 512 }
 0x169   : > { %p679_p0 = scmp.ne.s32.totalorder %s984_s26, %s678_s5  ;;  %p683_p6 = scmp.lt.u32.totalorder %s984_s26, %s1036_s3 }
 0x16a   : > { %p684_p7 = scmp.lt.u32.totalorder %s682_s10, %s678_s5  ;;  %p686_p8 = scmp.lt.u32.totalorder %s678_s5, %s984_s26 }
 0x16b   : > { %p680_p4 = pnand %p679_p0, %p1051_p12 }
 0x16c   : > { %p685_p2 = por %p684_p7, %p683_p6 }
 0x16d   : > { %p681_p13 = pneg %p680_p4 }
 0x16e   : > { %p687_p1 = por %p686_p8, %p685_p2 }
 0x170   : > { %p688_p10 = pnand %p687_p1, %p681_p13 }
 0x172   : > { %691 = shalt.err (!%p688_p10)
}
 0x173   : > { %502 = dma.vmem_to_hbm [thread:$0]  (%p1051_p12), %s986_s6, 256, %s984_s26, %s353_s15  }
 0x174 PF: > { %s381_s20 = sand.u32 1, %s730_s12   ;;  %p1052_p3 = scmp.ne.s32.totalorder %s1044_s23, 0 }
 0x175   : > { %p1053_p5 = scmp.ge.s32.totalorder %s750_s17, 2  ;;  %s382_s22 = scalar_lea.sflag [#allocation4], %s381_s20 }
 0x177   : > { %p516_p9 = pnand %p1053_p5, %p1052_p3 }
 0x179   : > { %725 = dma.done.wait (!%p516_p9), %s382_s22, 256  }
 0x17a   : > { %727 = vsyncadd (!%p516_p9), %s382_s22, 4294967040  ;;  %s20_s17 = sadd.s32 1, %s750_s17   ;;  %s1054_s12 = smov %s734_s13 }
 0x17b   : > { %p17_p11 = scmp.ge.s32.totalorder %s20_s17, 4   ;;  %s1055_s13 = smov %s738_s14 }
 0x17c   : > { %s1056_s14 = smov %s921_s30  ;;  %s1057_s15 = smov %s746_s16 }
 0x17d   : > { %s1058_s16 = smov %s1060_s11  ;;  %19 = sbr.rel (!%p17_p11) target bundleno = 7 (0x7), region = 87 }
 0x184   :  { %387 = vsyncpa [#allocation3], 1 }
 0x185   :  { %389 = vsyncpa [#allocation3 + $0x1], 1 }
 0x186   :  { %390 = vsyncpa [#allocation6], 1 }
 0x187   :  { %391 = vsyncpa [#allocation4], 1 }
 0x188   :  { %393 = vsyncpa [#allocation4 + $0x1], 1 }

// kernel: transformer_forward.30
= control target key start
LH: loop header
LB: loop body
LE: loop exit
PB: predicated region body
PF: predicated region fallthrough
CT: control target
= control target key end

     0   :  { %12 = vsyncpa [#allocation3], 0  ;;  %s1564_s0 = inlined_call_operand.hbm [shape: f32[16,128], index: 0, kind: input, shape index: {}]   ;;  %s1565_s1 = inlined_call_operand.hbm [shape: f32[128,256], index: 1, kind: input, shape index: {}]   ;;  %s1566_s2 = inlined_call_operand.hbm [shape: f32[1,256], index: 2, kind: input, shape index: {}]   ;;  %s1567_s3 = inlined_call_operand.hbm [shape: f32[256,128], index: 3, kind: input, shape index: {}]   ;;  %s1568_s4 = inlined_call_operand.hbm [shape: f32[1,128], index: 4, kind: input, shape index: {}]   ;;  %s1569_s5 = inlined_call_operand.hbm [shape: f32[1,128], index: 5, kind: input, shape index: {}]   ;;  %s1570_s6 = inlined_call_operand.hbm [shape: f32[1,128], index: 6, kind: input, shape index: {}]   ;;  %s1571_s7 = inlined_call_operand.hbm [shape: f32[16,128], index: 7, kind: output, shape index: {}]  }
   0x1   :  { %14 = vsyncpa [#allocation3 + $0x1], 0 }
   0x2   :  { %15 = vsyncpa [#allocation6], 0 }
   0x3   :  { %16 = vsyncpa [#allocation9], 0 }
   0x4   :  { %17 = vsyncpa [#allocation12], 0 }
   0x5   :  { %18 = vsyncpa [#allocation4], 0 }
   0x6   :  { %20 = vsyncpa [#allocation4 + $0x1], 0  ;;  %s1241_s24 = smov 0   ;;  %s1243_s25 = smov 0  }
   0x7   :  { %s1245_s26 = smov 0   ;;  %s1247_s27 = smov 0  }
   0x8 LB: > { %s1188_s28 = smov [#allocation5]   ;;  %s1262_s30 = sadd.s32 4294967295, %s1186_s27   ;;  %s1186_s27 = sphi %s1247_s27, %s1597_s27   ;;  %s1182_s26 = sphi %s1245_s26, %s1596_s26   ;;  %s1178_s25 = sphi %s1243_s25, %s1595_s25   ;;  %s1174_s24 = sphi %s1241_s24, %s1594_s24  }
   0x9   : > { %s221_s29 = sshll.u32 %s1188_s28, 4  ;;  %p748_p0 = scmp.ge.s32.totalorder %s1186_s27, 1  ;;  %s1267_s29 = int_to_ptr.vmem [resolvable:$true] %s221_s29 }
   0xa   : > { %p1572_p1 = scmp.eq.s32.totalorder %s1262_s30, 0  ;;  %p209_p2 = scmp.lt.s32.totalorder %s1186_s27, 3 }
   0xb   : > { %s1189_s9 = smov [#allocation8]   ;;  %s1190_s12 = smov [#allocation11]  }
   0xc   : > { %p1269_p3 = pnand %p748_p0, %p209_p2  ;;  %s245_s10 = sshll.u32 %s1189_s9, 4  ;;  %s1282_s10 = int_to_ptr.vmem [resolvable:$true] %s245_s10 }
   0xd   : > { %s1284_s13 = sshll.u32 %s1190_s12, 4  ;;  %s910_s16 = scalar_lea.hbm %s1565_s1, 4096  ;;  %s271_s13 = int_to_ptr.vmem [resolvable:$true] %s1284_s13 }
   0xe   : > { %s1575_s8 = scalar_select %p1269_p3, 1, 0 }
   0xf   : > { %p824_p5 = pneg %p1269_p3  ;;  %p911_p7 = scmp.ne.s32.totalorder %s1565_s1, %s910_s16 }
  0x10   : > { %p917_p11 = scmp.lt.u32.totalorder %s910_s16, %s1565_s1 }
  0x11   : > { %p1278_p6 = pnand %p824_p5, %p1572_p1 }
  0x13   : > { %p1294_p8 = pneg %p1278_p6 }
  0x15   : > { %p913_p9 = pnand %p1294_p8, %p911_p7 }
  0x17   : > { %p914_p10 = pneg %p913_p9 }
  0x19   : > { %p919_p12 = pnand %p917_p11, %p914_p10 }
  0x1b   : > { %922 = shalt.err (!%p919_p12)
}
  0x1c   : > { %s923_s22 = scalar_lea.vmem %s1267_s29, 4096  ;;  %p931_p5 = scmp.lt.s32.totalorder %s1267_s29, %s1267_s29 }
  0x1d   : > { %p924_p13 = scmp.ne.s32.totalorder %s1267_s29, %s923_s22  ;;  %p932_p4 = scmp.lt.s32.totalorder %s923_s22, %s923_s22 }
  0x1f   : > { %p926_p0 = pnand %p924_p13, %p1294_p8  ;;  %p933_p7 = por %p932_p4, %p931_p5 }
  0x21   : > { %p927_p2 = pneg %p926_p0 }
  0x23   : > { %p934_p9 = pnand %p933_p7, %p927_p2 }
  0x25   : > { %937 = shalt.err (!%p934_p9)
}
  0x26   : > { %s1191_s23 = smov 256   ;;  %s1192_s28 = smov 16  }
  0x27   : > { %827 = dma.hbm_to_vmem [thread:$0]  (!%p1278_p6), %s1565_s1, 4096, %s1267_s29, [#allocation6], %s1191_s23, %s1191_s23, %s1192_s28  }
  0x28   : > { %s938_s16 = scalar_lea.hbm %s1567_s3, 4096 }
  0x29   : > { %p939_p4 = scmp.ne.s32.totalorder %s1567_s3, %s938_s16  ;;  %p945_p12 = scmp.lt.u32.totalorder %s938_s16, %s1567_s3 }
  0x2b   : > { %p941_p10 = pnand %p939_p4, %p1294_p8 }
  0x2d   : > { %p942_p11 = pneg %p941_p10 }
  0x2f   : > { %p947_p13 = pnand %p945_p12, %p942_p11 }
  0x31   : > { %950 = shalt.err (!%p947_p13)
}
  0x32   : > { %s951_s29 = scalar_lea.vmem %s1282_s10, 4096  ;;  %p959_p7 = scmp.lt.s32.totalorder %s1282_s10, %s1282_s10 }
  0x33   : > { %p952_p0 = scmp.ne.s32.totalorder %s1282_s10, %s951_s29  ;;  %p960_p9 = scmp.lt.s32.totalorder %s951_s29, %s951_s29 }
  0x35   : > { %p954_p2 = pnand %p952_p0, %p1294_p8  ;;  %p961_p4 = por %p960_p9, %p959_p7 }
  0x37   : > { %p955_p5 = pneg %p954_p2 }
  0x39   : > { %p962_p10 = pnand %p961_p4, %p955_p5 }
  0x3b   : > { %965 = shalt.err (!%p962_p10)
}
  0x3c   : > { %s1193_s22 = smov 128   ;;  %s1194_s23 = smov 8  }
  0x3d   : > { %833 = dma.hbm_to_vmem [thread:$0]  (!%p1278_p6), %s1567_s3, 4096, %s1282_s10, [#allocation9], %s1193_s22, %s1193_s22, %s1194_s23  }
  0x3e   : > { %s966_s15 = scalar_lea.hbm %s1569_s5, 16 }
  0x3f   : > { %p967_p11 = scmp.ne.s32.totalorder %s1569_s5, %s966_s15  ;;  %p973_p0 = scmp.lt.u32.totalorder %s966_s15, %s1569_s5 }
  0x41   : > { %p969_p12 = pnand %p967_p11, %p1294_p8 }
  0x43   : > { %p970_p13 = pneg %p969_p12 }
  0x45   : > { %p975_p2 = pnand %p973_p0, %p970_p13 }
  0x47   : > { %978 = shalt.err (!%p975_p2)
}
  0x48   : > { %s979_s21 = scalar_lea.vmem %s271_s13, 16  ;;  %s986_s10 = scalar_lea.vmem %s271_s13, 32 }
  0x49   : > { %p980_p5 = scmp.ne.s32.totalorder %s271_s13, %s979_s21  ;;  %p987_p4 = scmp.lt.s32.totalorder %s271_s13, %s271_s13 }
  0x4a   : > { %p988_p10 = scmp.lt.s32.totalorder %s986_s10, %s979_s21 }
  0x4b   : > { %p982_p7 = pnand %p980_p5, %p1294_p8 }
  0x4c   : > { %p989_p1 = por %p988_p10, %p987_p4 }
  0x4d   : > { %p983_p9 = pneg %p982_p7 }
  0x4f   : > { %p990_p3 = pnand %p989_p1, %p983_p9 }
  0x51   : > { %993 = shalt.err (!%p990_p3)
}
  0x52   : > { %839 = dma.hbm_to_vmem [thread:$0]  (!%p1278_p6), %s1569_s5, 16, %s271_s13, [#allocation12]  }
  0x53   : > { %s1195_s23 = smov [#allocation7]   ;;  %s1196_s9 = smov [#allocation10]  }
  0x54   : > { %s235_s28 = sshll.u32 %s1195_s23, 4  ;;  %s259_s12 = sshll.u32 %s1196_s9, 4  ;;  %s236_s28 = int_to_ptr.vmem [resolvable:$true] %s235_s28  ;;  %s260_s12 = int_to_ptr.vmem [resolvable:$true] %s259_s12 }
  0x55   : > { %s994_s16 = scalar_lea.hbm %s1566_s2, 32 }
  0x56   : > { %p995_p1 = scmp.ne.s32.totalorder %s1566_s2, %s994_s16  ;;  %p1001_p12 = scmp.lt.u32.totalorder %s994_s16, %s1566_s2 }
  0x58   : > { %p997_p3 = pnand %p995_p1, %p1294_p8 }
  0x5a   : > { %p998_p11 = pneg %p997_p3 }
  0x5c   : > { %p1003_p13 = pnand %p1001_p12, %p998_p11 }
  0x5e   : > { %1006 = shalt.err (!%p1003_p13)
}
  0x5f   : > { %s1007_s13 = scalar_lea.vmem %s236_s28, 32  ;;  %p1015_p7 = scmp.lt.s32.totalorder %s236_s28, %s236_s28 }
  0x60   : > { %p1008_p0 = scmp.ne.s32.totalorder %s236_s28, %s1007_s13  ;;  %p1016_p9 = scmp.lt.s32.totalorder %s1007_s13, %s1007_s13 }
  0x62   : > { %p1010_p2 = pnand %p1008_p0, %p1294_p8  ;;  %p1017_p4 = por %p1016_p9, %p1015_p7 }
  0x64   : > { %p1011_p5 = pneg %p1010_p2 }
  0x66   : > { %p1018_p10 = pnand %p1017_p4, %p1011_p5 }
  0x68   : > { %1021 = shalt.err (!%p1018_p10)
}
  0x69   : > { %830 = dma.hbm_to_vmem [thread:$0]  (!%p1278_p6), %s1566_s2, 32, %s236_s28, [#allocation6]  }
  0x6a   : > { %s1022_s9 = scalar_lea.hbm %s1568_s4, 16 }
  0x6b   : > { %p1023_p1 = scmp.ne.s32.totalorder %s1568_s4, %s1022_s9  ;;  %p1029_p12 = scmp.lt.u32.totalorder %s1022_s9, %s1568_s4 }
  0x6d   : > { %p1025_p3 = pnand %p1023_p1, %p1294_p8 }
  0x6f   : > { %p1026_p11 = pneg %p1025_p3 }
  0x71   : > { %p1031_p13 = pnand %p1029_p12, %p1026_p11 }
  0x73   : > { %1034 = shalt.err (!%p1031_p13)
}
  0x74   : > { %s1035_s18 = scalar_lea.vmem %s260_s12, 16  ;;  %s1042_s28 = scalar_lea.vmem %s260_s12, 32 }
  0x75   : > { %p1036_p0 = scmp.ne.s32.totalorder %s260_s12, %s1035_s18  ;;  %p1043_p7 = scmp.lt.s32.totalorder %s260_s12, %s260_s12 }
  0x76   : > { %p1044_p9 = scmp.lt.s32.totalorder %s1042_s28, %s1035_s18 }
  0x77   : > { %p1038_p2 = pnand %p1036_p0, %p1294_p8 }
  0x78   : > { %p1045_p4 = por %p1044_p9, %p1043_p7 }
  0x79   : > { %p1039_p5 = pneg %p1038_p2 }
  0x7b   : > { %p1046_p10 = pnand %p1045_p4, %p1039_p5 }
  0x7d   : > { %1049 = shalt.err (!%p1046_p10)
}
  0x7e   : > { %836 = dma.hbm_to_vmem [thread:$0]  (!%p1278_p6), %s1568_s4, 16, %s260_s12, [#allocation9]  }
  0x7f   : > { %s1197_s13 = smov [#allocation13]   ;;  %s1050_s23 = scalar_lea.hbm %s1570_s6, 16 }
  0x80   : > { %s281_s10 = sshll.u32 %s1197_s13, 4  ;;  %p1051_p1 = scmp.ne.s32.totalorder %s1570_s6, %s1050_s23  ;;  %s282_s10 = int_to_ptr.vmem [resolvable:$true] %s281_s10 }
  0x81   : > { %p1057_p12 = scmp.lt.u32.totalorder %s1050_s23, %s1570_s6 }
  0x82   : > { %p1053_p3 = pnand %p1051_p1, %p1294_p8 }
  0x84   : > { %p1054_p11 = pneg %p1053_p3 }
  0x86   : > { %p1059_p13 = pnand %p1057_p12, %p1054_p11 }
  0x88   : > { %1062 = shalt.err (!%p1059_p13)
}
  0x89   : > { %s1063_s12 = scalar_lea.vmem %s282_s10, 16  ;;  %s1070_s17 = scalar_lea.vmem %s282_s10, 32 }
  0x8a   : > { %p1064_p0 = scmp.ne.s32.totalorder %s282_s10, %s1063_s12  ;;  %p1071_p7 = scmp.lt.s32.totalorder %s282_s10, %s282_s10 }
  0x8b   : > { %p1072_p9 = scmp.lt.s32.totalorder %s1070_s17, %s1063_s12 }
  0x8c   : > { %p1066_p2 = pnand %p1064_p0, %p1294_p8 }
  0x8d   : > { %p1073_p4 = por %p1072_p9, %p1071_p7 }
  0x8e   : > { %p1067_p5 = pneg %p1066_p2 }
  0x90   : > { %p1074_p10 = pnand %p1073_p4, %p1067_p5 }
  0x92   : > { %1077 = shalt.err (!%p1074_p10)
}
  0x93   : > { %842 = dma.hbm_to_vmem [thread:$0]  (!%p1278_p6), %s1570_s6, 16, %s282_s10, [#allocation12]  }
  0x94   : > { %s747_s19 = sadd.s32 4294967294, %s1186_s27   ;;  %s1413_s11 = sadd.s32 1, %s1186_s27  }
  0x95   : > { %s30_s20 = ssub.s32 %s1186_s27, %s1413_s11  ;;  %s33_s21 = sadd.s32 1, %s1182_s26 }
  0x96   : > { %p31_p8 = scmp.eq.s32.totalorder %s30_s20, 0  ;;  %p40_p1 = scmp.ne.s32.totalorder %s1182_s26, %s1178_s25 }
  0x97   : > { %p41_p3 = scmp.eq.s32.totalorder %s1186_s27, 0  ;;  %p46_p11 = scmp.ne.s32.totalorder %s1178_s25, %s1174_s24 }
  0x98   : > { %s1424_s13 = scalar_select %p31_p8, %s1182_s26, %s33_s21  }
  0x99   : > { %p1426_p12 = por %p41_p3, %p40_p1  ;;  %p1579_p13 = scmp.eq.s32.totalorder %s1262_s30, 0 }
  0x9a   : > { %p196_p0 = scmp.eq.s32.totalorder %s1262_s30, 1  ;;  %p202_p2 = scmp.eq.s32.totalorder %s747_s19, 1 }
  0x9b   : > { %p1432_p6 = por %p1579_p13, %p46_p11  ;;  %p857_p5 = scmp.lt.s32.totalorder %s1186_s27, 2 }
  0x9c   : > { %s292_s22 = sand.u32 1, %s1182_s26   ;;  %p1439_p7 = por %p196_p0, %p40_p1 }
  0x9d   : > { %p1443_p9 = por %p202_p2, %p46_p11  ;;  %s756_s14 = sshll.u32 %s292_s22, 3 }
  0x9e   : > { %s1581_s23 = scalar_select %p1439_p7, 1, 0 }
  0x9f   : > { %s1582_s9 = scalar_select %p1443_p9, 1, 0 }
  0xa0   : > { %s757_s15 = sshll.u32 %s1186_s27, 7  ;;  %s296_s18 = scalar_lea.vmem [#allocation2], %s756_s14 }
  0xa1   : > { %s1451_s17 = scalar_lea.hbm %s1564_s0, %s757_s15  ;;  %s303_s28 = sshll.u32 %s296_s18, 4  ;;  %s1453_s28 = int_to_ptr.vmem [resolvable:$true] %s303_s28 }
  0xa2   : > { %p1457_p4 = pnand %p857_p5, %p1426_p12  ;;  %s293_s20 = scalar_lea.sflag [#allocation3], %s292_s22 }
  0xa3   : > { %s1078_s21 = scalar_lea.hbm %s1451_s17, 128  ;;  %s1083_s16 = scalar_lea.hbm %s1564_s0, 256 }
  0xa4   : > { %p1079_p10 = scmp.ne.s32.totalorder %s1451_s17, %s1078_s21  ;;  %p1080_p8 = pneg %p1457_p4 }
  0xa5   : > { %p1084_p11 = scmp.lt.u32.totalorder %s1451_s17, %s1564_s0  ;;  %p1085_p12 = scmp.lt.u32.totalorder %s1083_s16, %s1078_s21 }
  0xa6   : > { %p1081_p1 = pnand %p1080_p8, %p1079_p10  ;;  %p1087_p0 = scmp.lt.u32.totalorder %s1078_s21, %s1451_s17 }
  0xa7   : > { %p1086_p13 = por %p1085_p12, %p1084_p11 }
  0xa8   : > { %p1082_p3 = pneg %p1081_p1 }
  0xa9   : > { %p1088_p2 = por %p1087_p0, %p1086_p13 }
  0xab   : > { %p1089_p5 = pnand %p1088_p2, %p1082_p3 }
  0xad   : > { %1092 = shalt.err (!%p1089_p5)
}
  0xae   : > { %s1093_s22 = scalar_lea.vmem %s1453_s28, 128  ;;  %s1198_s18 = smov [#allocation2]  }
  0xaf   : > { %p1094_p10 = scmp.ne.s32.totalorder %s1453_s28, %s1093_s22  ;;  %s1098_s14 = sshll.u32 %s1198_s18, 4  ;;  %s1099_s14 = int_to_ptr.vmem [resolvable:$false] %s1098_s14 }
  0xb0   : > { %s1100_s15 = scalar_lea.vmem %s1099_s14, 256  ;;  %p1101_p7 = scmp.lt.s32.totalorder %s1453_s28, %s1099_s14 }
  0xb1   : > { %p1096_p1 = pnand %p1094_p10, %p1080_p8  ;;  %p1102_p11 = scmp.lt.s32.totalorder %s1100_s15, %s1093_s22 }
  0xb3   : > { %p1097_p9 = pneg %p1096_p1  ;;  %p1103_p12 = por %p1102_p11, %p1101_p7 }
  0xb5   : > { %p1104_p13 = pnand %p1103_p12, %p1097_p9 }
  0xb7   : > { %1107 = shalt.err (!%p1104_p13)
}
  0xb8   : > { %846 = dma.hbm_to_vmem [thread:$0]  (!%p1457_p4), %s1451_s17, 128, %s1453_s28, %s293_s20  }
  0xb9   : > { %p1584_p3 = scmp.ne.s32.totalorder %s1575_s8, 0 }
  0xba   : > { %s1489_s21 = sand.u32 (!%p1584_p3), 1, %s1178_s25  }
  0xbb   : > { %312 = sbr.rel (%p1584_p3) target bundleno = 1003 (0x3eb), region = 48  ;;  %s759_s16 = sshll.u32 (!%p1584_p3), %s1489_s21, 3 }
  0xbc   : > { %s315_s29 = scalar_lea.sflag (!%p1584_p3), [#allocation3], %s1489_s21  ;;  %s1495_s12 = scalar_lea.vmem (!%p1584_p3), [#allocation2], %s759_s16 }
  0xc2   : > { %1153 = dma.done.wait (%p1432_p6), %s315_s29, 128  }
  0xc3   : > { %1155 = vsyncadd (%p1432_p6), %s315_s29, 4294967168  ;;  %p1585_p7 = scmp.eq.s32.totalorder %s1262_s30, 0 }
  0xc5   : > { %1157 = dma.done.wait (%p1585_p7), [#allocation6], 4128   ;;  %p1586_p9 = pmov %p1585_p7 }
  0xc6   : > { %p1587_p4 = pmov %p1585_p7 }
  0xc7   : > { %1159 = vsyncadd (%p1586_p9), [#allocation6], 4294963168 }
  0xc8   : > { %1161 = dma.done.wait (%p1587_p4), [#allocation9], 4112   ;;  %p1588_p8 = pmov %p1587_p4 }
  0xc9   : > { %p1589_p0 = pmov %p1587_p4 }
  0xca   : > { %1163 = vsyncadd (%p1588_p8), [#allocation9], 4294963184 }
  0xcb   : > { %1165 = dma.done.wait (%p1589_p0), [#allocation12], 32   ;;  %p1590_p2 = pmov %p1589_p0 }
  0xcc   : > { %v1199_v0 = vmov 0   ;;  %v377_v1 = vld [vmem:[#allocation5 + $0x8] sm:$0xff]  ;;  %v379_v2 = vld [vmem:[#allocation5 + $0x18] sm:$0xff]  ;;  %v376_v3 = vld [vmem:[#allocation5] sm:$0xff]  ;;  %s771_s8 = sshll.u32 %s1262_s30, 7  ;;  %s372_s10 = scalar_lea.vmem [#allocation14], %s759_s16 }
  0xcd   : > { %1167 = vsyncadd (%p1590_p2), [#allocation12], 4294967264  ;;  %468 = vmatprep.mubr.bf16.mxu0 %v1199_v0  ;;  %v409_v4 = vpack.c.bf16 %v379_v2, %v377_v1  ;;  %v378_v5 = vld [vmem:[#allocation5 + $0x10] sm:$0xff]  ;;  %v381_v6 = vld [vmem:[#allocation5 + $0x28] sm:$0xff]  ;;  %s620_s17 = sshll.u32 %s372_s10, 4  ;;  %s1520_s20 = scalar_lea.hbm %s1571_s7, %s771_s8  ;;  %s1522_s17 = int_to_ptr.vmem [resolvable:$true] %s620_s17 }
  0xce   : > { %v383_v7 = vld [vmem:[#allocation5 + $0x38] sm:$0xff]  ;;  %v408_v8 = vpack.c.bf16 %v378_v5, %v376_v3  ;;  %v380_v10 = vld [vmem:[#allocation5 + $0x20] sm:$0xff]  ;;  %v382_v11 = vld [vmem:[#allocation5 + $0x30] sm:$0xff]  ;;  %s607_s22 = scalar_lea.sflag [#allocation4], %s1489_s21  ;;  %s1108_s18 = scalar_lea.vmem %s1522_s17, 128 }
  0xcf   : > { %v411_v9 = vpack.c.bf16 %v383_v7, %v381_v6  ;;  %v385_v12 = vld [vmem:[#allocation5 + $0x48] sm:$0xff]  ;;  %436 = vmatprep.subr.bf16.mxu0 %v409_v4  ;;  %v387_v13 = vld [vmem:[#allocation5 + $0x58] sm:$0xff]  ;;  %v410_v14 = vpack.c.bf16 %v382_v11, %v380_v10  ;;  %v384_v16 = vld [vmem:[#allocation5 + $0x40] sm:$0xff]  ;;  %p1109_p6 = scmp.ne.s32.totalorder %s1522_s17, %s1108_s18  ;;  %p1591_p5 = scmp.ne.s32.totalorder %s1581_s23, 0 }
  0xd0   : > { %437 = vmatpush1.bf16.msra.mxu0 %v408_v8  ;;  %v413_v15 = vpack.c.bf16 %v387_v13, %v385_v12  ;;  %v386_v17 = vld [vmem:[#allocation5 + $0x50] sm:$0xff]  ;;  %v389_v18 = vld [vmem:[#allocation5 + $0x68] sm:$0xff]  ;;  %v391_v19 = vld [vmem:[#allocation5 + $0x78] sm:$0xff]  ;;  %s1200_s30 = smov [#allocation14]  }
  0xd1   : > { %438 = vmatprep.subr.bf16.mxu0 %v411_v9  ;;  %v412_v20 = vpack.c.bf16 %v386_v17, %v384_v16  ;;  %v415_v21 = vpack.c.bf16 %v391_v19, %v389_v18  ;;  %v388_v22 = vld [vmem:[#allocation5 + $0x60] sm:$0xff]  ;;  %v390_v23 = vld [vmem:[#allocation5 + $0x70] sm:$0xff]  ;;  %v393_v24 = vld [vmem:[#allocation5 + $0x88] sm:$0xff]  ;;  %p1110_p10 = pnand %p1109_p6, %p1591_p5  ;;  %s1112_s14 = sshll.u32 %s1200_s30, 4  ;;  %s1113_s14 = int_to_ptr.vmem [resolvable:$false] %s1112_s14 }
  0xd2   : > { %v395_v25 = vld [vmem:[#allocation5 + $0x98] sm:$0xff]  ;;  %v392_v26 = vld [vmem:[#allocation5 + $0x80] sm:$0xff]  ;;  %v394_v27 = vld [vmem:[#allocation5 + $0x90] sm:$0xff]  ;;  %v414_v31 = vpack.c.bf16 %v390_v23, %v388_v22  ;;  %s1114_s15 = scalar_lea.vmem %s1113_s14, 256  ;;  %p1115_p11 = scmp.lt.s32.totalorder %s1522_s17, %s1113_s14 }
  0xd3   : > { %v497_v28 = vld [vmem:[#allocation8 + $0x80] sm:$0xff]  ;;  %v498_v29 = vld [vmem:[#allocation8 + $0x88] sm:$0xff]  ;;  %v499_v34 = vld [vmem:[#allocation8 + $0x90] sm:$0xff]  ;;  %v417_v36 = vpack.c.bf16 %v395_v25, %v393_v24  ;;  %v416_v46 = vpack.c.bf16 %v394_v27, %v392_v26  ;;  %p1111_p1 = pneg %p1110_p10  ;;  %p1116_p12 = scmp.lt.s32.totalorder %s1114_s15, %s1108_s18 }
  0xd4   : > { %439 = vmatpush1.bf16.msra.mxu0 %v410_v14  ;;  %v481_v30 = vld [vmem:[#allocation8] sm:$0xff]  ;;  %v521_v32 = vpack.c.bf16 %v498_v29, %v497_v28  ;;  %v482_v33 = vld [vmem:[#allocation8 + $0x8] sm:$0xff]  ;;  %v500_v35 = vld [vmem:[#allocation8 + $0x98] sm:$0xff] }
  0xd5   : > { %440 = vmatprep.subr.bf16.mxu0 %v413_v15  ;;  %v513_v37 = vpack.c.bf16 %v482_v33, %v481_v30  ;;  %v522_v38 = vpack.c.bf16 %v500_v35, %v499_v34  ;;  %v483_v39 = vld [vmem:[#allocation8 + $0x10] sm:$0xff]  ;;  %v484_v40 = vld [vmem:[#allocation8 + $0x18] sm:$0xff]  ;;  %v501_v41 = vld [vmem:[#allocation8 + $0xa0] sm:$0xff]  ;;  %v426_v35 = vlaneseq  ;;  %p1117_p13 = por %p1116_p12, %p1115_p11 }
  0xd6   : > { %v397_v42 = vld [vmem:[#allocation5 + $0xa8] sm:$0xff]  ;;  %v399_v43 = vld [vmem:[#allocation5 + $0xb8] sm:$0xff]  ;;  %774 = vmatprep.subr.bf16.mxu1 %v521_v32  ;;  %v514_v45 = vpack.c.bf16 %v484_v40, %v483_v39  ;;  %v396_v47 = vld [vmem:[#allocation5 + $0xa0] sm:$0xff] }
  0xd7   : > { %v502_v44 = vld [vmem:[#allocation8 + $0xa8] sm:$0xff]  ;;  %775 = vmatpush3.bf16.msra.mxu1 %v513_v37  ;;  %v485_v49 = vld [vmem:[#allocation8 + $0x20] sm:$0xff]  ;;  %v419_v51 = vpack.c.bf16 %v399_v43, %v397_v42  ;;  %v503_v53 = vld [vmem:[#allocation8 + $0xb0] sm:$0xff]  ;;  %p1118_p3 = pnand %p1117_p13, %p1111_p1 }
  0xd8   : > { %441 = vmatpush1.bf16.msra.mxu0 %v412_v20  ;;  %776 = vmatprep.subr.bf16.mxu1 %v522_v38  ;;  %v523_v48 = vpack.c.bf16 %v502_v44, %v501_v41  ;;  %v486_v50 = vld [vmem:[#allocation8 + $0x28] sm:$0xff]  ;;  %v504_v54 = vld [vmem:[#allocation8 + $0xb8] sm:$0xff]  ;;  %v487_v61 = vld [vmem:[#allocation8 + $0x30] sm:$0xff] }
  0xd9   : > { %442 = vmatprep.subr.bf16.mxu0 %v415_v21  ;;  %v398_v52 = vld [vmem:[#allocation5 + $0xb0] sm:$0xff]  ;;  %v401_v55 = vld [vmem:[#allocation5 + $0xc8] sm:$0xff]  ;;  %v403_v56 = vld [vmem:[#allocation5 + $0xd8] sm:$0xff]  ;;  %v515_v57 = vpack.c.bf16 %v486_v50, %v485_v49  ;;  %v524_v60 = vpack.c.bf16 %v504_v54, %v503_v53 }
  0xda   : > { %v418_v58 = vpack.c.bf16 %v398_v52, %v396_v47  ;;  %v400_v59 = vld [vmem:[#allocation5 + $0xc0] sm:$0xff]  ;;  %v421_v63 = vpack.c.bf16 %v403_v56, %v401_v55  ;;  %v402_v0 = vld [vmem:[#allocation5 + $0xd0] sm:$0xff]  ;;  %v405_v3 = vld [vmem:[#allocation5 + $0xe8] sm:$0xff] }
  0xdb   : > { %777 = vmatpush3.bf16.msra.mxu1 %v514_v45  ;;  %v488_v62 = vld [vmem:[#allocation8 + $0x38] sm:$0xff]  ;;  %v505_v1 = vld [vmem:[#allocation8 + $0xc0] sm:$0xff]  ;;  %v506_v2 = vld [vmem:[#allocation8 + $0xc8] sm:$0xff]  ;;  %v420_v6 = vpack.c.bf16 %v402_v0, %v400_v59 }
  0xdc   : > { %443 = vmatpush1.bf16.msra.mxu0 %v414_v31  ;;  %778 = vmatprep.subr.bf16.mxu1 %v523_v48  ;;  %v407_v4 = vld [vmem:[#allocation5 + $0xf8] sm:$0xff]  ;;  %v516_v5 = vpack.c.bf16 %v488_v62, %v487_v61  ;;  %v404_v7 = vld [vmem:[#allocation5 + $0xe0] sm:$0xff]  ;;  %v525_v8 = vpack.c.bf16 %v506_v2, %v505_v1  ;;  %v490_v10 = vld [vmem:[#allocation8 + $0x48] sm:$0xff] }
  0xdd   : > { %444 = vmatprep.subr.bf16.mxu0 %v417_v36  ;;  %v489_v9 = vld [vmem:[#allocation8 + $0x40] sm:$0xff]  ;;  %v423_v11 = vpack.c.bf16 %v407_v4, %v405_v3  ;;  %v406_v12 = vld [vmem:[#allocation5 + $0xf0] sm:$0xff]  ;;  %v508_v14 = vld [vmem:[#allocation8 + $0xd8] sm:$0xff]  ;;  %v427_v36 = vshrl.u32 %v426_v35, 7 }
  0xde   : > { %v507_v13 = vld [vmem:[#allocation8 + $0xd0] sm:$0xff]  ;;  %v517_v15 = vpack.c.bf16 %v490_v10, %v489_v9  ;;  %v422_v16 = vpack.c.bf16 %v406_v12, %v404_v7  ;;  %v492_v20 = vld [vmem:[#allocation8 + $0x58] sm:$0xff]  ;;  %v509_v23 = vld [vmem:[#allocation8 + $0xe0] sm:$0xff] }
  0xdf   : > { %779 = vmatpush3.bf16.msra.mxu1 %v515_v57  ;;  %v374_v17 = vld [vmem:[%s1495_s12] sm:$0xff]  ;;  %v526_v18 = vpack.c.bf16 %v508_v14, %v507_v13  ;;  %v493_v26 = vld [vmem:[#allocation8 + $0x60] sm:$0xff]  ;;  %v428_v37 = vsub.s32 0, %v427_v36  ;;  %v424_v38 = vld [vmem:[#allocation7] sm:$0x3]  ;;  %v432_v39 = vsub.s32 1, %v427_v36 }
  0xe0   : > { %445 = vmatpush1.bf16.msra.mxu0 %v416_v46  ;;  %780 = vmatprep.subr.bf16.mxu1 %v524_v60  ;;  %v491_v19 = vld [vmem:[#allocation8 + $0x50] sm:$0xff]  ;;  %v375_v21 = vpack.c.bf16 %v374_v17, %v374_v17  ;;  %v510_v24 = vld [vmem:[#allocation8 + $0xe8] sm:$0xff]  ;;  %v512_v30 = vld [vmem:[#allocation8 + $0xf8] sm:$0xff] }
  0xe1   : > { %446 = vmatprep.subr.bf16.mxu0 %v419_v51  ;;  %v518_v22 = vpack.c.bf16 %v492_v20, %v491_v19  ;;  %v527_v25 = vpack.c.bf16 %v510_v24, %v509_v23  ;;  %v494_v27 = vld [vmem:[#allocation8 + $0x68] sm:$0xff]  ;;  %v511_v29 = vld [vmem:[#allocation8 + $0xf0] sm:$0xff]  ;;  %v496_v33 = vld [vmem:[#allocation8 + $0x78] sm:$0xff]  ;;  %v429_v40 = vrot.slane %v424_v38, %v428_v37  ;;  %v433_v41 = vrot.slane %v424_v38, %v432_v39 }
  0xe2   : > { %v519_v28 = vpack.c.bf16 %v494_v27, %v493_v26  ;;  %v528_v31 = vpack.c.bf16 %v512_v30, %v511_v29  ;;  %v495_v32 = vld [vmem:[#allocation8 + $0x70] sm:$0xff]  ;;  %v767_v53 = vld [vmem:[#allocation10] ss:$0 sm:$0xff]  ;;  %v768_v4 = vld [vmem:[#allocation11] ss:$0 sm:$0xff] }
  0xe3   : > { %781 = vmatpush3.bf16.msra.mxu1 %v516_v5  ;;  %v520_v34 = vpack.c.bf16 %v496_v33, %v495_v32 }
  0xe4   : > { %447 = vmatpush1.bf16.msra.mxu0 %v418_v58  ;;  %782 = vmatprep.subr.bf16.mxu1 %v525_v8 }
  0xe5   : > { %448 = vmatprep.subr.bf16.mxu0 %v421_v63 }
  0xe7   : > { %783 = vmatpush3.bf16.msra.mxu1 %v517_v15 }
  0xe8   : > { %449 = vmatpush1.bf16.msra.mxu0 %v420_v6  ;;  %784 = vmatprep.subr.bf16.mxu1 %v526_v18  ;;  %v769_v6 = vld [vmem:[#allocation13] ss:$0 sm:$0xff] }
  0xe9   : > { %450 = vmatprep.subr.bf16.mxu0 %v423_v11 }
  0xeb   : > { %785 = vmatpush3.bf16.msra.mxu1 %v518_v22 }
  0xec   : > { %451 = vmatpush1.bf16.msra.mxu0 %v422_v16  ;;  %786 = vmatprep.subr.bf16.mxu1 %v527_v25 }
  0xef   : > { %469 = vmatmul.mubr.bf16.vlgmr.msra.gmra.mrb[0].mxu0 %v375_v21  ;;  %787 = vmatpush3.bf16.msra.mxu1 %v519_v28 }
  0xf0   : > { %788 = vmatprep.subr.bf16.mxu1 %v528_v31 }
  0xf3   : > { %789 = vmatpush3.bf16.msra.mxu1 %v520_v34 }
 0x1c2   : > { %v470_v42 = vpop.f32.mrb[0].mxu0 }
 0x1c3   : > { %v471_v43 = vadd.f32 %v470_v42, %v429_v40  ;;  %v472_v44 = vpop.f32.mrb[1].mxu0 }
 0x1c4   : > { %v473_v45 = vadd.f32 %v472_v44, %v433_v41  ;;  %v474_v46 = vpop.f32.mrb[2].mxu0 }
 0x1c5   : > { %v477_v47 = vmax.f32 %v471_v43, 0.0  ;;  %v475_v48 = vpop.f32.mrb[3].mxu0 }
 0x1c6   : > { %v478_v49 = vmax.f32 %v473_v45, 0.0 }
 0x1c7   : > { %v479_v51 = vpack.c.bf16 %v477_v47, %v477_v47 }
 0x1c8   : > { %v480_v50 = vpack.c.bf16 %v478_v49, %v478_v49 }
 0x1ca   : > { %568 = vmatprep.mubr.bf16.mxu1 %v480_v50 }
 0x1cb   : > { %569 = vmatmul.mubr.bf16.vlgmr.msra.gmra.mrb[0].mxu1 %v479_v51 }
 0x29e   : > { %v790_v52 = vpop.f32.mrb[0].mxu1 }
 0x29f   : > { %v791_v54 = vpop.f32.mrb[1].mxu1 }
 0x2a0   : > { %v792_v55 = vadd.f32 %v791_v54, %v790_v52  ;;  %v793_v56 = vpop.f32.mrb[2].mxu1 }
 0x2a1   : > { %v794_v57 = vpop.f32.mrb[3].mxu1 }
 0x2a2   : > { %v571_v58 = vadd.f32 %v792_v55, %v767_v53 }
 0x2a4   : > { %v576_v59 = vadd.f32 %v571_v58, %v374_v17 }
 0x2a6   : > { %577 = vadd.xlane.f32.xlu0 %v576_v59 }
 0x333   : > { %v578_v60 = vpop.xlane.xlu0 %577 }
 0x334   : > { %v580_v61 = vmul.f32 0.0078125, %v578_v60 }
 0x336   : > { %v581_v62 = vsub.f32 %v576_v59, %v580_v61 }
 0x338   : > { %v582_v63 = vmul.f32 %v581_v62, %v581_v62 }
 0x33a   : > { %583 = vadd.xlane.f32.xlu0 %v582_v63 }
 0x3c7   : > { %v584_v0 = vpop.xlane.xlu0 %583 }
 0x3c8   : > { %v585_v1 = vmul.f32 0.0078125, %v584_v0 }
 0x3ca   : > { %v586_v2 = vadd.f32 1e-05, %v585_v1 }
 0x3cc   : > { %908 = vrsqrt.f32 %v586_v2 }
 0x3d6   : > { %v909_v3 = vpop.eup %908 }
 0x3d7   : > { %v588_v5 = vmul.f32 %v909_v3, %v581_v62 }
 0x3d9   : > { %v596_v7 = vmul.f32 %v768_v4, %v588_v5 }
 0x3db   : > { %v604_v8 = vadd.f32 %v769_v6, %v596_v7 }
 0x3dd   : > { %605 = vst [vmem:[%s372_s10] sm:$0xff] %v604_v8 }
 0x3de   : > { %1121 = shalt.err (!%p1118_p3)
}
 0x3df   : > { %s1122_s21 = scalar_lea.hbm %s1520_s20, 128  ;;  %s1126_s12 = scalar_lea.hbm %s1571_s7, 256 }
 0x3e0   : > { %p1123_p7 = scmp.ne.s32.totalorder %s1520_s20, %s1122_s21  ;;  %p1127_p8 = scmp.lt.u32.totalorder %s1520_s20, %s1571_s7 }
 0x3e1   : > { %p1128_p0 = scmp.lt.u32.totalorder %s1126_s12, %s1122_s21  ;;  %p1130_p6 = scmp.lt.u32.totalorder %s1122_s21, %s1520_s20 }
 0x3e2   : > { %p1124_p9 = pnand %p1123_p7, %p1591_p5 }
 0x3e3   : > { %p1129_p2 = por %p1128_p0, %p1127_p8 }
 0x3e4   : > { %p1125_p4 = pneg %p1124_p9 }
 0x3e5   : > { %p1131_p10 = por %p1130_p6, %p1129_p2 }
 0x3e7   : > { %p1132_p1 = pnand %p1131_p10, %p1125_p4 }
 0x3e9   : > { %1135 = shalt.err (!%p1132_p1)
}
 0x3ea   : > { %822 = dma.vmem_to_hbm [thread:$0]  (%p1591_p5), %s1522_s17, 128, %s1520_s20, %s607_s22  }
 0x3eb PF: > { %s632_s28 = sand.u32 1, %s1174_s24   ;;  %p1592_p11 = scmp.ne.s32.totalorder %s1582_s9, 0 }
 0x3ec   : > { %p1593_p12 = scmp.ge.s32.totalorder %s1186_s27, 2  ;;  %s633_s19 = scalar_lea.sflag [#allocation4], %s632_s28 }
 0x3ee   : > { %p848_p13 = pnand %p1593_p12, %p1592_p11 }
 0x3f0   : > { %1169 = dma.done.wait (!%p848_p13), %s633_s19, 128  }
 0x3f1   : > { %1171 = vsyncadd (!%p848_p13), %s633_s19, 4294967168  ;;  %p23_p3 = scmp.ge.s32.totalorder %s1413_s11, 4   ;;  %s1594_s24 = smov %s1178_s25 }
 0x3f2   : > { %s1595_s25 = smov %s1182_s26  ;;  %s1596_s26 = smov %s1424_s13 }
 0x3f3   : > { %s1597_s27 = smov %s1413_s11  ;;  %25 = sbr.rel (!%p23_p3) target bundleno = 8 (0x8), region = 117 }
 0x3fa   :  { %638 = vsyncpa [#allocation3], 1 }
 0x3fb   :  { %640 = vsyncpa [#allocation3 + $0x1], 1 }
 0x3fc   :  { %641 = vsyncpa [#allocation6], 1 }
 0x3fd   :  { %642 = vsyncpa [#allocation9], 1 }
 0x3fe   :  { %643 = vsyncpa [#allocation12], 1 }
 0x3ff   :  { %644 = vsyncpa [#allocation4], 1 }
 0x400   :  { %646 = vsyncpa [#allocation4 + $0x1], 1 }

// kernel: transformer_forward.41
= control target key start
LH: loop header
LB: loop body
LE: loop exit
PB: predicated region body
PF: predicated region fallthrough
CT: control target
= control target key end

     0   :  { %s1612_s0 = inlined_call_operand.hbm [shape: f32[2,8,128], index: 0, kind: input, shape index: {}]   ;;  %s1613_s1 = inlined_call_operand.hbm [shape: f32[2,8,256], index: 1, kind: input, shape index: {}, may-alias: {1,2}]   ;;  %s1614_s2 = inlined_call_operand.hbm [shape: f32[2,8,256], index: 2, kind: input, shape index: {}, may-alias: {1,2}]   ;;  %s1615_s3 = inlined_call_operand.hbm [shape: f32[2,8,128], index: 3, kind: output, shape index: {}]  }
   0x1   :  { %1622 = sst [smem:[#allocation14_spill]] %s1613_s1 }
   0x2   :  { %8 = vsyncpa [#allocation3], 0 }
   0x3   :  { %10 = vsyncpa [#allocation3 + $0x1], 0 }
   0x4   :  { %11 = vsyncpa [#allocation6], 0 }
   0x5   :  { %13 = vsyncpa [#allocation6 + $0x1], 0 }
   0x6   :  { %14 = vsyncpa [#allocation4], 0 }
   0x7   :  { %16 = vsyncpa [#allocation4 + $0x1], 0  ;;  %s1283_s12 = smov 0   ;;  %s1285_s13 = smov 0  }
   0x8   :  { %s1287_s14 = smov 0   ;;  %s1289_s15 = smov 0  }
   0x9   :  { %s1291_s16 = smov 0   ;;  %s1293_s17 = smov 0  }
   0xa LB: > { %1623 = sst [smem:[#allocation12_spill]] %s1248_s16  ;;  %s1314_s18 = sadd.s32 4294967295, %s1252_s17   ;;  %s1252_s17 = sphi %s1293_s17, %s22_s17   ;;  %s1248_s16 = sphi %s1291_s16, %s1642_s16   ;;  %s1244_s15 = sphi %s1289_s15, %s1641_s15   ;;  %s1240_s14 = sphi %s1287_s14, %s1645_s14   ;;  %s1236_s13 = sphi %s1285_s13, %s1644_s13   ;;  %s1232_s12 = sphi %s1283_s12, %s1643_s12  }
   0xb   : > { %s888_s19 = sadd.s32 4294967294, %s1252_s17   ;;  %s34_s20 = sadd.s32 1, %s1248_s16 }
   0xc   : > { %s43_s21 = sadd.s32 1, %s1240_s14  ;;  %p36_p0 = scmp.ge.s32.totalorder %s34_s20, 2 }
   0xd   : > { %p50_p1 = scmp.ne.s32.totalorder %s1240_s14, %s1236_s13  ;;  %p51_p2 = scmp.eq.s32.totalorder %s1252_s17, 0 }
   0xe   : > { %p56_p3 = scmp.ne.s32.totalorder %s1236_s13, %s1232_s12  ;;  %s1647_s20 = smov (%p36_p0, %s34_s20), 0 }
   0xf   : > { %1624 = sst [smem:[#allocation13_spill]] %s1647_s20  ;;  %p1326_p4 = por %p51_p2, %p50_p1 }
  0x10   : > { %p57_p5 = scmp.eq.s32.totalorder %s1314_s18, 0  ;;  %s38_s23 = ssub.s32 %s1248_s16, %s1647_s20 }
  0x11   : > { %p134_p6 = scmp.eq.s32.totalorder %s1314_s18, 1  ;;  %p41_p7 = scmp.eq.s32.totalorder %s38_s23, 0 }
  0x12   : > { %p1334_p8 = por %p57_p5, %p56_p3  ;;  %p140_p10 = scmp.eq.s32.totalorder %s888_s19, 1 }
  0x13   : > { %p1338_p9 = por %p134_p6, %p50_p1  ;;  %p1004_p13 = scmp.lt.s32.totalorder %s1252_s17, 2 }
  0x14   : > { %s1626_s24 = scalar_select %p1334_p8, 1, 0 }
  0x15   : > { %s1627_s25 = scalar_select %p1338_p9, 1, 0 }
  0x16   : > { %s1343_s26 = scalar_select %p41_p7, %s1240_s14, %s43_s21  }
  0x17   : > { %p1345_p11 = por %p140_p10, %p56_p3  ;;  %s160_s28 = sand.u32 1, %s1240_s14  }
  0x18   : > { %s1354_s29 = sshll.u32 %s160_s28, 3  ;;  %s179_s30 = sand.u32 1, %s1252_s17  }
  0x19   : > { %s1628_s27 = scalar_select %p1345_p11, 1, 0 }
  0x1a   : > { %p1359_p0 = pnand %p1004_p13, %p1326_p4  ;;  %s916_s5 = sshll.u32 %s1248_s16, 8 }
  0x1b   : > { %s1630_s1 = sld [smem:[#allocation14_spill]]  ;;  %s183_s9 = scalar_lea.vmem [#allocation5], %s1354_s29 }
  0x1c   : > { %s1629_s4 = scalar_select %p1359_p0, 1, 0 }
  0x1d   : > { %s191_s10 = sshll.u32 %s183_s9, 4  ;;  %s1373_s21 = scalar_lea.hbm %s1614_s2, %s916_s5  ;;  %s1375_s10 = int_to_ptr.vmem [resolvable:$true] %s191_s10 }
  0x1e   : > { %s1378_s22 = scalar_lea.sflag [#allocation6], %s179_s30  ;;  %p1384_p3 = pneg %p1359_p0 }
  0x21   : > { %s1367_s8 = scalar_lea.hbm %s1630_s1, %s916_s5  ;;  %s1080_s5 = scalar_lea.hbm %s1630_s1, 512 }
  0x22   : > { %s1075_s23 = scalar_lea.hbm %s1367_s8, 128  ;;  %p1081_p6 = scmp.lt.u32.totalorder %s1367_s8, %s1630_s1 }
  0x23   : > { %p1076_p2 = scmp.ne.s32.totalorder %s1367_s8, %s1075_s23  ;;  %p1082_p7 = scmp.lt.u32.totalorder %s1080_s5, %s1075_s23 }
  0x24   : > { %p1084_p13 = scmp.lt.u32.totalorder %s1075_s23, %s1367_s8 }
  0x25   : > { %p1078_p4 = pnand %p1384_p3, %p1076_p2  ;;  %p1083_p10 = por %p1082_p7, %p1081_p6 }
  0x27   : > { %p1079_p5 = pneg %p1078_p4  ;;  %p1085_p12 = por %p1084_p13, %p1083_p10 }
  0x29   : > { %p1086_p1 = pnand %p1085_p12, %p1079_p5 }
  0x2b   : > { %1089 = shalt.err (!%p1086_p1)
}
  0x2c   : > { %s1090_s30 = scalar_lea.vmem %s1375_s10, 128  ;;  %s1254_s7 = smov [#allocation5]  }
  0x2d   : > { %p1091_p2 = scmp.ne.s32.totalorder %s1375_s10, %s1090_s30  ;;  %s1095_s9 = sshll.u32 %s1254_s7, 4  ;;  %s1096_s9 = int_to_ptr.vmem [resolvable:$false] %s1095_s9 }
  0x2e   : > { %s1097_s11 = scalar_lea.vmem %s1096_s9, 256  ;;  %p1098_p9 = scmp.lt.s32.totalorder %s1375_s10, %s1096_s9 }
  0x2f   : > { %p1093_p4 = pnand %p1091_p2, %p1384_p3  ;;  %p1099_p8 = scmp.lt.s32.totalorder %s1097_s11, %s1090_s30 }
  0x31   : > { %p1094_p11 = pneg %p1093_p4  ;;  %p1100_p6 = por %p1099_p8, %p1098_p9 }
  0x33   : > { %p1101_p7 = pnand %p1100_p6, %p1094_p11 }
  0x35   : > { %1104 = shalt.err (!%p1101_p7)
}
  0x36   : > { %996 = dma.hbm_to_vmem [thread:$0]  (!%p1359_p0), %s1367_s8, 128, %s1375_s10, %s1378_s22  }
  0x37   : > { %p216_p12 = scmp.lt.s32.totalorder %s1252_s17, 3  ;;  %p1632_p1 = scmp.ge.s32.totalorder %s1252_s17, 1 }
  0x38   : > { %s892_s5 = sshll.u32 %s1248_s16, 7  ;;  %s164_s19 = scalar_lea.vmem [#allocation2], %s1354_s29 }
  0x39   : > { %p1411_p5 = pnand %p1632_p1, %p216_p12  ;;  %s172_s30 = sshll.u32 %s164_s19, 4  ;;  %s173_s30 = int_to_ptr.vmem [resolvable:$true] %s172_s30 }
  0x3a   : > { %s1420_s11 = scalar_lea.hbm %s1612_s0, %s892_s5  ;;  %s161_s8 = scalar_lea.sflag [#allocation3], %s160_s28 }
  0x3b   : > { %s1633_s23 = scalar_select %p1411_p5, 1, 0 }
  0x3c   : > { %s1105_s10 = scalar_lea.hbm %s1420_s11, 128  ;;  %s1110_s19 = scalar_lea.hbm %s1612_s0, 256 }
  0x3d   : > { %p1106_p8 = scmp.ne.s32.totalorder %s1420_s11, %s1105_s10  ;;  %p1111_p10 = scmp.lt.u32.totalorder %s1420_s11, %s1612_s0 }
  0x3e   : > { %p1112_p13 = scmp.lt.u32.totalorder %s1110_s19, %s1105_s10  ;;  %p1114_p4 = scmp.lt.u32.totalorder %s1105_s10, %s1420_s11 }
  0x3f   : > { %p1108_p9 = pnand %p1106_p8, %p1384_p3 }
  0x40   : > { %p1113_p2 = por %p1112_p13, %p1111_p10 }
  0x41   : > { %p1109_p11 = pneg %p1108_p9 }
  0x42   : > { %p1115_p6 = por %p1114_p4, %p1113_p2 }
  0x44   : > { %p1116_p7 = pnand %p1115_p6, %p1109_p11 }
  0x46   : > { %1119 = shalt.err (!%p1116_p7)
}
  0x47   : > { %s1120_s28 = scalar_lea.vmem %s173_s30, 128  ;;  %s1255_s5 = smov [#allocation2]  }
  0x48   : > { %p1121_p12 = scmp.ne.s32.totalorder %s173_s30, %s1120_s28  ;;  %s1125_s9 = sshll.u32 %s1255_s5, 4  ;;  %s1126_s9 = int_to_ptr.vmem [resolvable:$false] %s1125_s9 }
  0x49   : > { %s1127_s1 = scalar_lea.vmem %s1126_s9, 256  ;;  %p1128_p9 = scmp.lt.s32.totalorder %s173_s30, %s1126_s9 }
  0x4a   : > { %p1123_p1 = pnand %p1121_p12, %p1384_p3  ;;  %p1129_p5 = scmp.lt.s32.totalorder %s1127_s1, %s1120_s28 }
  0x4c   : > { %p1124_p8 = pneg %p1123_p1  ;;  %p1130_p0 = por %p1129_p5, %p1128_p9 }
  0x4e   : > { %p1131_p10 = pnand %p1130_p0, %p1124_p8 }
  0x50   : > { %1134 = shalt.err (!%p1131_p10)
}
  0x51   : > { %p1634_p13 = scmp.ne.s32.totalorder %s1629_s4, 0  ;;  %s1442_s16 = scalar_lea.hbm %s1373_s21, 128 }
  0x52   : > { %s202_s20 = scalar_lea.vmem [#allocation7], %s1354_s29  ;;  %s1165_s19 = scalar_lea.hbm %s1373_s21, 256 }
  0x53   : > { %993 = dma.hbm_to_vmem [thread:$0]  (!%p1634_p13), %s1420_s11, 128, %s173_s30, %s161_s8  }
  0x54   : > { %s211_s10 = sshll.u32 %s202_s20, 4  ;;  %p1136_p5 = scmp.ne.s32.totalorder %s1442_s16, %s1165_s19  ;;  %s212_s10 = int_to_ptr.vmem [resolvable:$true] %s211_s10 }
  0x55   : > { %s1140_s5 = scalar_lea.hbm %s1614_s2, 512  ;;  %p1141_p2 = scmp.lt.u32.totalorder %s1442_s16, %s1614_s2 }
  0x56   : > { %p1138_p0 = pnand %p1136_p5, %p1384_p3  ;;  %p1142_p4 = scmp.lt.u32.totalorder %s1140_s5, %s1165_s19 }
  0x57   : > { %p1144_p7 = scmp.lt.u32.totalorder %s1165_s19, %s1442_s16 }
  0x58   : > { %p1139_p11 = pneg %p1138_p0  ;;  %p1143_p6 = por %p1142_p4, %p1141_p2 }
  0x5a   : > { %p1145_p12 = por %p1144_p7, %p1143_p6 }
  0x5c   : > { %p1146_p1 = pnand %p1145_p12, %p1139_p11 }
  0x5e   : > { %1149 = shalt.err (!%p1146_p1)
}
  0x5f   : > { %s1150_s29 = scalar_lea.vmem %s212_s10, 128  ;;  %s1256_s21 = smov [#allocation7]  }
  0x60   : > { %p1151_p8 = scmp.ne.s32.totalorder %s212_s10, %s1150_s29  ;;  %s1155_s30 = sshll.u32 %s1256_s21, 4  ;;  %s1156_s30 = int_to_ptr.vmem [resolvable:$false] %s1155_s30 }
  0x61   : > { %s1157_s11 = scalar_lea.vmem %s1156_s30, 256  ;;  %p1158_p5 = scmp.lt.s32.totalorder %s212_s10, %s1156_s30 }
  0x62   : > { %p1153_p9 = pnand %p1151_p8, %p1384_p3  ;;  %p1159_p0 = scmp.lt.s32.totalorder %s1157_s11, %s1150_s29 }
  0x64   : > { %p1154_p10 = pneg %p1153_p9  ;;  %p1160_p13 = por %p1159_p0, %p1158_p5 }
  0x66   : > { %p1161_p2 = pnand %p1160_p13, %p1154_p10 }
  0x68   : > { %1164 = shalt.err (!%p1161_p2)
}
  0x69   : > { %p1635_p4 = scmp.ne.s32.totalorder %s1629_s4, 0  ;;  %p1636_p11 = scmp.ne.s32.totalorder %s1633_s23, 0 }
  0x6a   : > { %s1466_s6 = sand.u32 (!%p1636_p11), 1, %s1236_s13   ;;  %p1637_p3 = scmp.ne.s32.totalorder (!%p1636_p11), %s1626_s24, 0 }
  0x6b   : > { %999 = dma.hbm_to_vmem [thread:$0]  (!%p1635_p4), %s1442_s16, 128, %s212_s10, %s1378_s22  }
  0x6c   : > { %220 = sbr.rel (%p1636_p11) target bundleno = 1592 (0x638), region = 32  ;;  %s1469_s8 = sshll.u32 (!%p1636_p11), %s1466_s6, 3 }
  0x6d   : > { %s223_s20 = scalar_lea.sflag (!%p1636_p11), [#allocation3], %s1466_s6  ;;  %s226_s19 = scalar_lea.vmem (!%p1636_p11), [#allocation2], %s1469_s8 }
  0x73   : > { %1219 = dma.done.wait (%p1637_p3), %s223_s20, 128  }
  0x74   : > { %1221 = vsyncadd (%p1637_p3), %s223_s20, 4294967168  ;;  %s231_s4 = sand.u32 1, %s1314_s18   ;;  %s235_s23 = scalar_lea.vmem [#allocation5], %s1469_s8 }
  0x75   : > { %s232_s22 = scalar_lea.sflag [#allocation6], %s231_s4 }
  0x76   : > { %1223 = dma.done.wait (%p1637_p3), %s232_s22, 256  }
  0x77   : > { %1225 = vsyncadd (%p1637_p3), %s232_s22, 4294967040  ;;  %v1257_v0 = vmov 0.0   ;;  %vm1258_vm0 = vmmov 0   ;;  %v279_v1 = vld [vmem:[%s235_s23] sm:$0xff]  ;;  %vm284_vm1 = vcmask 261120   ;;  %v278_v4 = vld [vmem:[%s226_s19] sm:$0xff] }
  0x78   : > { %934 = vmatprep.subr.bf16.mxu0 %v1257_v0  ;;  %936 = vmatprep.mubr.msk.bf16.mxu0 %vm1258_vm0, %v1257_v0  ;;  %v282_v2 = vpack.c.bf16 %v279_v1, %v279_v1  ;;  %v281_v5 = vpack.c.bf16 %v278_v4, %v278_v4  ;;  %vm332_vm2 = vcmask 64512   ;;  %s1259_s18 = smov 96   ;;  %s1260_s24 = smov 64   ;;  %vm348_vm3 = vcmask 1043456  }
  0x79   : > { %940 = vmatprep.subr.bf16.mxu1 %v1257_v0  ;;  %942 = vmatprep.mubr.msk.bf16.mxu1 %vm1258_vm0, %v1257_v0  ;;  %s1261_s16 = smov 32   ;;  %s244_s10 = scalar_lea.vmem [#allocation7], %s1469_s8  ;;  %vm511_vm4 = vcmask 523520   ;;  %vm628_vm5 = vcmask 785920   ;;  %vm745_vm6 = vcmask 1048320  }
  0x7a   : > { %v289_v3 = vsel %vm284_vm1, %v282_v2, 0  ;;  %397 = vrot.lane.b32.xlu1 %v282_v2, %s1259_s18  ;;  %v280_v17 = vld [vmem:[%s244_s10] sm:$0xff]  ;;  %s1524_s7 = scalar_lea.vmem [#allocation8], %s1469_s8  ;;  %s913_s28 = sshll.u32 %s1244_s15, 7 }
  0x7b   : > { %935 = vmatpush3.bf16.xpose.msra.mxu0 %v289_v3  ;;  %v1502_v18 = vpack.c.bf16 %v280_v17, %v280_v17  ;;  %s762_s5 = sshll.u32 %s1524_s7, 4  ;;  %s1562_s29 = scalar_lea.hbm %s1615_s3, %s913_s28  ;;  %s1564_s5 = int_to_ptr.vmem [resolvable:$true] %s762_s5 }
  0x7c   : > { %952 = vmatprep.subr.bf16.mxu0 %v1257_v0  ;;  %s748_s21 = scalar_lea.sflag [#allocation4], %s1466_s6  ;;  %s1166_s30 = scalar_lea.vmem %s1564_s5, 128 }
  0x7d   : > { %v350_v19 = vsel %vm348_vm3, %v1502_v18, 0  ;;  %p1167_p13 = scmp.ne.s32.totalorder %s1564_s5, %s1166_s30  ;;  %p1638_p6 = scmp.ne.s32.totalorder %s1627_s25, 0 }
  0x7e   : > { %394 = vrot.lane.b32.xlu1 %v281_v5, %s1259_s18  ;;  %941 = vmatpush3.bf16.msra.mxu1 %v350_v19  ;;  %s1262_s15 = smov [#allocation8]  }
  0x7f   : > { %946 = vmatprep.subr.bf16.mxu1 %v1257_v0  ;;  %p1168_p7 = pnand %p1167_p13, %p1638_p6  ;;  %s1170_s11 = sshll.u32 %s1262_s15, 4  ;;  %s1171_s11 = int_to_ptr.vmem [resolvable:$false] %s1170_s11 }
  0x80   : > { %s1172_s8 = scalar_lea.vmem %s1171_s11, 256  ;;  %p1173_p1 = scmp.lt.s32.totalorder %s1564_s5, %s1171_s11 }
  0x81   : > { %p1169_p12 = pneg %p1168_p7  ;;  %p1174_p8 = scmp.lt.s32.totalorder %s1172_s8, %s1166_s30 }
  0x82   : > { %937 = vmatmul.mubr.msk.bf16.vlgmr.msra.gmra.mrb[0].mxu0 %vm284_vm1, %v281_v5  ;;  %513 = vrot.lane.b32.xlu1 %v281_v5, %s1260_s24 }
  0x83   : > { %954 = vmatprep.mubr.msk.bf16.mxu0 %vm1258_vm0, %v1257_v0  ;;  %p1175_p9 = por %p1174_p8, %p1173_p1 }
  0x85   : > { %p1176_p10 = pnand %p1175_p9, %p1169_p12 }
  0x86   : > { %632 = vrot.lane.b32.xlu1 %v282_v2, %s1261_s16 }
  0x8a   : > { %630 = vrot.lane.b32.xlu1 %v281_v5, %s1261_s16 }
  0xec   : > { %v398_v22 = vpop.permute.xlu1 %397 }
  0xed   : > { %v403_v24 = vsel %vm284_vm1, %v398_v22, 0 }
  0xf0   : > { %v395_v26 = vpop.permute.xlu1 %394 }
  0xf4   : > { %v514_v28 = vpop.permute.xlu1 %513 }
  0xf8   : > { %v633_v30 = vpop.permute.xlu1 %632 }
  0xf9   : > { %v638_v31 = vsel %vm284_vm1, %v633_v30, 0 }
  0xfc   : > { %v631_v32 = vpop.permute.xlu1 %630 }
 0x155   : > { %v325_v6 = vpop.f32.mrb[0].mxu0 }
 0x156   : > { %v331_v7 = vmul.f32 0.17677669, %v325_v6  ;;  %v938_v8 = vpop.f32.mrb[1].mxu0 }
 0x157   : > { %v328_v9 = vpop.f32.mrb[2].mxu0 }
 0x158   : > { %v939_v10 = vpop.f32.mrb[3].mxu0  ;;  %v333_v11 = vsel %vm332_vm2, %v331_v7, -inf }
 0x159   : > { %334 = vmax.xlane.f32.xlu0 %v333_v11 }
 0x1e6   : > { %v335_v12 = vpop.xlane.xlu0 %334 }
 0x1e7   : > { %v336_v13 = vsub.f32 %v331_v7, %v335_v12 }
 0x1e9   : > { %v337_v14 = vmul.f32 1.442695, %v336_v13 }
 0x1eb   : > { %1059 = vpow2.f32 %v337_v14 }
 0x1f5   : > { %v1060_v15 = vpop.eup %1059 }
 0x1f6   : > { %v339_v16 = vsel %vm332_vm2, %v1060_v15, 0.0 }
 0x1f7   : > { %340 = vadd.xlane.f32.xlu0 %v339_v16 }
 0x20d   : > { %515 = vrot.lane.b32.xlu0 %v282_v2, %s1260_s24 }
 0x284   : > { %v341_v20 = vpop.xlane.xlu0 %340 }
 0x285   : > { %1061 = vrcp.f32 %v341_v20 }
 0x288   : > { %v516_v27 = vpop.permute.xlu0 %515 }
 0x289   : > { %v521_v29 = vsel %vm284_vm1, %v516_v27, 0 }
 0x28f   : > { %v1062_v21 = vpop.eup %1061 }
 0x290   : > { %v343_v23 = vmul.f32 %v1062_v21, %v1060_v15 }
 0x292   : > { %v344_v25 = vpack.c.bf16 %v343_v23, %v343_v23 }
 0x294   : > { %943 = vmatmul.mubr.msk.bf16.vlgmr.msra.gmra.mrb[0].mxu1 %vm332_vm2, %v344_v25 }
 0x295   : > { %947 = vmatpush3.bf16.xpose.msra.mxu1 %v403_v24  ;;  %948 = vmatprep.mubr.msk.bf16.mxu1 %vm1258_vm0, %v1257_v0 }
 0x296   : > { %958 = vmatprep.subr.bf16.mxu1 %v1257_v0 }
 0x29c   : > { %949 = vmatmul.mubr.msk.bf16.vlgmr.msra.gmra.mrb[4].mxu1 %vm284_vm1, %v395_v26 }
 0x29d   : > { %959 = vmatpush3.bf16.xpose.msra.mxu1 %v521_v29  ;;  %960 = vmatprep.mubr.msk.bf16.mxu1 %vm1258_vm0, %v1257_v0 }
 0x29e   : > { %970 = vmatprep.subr.bf16.mxu1 %v1257_v0 }
 0x2a4   : > { %961 = vmatmul.mubr.msk.bf16.vlgmr.msra.gmra.mrb[8].mxu1 %vm284_vm1, %v514_v28 }
 0x2a5   : > { %971 = vmatpush3.bf16.xpose.msra.mxu1 %v638_v31  ;;  %972 = vmatprep.mubr.msk.bf16.mxu1 %vm1258_vm0, %v1257_v0 }
 0x2ac   : > { %973 = vmatmul.mubr.msk.bf16.vlgmr.msra.gmra.mrb[12].mxu1 %vm284_vm1, %v631_v32 }
 0x367   : > { %v386_v33 = vpop.f32.mrb[0].mxu1 }
 0x368   : > { %392 = vst.msk [vmem:[%s1524_s7] sm:$0xff] %vm284_vm1, %v386_v33  ;;  %v944_v34 = vpop.f32.mrb[1].mxu1 }
 0x369   : > { %v389_v35 = vpop.f32.mrb[2].mxu1 }
 0x36a   : > { %v945_v36 = vpop.f32.mrb[3].mxu1 }
 0x36f   : > { %v439_v37 = vpop.f32.mrb[4].mxu1 }
 0x370   : > { %v445_v38 = vmul.f32 0.17677669, %v439_v37  ;;  %v950_v39 = vpop.f32.mrb[5].mxu1 }
 0x371   : > { %v442_v40 = vpop.f32.mrb[6].mxu1 }
 0x372   : > { %v951_v41 = vpop.f32.mrb[7].mxu1  ;;  %v446_v42 = vsel %vm332_vm2, %v445_v38, -inf }
 0x373   : > { %447 = vmax.xlane.f32.xlu1 %v446_v42 }
 0x377   : > { %v557_v43 = vpop.f32.mrb[8].mxu1 }
 0x378   : > { %v563_v44 = vmul.f32 0.17677669, %v557_v43  ;;  %v962_v45 = vpop.f32.mrb[9].mxu1 }
 0x379   : > { %v560_v46 = vpop.f32.mrb[10].mxu1 }
 0x37a   : > { %v564_v47 = vsel %vm332_vm2, %v563_v44, -inf  ;;  %v963_v48 = vpop.f32.mrb[11].mxu1 }
 0x37b   : > { %565 = vmax.xlane.f32.xlu0 %v564_v47 }
 0x37f   : > { %v674_v49 = vpop.f32.mrb[12].mxu1 }
 0x380   : > { %v680_v50 = vmul.f32 0.17677669, %v674_v49  ;;  %v974_v51 = vpop.f32.mrb[13].mxu1 }
 0x381   : > { %v677_v52 = vpop.f32.mrb[14].mxu1 }
 0x382   : > { %v681_v53 = vsel %vm332_vm2, %v680_v50, -inf  ;;  %v975_v54 = vpop.f32.mrb[15].mxu1 }
 0x383   : > { %682 = vmax.xlane.f32.xlu1 %v681_v53 }
 0x400   : > { %v448_v55 = vpop.xlane.xlu1 %447 }
 0x401   : > { %v449_v56 = vsub.f32 %v445_v38, %v448_v55 }
 0x403   : > { %v450_v57 = vmul.f32 1.442695, %v449_v56 }
 0x405   : > { %1063 = vpow2.f32 %v450_v57 }
 0x408   : > { %v566_v58 = vpop.xlane.xlu0 %565 }
 0x409   : > { %v567_v59 = vsub.f32 %v563_v44, %v566_v58 }
 0x40b   : > { %v568_v60 = vmul.f32 1.442695, %v567_v59 }
 0x40d   : > { %1065 = vpow2.f32 %v568_v60 }
 0x40f   : > { %v1064_v61 = vpop.eup %1063 }
 0x410   : > { %v452_v62 = vsel %vm332_vm2, %v1064_v61, 0.0  ;;  %v683_v2 = vpop.xlane.xlu1 %682 }
 0x411   : > { %453 = vadd.xlane.f32.xlu1 %v452_v62  ;;  %v684_v3 = vsub.f32 %v680_v50, %v683_v2 }
 0x413   : > { %v685_v4 = vmul.f32 1.442695, %v684_v3 }
 0x415   : > { %1067 = vpow2.f32 %v685_v4 }
 0x417   : > { %v1066_v63 = vpop.eup %1065 }
 0x418   : > { %v570_v1 = vsel %vm332_vm2, %v1066_v63, 0.0 }
 0x419   : > { %571 = vadd.xlane.f32.xlu0 %v570_v1 }
 0x41f   : > { %v1068_v5 = vpop.eup %1067 }
 0x420   : > { %v687_v6 = vsel %vm332_vm2, %v1068_v5, 0.0 }
 0x422   : > { %576 = vrot.lane.b32.xlu1 %v1502_v18, %s1260_s24 }
 0x42f   : > { %459 = vrot.lane.b32.xlu0 %v1502_v18, %s1259_s18 }
 0x446   : > { %688 = vadd.xlane.f32.xlu1 %v687_v6 }
 0x457   : > { %693 = vrot.lane.b32.xlu1 %v1502_v18, %s1261_s16 }
 0x49e   : > { %v454_v7 = vpop.xlane.xlu1 %453 }
 0x49f   : > { %1069 = vrcp.f32 %v454_v7 }
 0x4a2   : > { %v577_v13 = vpop.permute.xlu1 %576 }
 0x4a3   : > { %v582_v15 = vsel %vm348_vm3, %v577_v13, 0 }
 0x4a6   : > { %v572_v8 = vpop.xlane.xlu0 %571 }
 0x4a7   : > { %1071 = vrcp.f32 %v572_v8 }
 0x4a9   : > { %v1070_v9 = vpop.eup %1069 }
 0x4aa   : > { %v456_v10 = vmul.f32 %v1070_v9, %v1064_v61  ;;  %v460_v11 = vpop.permute.xlu0 %459 }
 0x4ab   : > { %v465_v12 = vsel %vm348_vm3, %v460_v11, 0 }
 0x4ac   : > { %953 = vmatpush3.bf16.msra.mxu0 %v465_v12  ;;  %v457_v14 = vpack.c.bf16 %v456_v10, %v456_v10 }
 0x4ad   : > { %964 = vmatprep.subr.bf16.mxu0 %v1257_v0 }
 0x4af   : > { %955 = vmatmul.mubr.msk.bf16.vlgmr.msra.gmra.mrb[4].mxu0 %vm332_vm2, %v457_v14 }
 0x4b0   : > { %965 = vmatpush3.bf16.msra.mxu0 %v582_v15  ;;  %966 = vmatprep.mubr.msk.bf16.mxu0 %vm1258_vm0, %v1257_v0 }
 0x4b1   : > { %v1072_v16 = vpop.eup %1071  ;;  %976 = vmatprep.subr.bf16.mxu0 %v1257_v0 }
 0x4b2   : > { %v574_v17 = vmul.f32 %v1072_v16, %v1066_v63 }
 0x4b4   : > { %v575_v18 = vpack.c.bf16 %v574_v17, %v574_v17 }
 0x4b7   : > { %967 = vmatmul.mubr.msk.bf16.vlgmr.msra.gmra.mrb[8].mxu0 %vm332_vm2, %v575_v18 }
 0x4b8   : > { %978 = vmatprep.mubr.msk.bf16.mxu0 %vm1258_vm0, %v1257_v0 }
 0x4d3   : > { %v689_v19 = vpop.xlane.xlu1 %688 }
 0x4d4   : > { %1073 = vrcp.f32 %v689_v19 }
 0x4d7   : > { %v694_v20 = vpop.permute.xlu1 %693 }
 0x4d8   : > { %v699_v21 = vsel %vm348_vm3, %v694_v20, 0 }
 0x4d9   : > { %977 = vmatpush3.bf16.msra.mxu0 %v699_v21 }
 0x4de   : > { %v1074_v22 = vpop.eup %1073 }
 0x4df   : > { %v691_v23 = vmul.f32 %v1074_v22, %v1068_v5 }
 0x4e1   : > { %v692_v24 = vpack.c.bf16 %v691_v23, %v691_v23 }
 0x4e3   : > { %979 = vmatmul.mubr.msk.bf16.vlgmr.msra.gmra.mrb[12].mxu0 %vm332_vm2, %v692_v24 }
 0x582   : > { %v501_v25 = vpop.f32.mrb[4].mxu0 }
 0x583   : > { %508 = vrot.lane.b32.xlu0 %v501_v25, %s1261_s16  ;;  %v956_v26 = vpop.f32.mrb[5].mxu0 }
 0x584   : > { %v504_v27 = vpop.f32.mrb[6].mxu0 }
 0x585   : > { %v957_v28 = vpop.f32.mrb[7].mxu0 }
 0x58a   : > { %v618_v0 = vpop.f32.mrb[8].mxu0 }
 0x58b   : > { %625 = vrot.lane.b32.xlu1 %v618_v0, %s1260_s24  ;;  %v968_v29 = vpop.f32.mrb[9].mxu0 }
 0x58c   : > { %v621_v30 = vpop.f32.mrb[10].mxu0 }
 0x58d   : > { %v969_v31 = vpop.f32.mrb[11].mxu0 }
 0x5b6   : > { %v735_v32 = vpop.f32.mrb[12].mxu0 }
 0x5b7   : > { %742 = vrot.lane.b32.xlu0 %v735_v32, %s1259_s18  ;;  %v980_v33 = vpop.f32.mrb[13].mxu0 }
 0x5b8   : > { %v738_v34 = vpop.f32.mrb[14].mxu0 }
 0x5b9   : > { %v981_v35 = vpop.f32.mrb[15].mxu0 }
 0x5f5   : > { %v509_v36 = vpop.permute.xlu0 %508 }
 0x5f6   : > { %512 = vst.msk [vmem:[%s1524_s7] sm:$0xff] %vm511_vm4, %v509_v36 }
 0x5fd   : > { %v626_v37 = vpop.permute.xlu1 %625 }
 0x5fe   : > { %629 = vst.msk [vmem:[%s1524_s7] sm:$0xff] %vm628_vm5, %v626_v37 }
 0x629   : > { %v743_v38 = vpop.permute.xlu0 %742 }
 0x62a   : > { %746 = vst.msk [vmem:[%s1524_s7] sm:$0xff] %vm745_vm6, %v743_v38 }
 0x62b   : > { %1179 = shalt.err (!%p1176_p10)
}
 0x62c   : > { %s1180_s6 = scalar_lea.hbm %s1562_s29, 128  ;;  %s1184_s4 = scalar_lea.hbm %s1615_s3, 256 }
 0x62d   : > { %p1181_p5 = scmp.ne.s32.totalorder %s1562_s29, %s1180_s6  ;;  %p1185_p4 = scmp.lt.u32.totalorder %s1562_s29, %s1615_s3 }
 0x62e   : > { %p1186_p11 = scmp.lt.u32.totalorder %s1184_s4, %s1180_s6  ;;  %p1188_p13 = scmp.lt.u32.totalorder %s1180_s6, %s1562_s29 }
 0x62f   : > { %p1182_p0 = pnand %p1181_p5, %p1638_p6 }
 0x630   : > { %p1187_p3 = por %p1186_p11, %p1185_p4 }
 0x631   : > { %p1183_p2 = pneg %p1182_p0 }
 0x632   : > { %p1189_p7 = por %p1188_p13, %p1187_p3 }
 0x634   : > { %p1190_p12 = pnand %p1189_p7, %p1183_p2 }
 0x636   : > { %1193 = shalt.err (!%p1190_p12)
}
 0x637   : > { %988 = dma.vmem_to_hbm [thread:$0]  (%p1638_p6), %s1564_s5, 128, %s1562_s29, %s748_s21  }
 0x638 PF: > { %s774_s18 = sand.u32 1, %s1232_s12   ;;  %p1639_p1 = scmp.ne.s32.totalorder %s1628_s27, 0 }
 0x639   : > { %p1640_p8 = scmp.ge.s32.totalorder %s1252_s17, 2  ;;  %s775_s24 = scalar_lea.sflag [#allocation4], %s774_s18 }
 0x63b   : > { %p1001_p9 = pnand %p1640_p8, %p1639_p1 }
 0x63d   : > { %1227 = dma.done.wait (!%p1001_p9), %s775_s24, 128  }
 0x63e   : > { %1229 = vsyncadd (!%p1001_p9), %s775_s24, 4294967168  ;;  %s22_s17 = sadd.s32 1, %s1252_s17   ;;  %s1641_s15 = sld [smem:[#allocation12_spill]] }
 0x63f   : > { %p19_p10 = scmp.ge.s32.totalorder %s22_s17, 4   ;;  %s1642_s16 = sld [smem:[#allocation13_spill]] }
 0x640   : > { %s1643_s12 = smov %s1236_s13  ;;  %s1644_s13 = smov %s1240_s14 }
 0x641   : > { %s1645_s14 = smov %s1343_s26  ;;  %21 = sbr.rel (!%p19_p10) target bundleno = 10 (0xa), region = 101 }
 0x648   :  { %780 = vsyncpa [#allocation3], 1 }
 0x649   :  { %782 = vsyncpa [#allocation3 + $0x1], 1 }
 0x64a   :  { %783 = vsyncpa [#allocation6], 1 }
 0x64b   :  { %785 = vsyncpa [#allocation6 + $0x1], 1 }
 0x64c   :  { %786 = vsyncpa [#allocation4], 1 }
 0x64d   :  { %788 = vsyncpa [#allocation4 + $0x1], 1 }

// kernel: transformer_forward.52
= control target key start
LH: loop header
LB: loop body
LE: loop exit
PB: predicated region body
PF: predicated region fallthrough
CT: control target
= control target key end

     0   :  { %8 = vsyncpa [#allocation3], 0  ;;  %s728_s0 = inlined_call_operand.hbm [shape: f32[16,128], index: 0, kind: input, shape index: {}]   ;;  %s729_s1 = inlined_call_operand.hbm [shape: f32[1,128], index: 1, kind: input, shape index: {}]   ;;  %s730_s2 = inlined_call_operand.hbm [shape: f32[1,128], index: 2, kind: input, shape index: {}]   ;;  %s731_s3 = inlined_call_operand.vmem [shape: f32[16,128], index: 3, kind: output, shape index: {}]  }
   0x1   :  { %10 = vsyncpa [#allocation3 + $0x1], 0 }
   0x2   :  { %11 = vsyncpa [#allocation5], 0  ;;  %s552_s12 = smov 0   ;;  %s554_s13 = smov 0  }
   0x3   :  { %s556_s14 = smov 0   ;;  %s558_s15 = smov 0  }
   0x4 LB: > { %s571_s16 = sadd.s32 4294967295, %s527_s15   ;;  %p37_p0 = scmp.ne.s32.totalorder %s519_s13, %s515_s12  ;;  %s527_s15 = sphi %s558_s15, %s746_s15   ;;  %s523_s14 = sphi %s556_s14, %s745_s14   ;;  %s519_s13 = sphi %s554_s13, %s744_s13   ;;  %s515_s12 = sphi %s552_s12, %s743_s12  }
   0x5   : > { %p732_p1 = scmp.eq.s32.totalorder %s571_s16, 0  ;;  %p326_p2 = scmp.ge.s32.totalorder %s527_s15, 1 }
   0x6   : > { %p116_p3 = scmp.lt.s32.totalorder %s527_s15, 3  ;;  %s529_s19 = smov [#allocation4]  }
   0x7   : > { %p579_p4 = por %p732_p1, %p37_p0  ;;  %s129_s20 = sshll.u32 %s529_s19, 4  ;;  %s130_s20 = int_to_ptr.vmem [resolvable:$true] %s129_s20 }
   0x8   : > { %p583_p5 = pnand %p326_p2, %p116_p3  ;;  %s530_s21 = smov [#allocation6]  }
   0x9   : > { %s735_s17 = scalar_select %p579_p4, 1, 0 }
   0xa   : > { %s736_s18 = scalar_select %p583_p5, 1, 0 }
   0xb   : > { %p351_p6 = pneg %p583_p5  ;;  %s140_s22 = sshll.u32 %s530_s21, 4  ;;  %s595_s22 = int_to_ptr.vmem [resolvable:$true] %s140_s22 }
   0xc   : > { %s598_s24 = sadd.s32 1, %s527_s15   ;;  %s403_s28 = scalar_lea.hbm %s729_s1, 16 }
   0xd   : > { %p591_p7 = pnand %p351_p6, %p732_p1  ;;  %s21_s25 = ssub.s32 %s527_s15, %s598_s24 }
   0xe   : > { %p404_p8 = scmp.ne.s32.totalorder %s729_s1, %s403_s28  ;;  %p410_p12 = scmp.lt.u32.totalorder %s403_s28, %s729_s1 }
   0xf   : > { %p405_p9 = pneg %p591_p7 }
  0x11   : > { %p406_p10 = pnand %p405_p9, %p404_p8 }
  0x13   : > { %p407_p11 = pneg %p406_p10 }
  0x15   : > { %p412_p13 = pnand %p410_p12, %p407_p11 }
  0x17   : > { %415 = shalt.err (!%p412_p13)
}
  0x18   : > { %s416_s6 = scalar_lea.vmem %s130_s20, 16  ;;  %s423_s7 = scalar_lea.vmem %s130_s20, 32 }
  0x19   : > { %p417_p0 = scmp.ne.s32.totalorder %s130_s20, %s416_s6  ;;  %p424_p6 = scmp.lt.s32.totalorder %s130_s20, %s130_s20 }
  0x1a   : > { %p425_p1 = scmp.lt.s32.totalorder %s423_s7, %s416_s6 }
  0x1b   : > { %p419_p2 = pnand %p417_p0, %p405_p9 }
  0x1c   : > { %p426_p4 = por %p425_p1, %p424_p6 }
  0x1d   : > { %p420_p3 = pneg %p419_p2 }
  0x1f   : > { %p427_p5 = pnand %p426_p4, %p420_p3 }
  0x21   : > { %430 = shalt.err (!%p427_p5)
}
  0x22   : > { %354 = dma.hbm_to_vmem [thread:$0]  (!%p591_p7), %s729_s1, 16, %s130_s20, [#allocation5]  }
  0x23   : > { %s431_s12 = scalar_lea.hbm %s730_s2, 16 }
  0x24   : > { %p432_p8 = scmp.ne.s32.totalorder %s730_s2, %s431_s12  ;;  %p438_p5 = scmp.lt.u32.totalorder %s431_s12, %s730_s2 }
  0x26   : > { %p434_p1 = pnand %p432_p8, %p405_p9 }
  0x28   : > { %p435_p4 = pneg %p434_p1 }
  0x2a   : > { %p440_p10 = pnand %p438_p5, %p435_p4 }
  0x2c   : > { %443 = shalt.err (!%p440_p10)
}
  0x2d   : > { %s444_s20 = scalar_lea.vmem %s595_s22, 16  ;;  %s451_s28 = scalar_lea.vmem %s595_s22, 32 }
  0x2e   : > { %p445_p11 = scmp.ne.s32.totalorder %s595_s22, %s444_s20  ;;  %p452_p0 = scmp.lt.s32.totalorder %s595_s22, %s595_s22 }
  0x2f   : > { %p453_p2 = scmp.lt.s32.totalorder %s451_s28, %s444_s20 }
  0x30   : > { %p447_p12 = pnand %p445_p11, %p405_p9 }
  0x31   : > { %p454_p3 = por %p453_p2, %p452_p0 }
  0x32   : > { %p448_p13 = pneg %p447_p12 }
  0x34   : > { %p455_p6 = pnand %p454_p3, %p448_p13 }
  0x36   : > { %458 = shalt.err (!%p455_p6)
}
  0x37   : > { %357 = dma.hbm_to_vmem [thread:$0]  (!%p591_p7), %s730_s2, 16, %s595_s22, [#allocation5]  }
  0x38   : > { %p22_p9 = scmp.eq.s32.totalorder %s21_s25, 0  ;;  %s24_s4 = sadd.s32 1, %s523_s14 }
  0x39   : > { %p31_p8 = scmp.ne.s32.totalorder %s523_s14, %s519_s13  ;;  %p32_p1 = scmp.eq.s32.totalorder %s527_s15, 0 }
  0x3a   : > { %s658_s23 = scalar_select %p22_p9, %s523_s14, %s24_s4  }
  0x3b   : > { %p33_p4 = por %p32_p1, %p31_p8  ;;  %p364_p5 = scmp.lt.s32.totalorder %s527_s15, 2 }
  0x3c   : > { %s151_s5 = sand.u32 1, %s523_s14   ;;  %s331_s6 = sshll.u32 %s527_s15, 7 }
  0x3d   : > { %s330_s7 = sshll.u32 %s151_s5, 3  ;;  %s666_s10 = scalar_lea.hbm %s728_s0, %s331_s6 }
  0x3e   : > { %s155_s22 = scalar_lea.vmem [#allocation2], %s330_s7  ;;  %p668_p7 = pnand %p364_p5, %p33_p4 }
  0x3f   : > { %s162_s25 = sshll.u32 %s155_s22, 4  ;;  %s152_s15 = scalar_lea.sflag [#allocation3], %s151_s5  ;;  %s672_s25 = int_to_ptr.vmem [resolvable:$true] %s162_s25 }
  0x40   : > { %s459_s12 = scalar_lea.hbm %s666_s10, 128  ;;  %p461_p11 = pneg %p668_p7 }
  0x41   : > { %p460_p10 = scmp.ne.s32.totalorder %s666_s10, %s459_s12  ;;  %s464_s26 = scalar_lea.hbm %s728_s0, 256 }
  0x42   : > { %p465_p0 = scmp.lt.u32.totalorder %s666_s10, %s728_s0  ;;  %p466_p2 = scmp.lt.u32.totalorder %s464_s26, %s459_s12 }
  0x43   : > { %p462_p12 = pnand %p461_p11, %p460_p10  ;;  %p468_p6 = scmp.lt.u32.totalorder %s459_s12, %s666_s10 }
  0x44   : > { %p467_p3 = por %p466_p2, %p465_p0 }
  0x45   : > { %p463_p13 = pneg %p462_p12 }
  0x46   : > { %p469_p9 = por %p468_p6, %p467_p3 }
  0x48   : > { %p470_p8 = pnand %p469_p9, %p463_p13 }
  0x4a   : > { %473 = shalt.err (!%p470_p8)
}
  0x4b   : > { %s474_s28 = scalar_lea.vmem %s672_s25, 128  ;;  %s531_s29 = smov [#allocation2]  }
  0x4c   : > { %p475_p1 = scmp.ne.s32.totalorder %s672_s25, %s474_s28  ;;  %s479_s30 = sshll.u32 %s531_s29, 4  ;;  %s480_s30 = int_to_ptr.vmem [resolvable:$false] %s479_s30 }
  0x4d   : > { %s481_s4 = scalar_lea.vmem %s480_s30, 256  ;;  %p482_p10 = scmp.lt.s32.totalorder %s672_s25, %s480_s30 }
  0x4e   : > { %p477_p4 = pnand %p475_p1, %p461_p11  ;;  %p483_p12 = scmp.lt.s32.totalorder %s481_s4, %s474_s28 }
  0x50   : > { %p478_p5 = pneg %p477_p4  ;;  %p484_p0 = por %p483_p12, %p482_p10 }
  0x52   : > { %p485_p2 = pnand %p484_p0, %p478_p5 }
  0x54   : > { %488 = shalt.err (!%p485_p2)
}
  0x55   : > { %361 = dma.hbm_to_vmem [thread:$0]  (!%p668_p7), %s666_s10, 128, %s672_s25, %s152_s15  }
  0x56   : > { %p739_p13 = scmp.ne.s32.totalorder %s736_s18, 0 }
  0x57   : > { %s173_s5 = sand.u32 (!%p739_p13), 1, %s519_s13   ;;  %p740_p11 = scmp.ne.s32.totalorder (!%p739_p13), %s735_s17, 0 }
  0x58   : > { %171 = sbr.rel (%p739_p13) target bundleno = 412 (0x19c), region = 32  ;;  %s333_s6 = sshll.u32 (!%p739_p13), %s173_s5, 3 }
  0x59   : > { %s174_s7 = scalar_lea.sflag (!%p739_p13), [#allocation3], %s173_s5  ;;  %s177_s8 = scalar_lea.vmem (!%p739_p13), [#allocation2], %s333_s6 }
  0x5f   : > { %506 = dma.done.wait (%p740_p11), %s174_s7, 128  }
  0x60   : > { %508 = vsyncadd (%p740_p11), %s174_s7, 4294967168  ;;  %p741_p3 = scmp.eq.s32.totalorder %s571_s16, 0 }
  0x62   : > { %510 = dma.done.wait (%p741_p3), [#allocation5], 32   ;;  %p742_p6 = pmov %p741_p3 }
  0x63   : > { %v211_v0 = vld [vmem:[%s177_s8] sm:$0xff]  ;;  %p207_p7 = scmp.lt.s32.totalorder %s571_s16, 1  ;;  %v337_v9 = vld [vmem:[#allocation4] ss:$0 sm:$0xff]  ;;  %v338_v11 = vld [vmem:[#allocation6] ss:$0 sm:$0xff] }
  0x64   : > { %512 = vsyncadd (%p742_p6), [#allocation5], 4294967264  ;;  %212 = vadd.xlane.f32.xlu0 %v211_v0 }
  0x65   : > { %s748_s16 = smov (!%p207_p7, %s571_s16), 1 }
  0x66   : > { %s336_s17 = sshll.u32 %s748_s16, 3 }
  0x67   : > { %s210_s10 = scalar_lea.vmem %s731_s3, %s336_s17 }
  0xf1   : > { %v213_v1 = vpop.xlane.xlu0 %212 }
  0xf2   : > { %v215_v2 = vmul.f32 0.0078125, %v213_v1 }
  0xf4   : > { %v216_v3 = vsub.f32 %v211_v0, %v215_v2 }
  0xf6   : > { %v217_v4 = vmul.f32 %v216_v3, %v216_v3 }
  0xf8   : > { %218 = vadd.xlane.f32.xlu0 %v217_v4 }
 0x185   : > { %v219_v5 = vpop.xlane.xlu0 %218 }
 0x186   : > { %v220_v6 = vmul.f32 0.0078125, %v219_v5 }
 0x188   : > { %v221_v7 = vadd.f32 1e-05, %v220_v6 }
 0x18a   : > { %401 = vrsqrt.f32 %v221_v7 }
 0x194   : > { %v402_v8 = vpop.eup %401 }
 0x195   : > { %v223_v10 = vmul.f32 %v402_v8, %v216_v3 }
 0x197   : > { %v231_v12 = vmul.f32 %v337_v9, %v223_v10 }
 0x199   : > { %v239_v13 = vadd.f32 %v338_v11, %v231_v12 }
 0x19b   : > { %240 = vst [vmem:[%s210_s10] sm:$0xff] %v239_v13 }
 0x19c PF: > { %p14_p9 = scmp.ge.s32.totalorder %s598_s24, 4   ;;  %s743_s12 = smov %s519_s13 }
 0x19d   : > { %s744_s13 = smov %s523_s14  ;;  %s745_s14 = smov %s658_s23 }
 0x19e   : > { %s746_s15 = smov %s598_s24  ;;  %16 = sbr.rel (!%p14_p9) target bundleno = 4 (0x4), region = 80 }
 0x1a5   :  { %260 = vsyncpa [#allocation3], 1 }
 0x1a6   :  { %262 = vsyncpa [#allocation3 + $0x1], 1 }
 0x1a7   :  { %263 = vsyncpa [#allocation5], 1 }

</bundles_post_ra>
